<compile_context>
chip_gen: v5e
topology: v5e:2x2
jax: 0.10.0
libtpu: 0.0.40
codegen_flags: <defaults>
</compile_context>

<pallas_src>
import jax
import jax.numpy as jnp
from jax.experimental import pallas as pl
from jax.experimental.pallas import tpu as pltpu

INPUT_DIM = 768
LATENT_DIM = 8
H1 = 256
H2 = 64
H2_PAD = 128  # lane-dense padded width of the 64-wide hidden layer


def _autoencoder_kernel(x_ref,
                        w1, b1, w2, b2, w34, b34, w5, b5, w6, b6,
                        o_ref):
    # bf16 MXU inputs, f32 accumulation everywhere.
    x = x_ref[...].astype(jnp.bfloat16)

    # ---- encoder: 768 -> 256 -> 128 (zero-padded 64) ----
    h = jnp.dot(x, w1[...], preferred_element_type=jnp.float32) + b1[...]
    h = jnp.maximum(h, 0.0).astype(jnp.bfloat16)
    h = jnp.dot(h, w2[...], preferred_element_type=jnp.float32) + b2[...]
    h = jnp.maximum(h, 0.0).astype(jnp.bfloat16)

    # ---- fused latent bottleneck (64->8->64 collapsed to one 128x128) ----
    h = jnp.dot(h, w34[...], preferred_element_type=jnp.float32) + b34[...]
    h = jnp.maximum(h, 0.0).astype(jnp.bfloat16)

    # ---- decoder: 128 (padded 64) -> 256 -> 768 ----
    h = jnp.dot(h, w5[...], preferred_element_type=jnp.float32) + b5[...]
    h = jnp.maximum(h, 0.0).astype(jnp.bfloat16)
    y = jnp.dot(h, w6[...], preferred_element_type=jnp.float32) + b6[...]

    # sigmoid = 1 / (1 + exp(-y)); exp on the EUP, approx reciprocal keeps the
    # epilogue off the VALU slots.
    out = pl.reciprocal(1.0 + jnp.exp(-y), approx=True)
    o_ref[...] = out.astype(o_ref.dtype)


def _prepare_params(params, compute_dtype=jnp.bfloat16):
    """Host-side fusion of the latent bottleneck + zero-pad H2 to 128 lanes."""
    (w1, b1), (w2, b2), (w3, b3), (w4, b4), (w5, b5), (w6, b6) = params

    # Fuse the two linear maps through the 8-wide latent (no nonlinearity
    # between them).  Done in f32 before the bf16 cast.
    w34 = w3 @ w4                     # [H2, H2]
    b34 = b3 @ w4 + b4                # [1, H2]

    def pad_cols(a, n):
        return jnp.pad(a, ((0, 0), (0, n - a.shape[1])))

    def pad_rows(a, n):
        return jnp.pad(a, ((0, n - a.shape[0]), (0, 0)))

    w2p = pad_cols(w2, H2_PAD)                      # [256, 128]
    b2p = pad_cols(b2, H2_PAD)                      # [1, 128]
    w34p = pad_rows(pad_cols(w34, H2_PAD), H2_PAD)  # [128, 128]
    b34p = pad_cols(b34, H2_PAD)                    # [1, 128]
    w5p = pad_rows(w5, H2_PAD)                      # [128, 256]

    weights = [w1, w2p, w34p, w5p, w6]
    biases = [b1, b2p, b34p, b5, b6]

    flat = []
    for w, b in zip(weights, biases):
        flat.append(w.astype(compute_dtype))   # bf16 MXU inputs
        flat.append(b.astype(jnp.float32))     # f32 bias added to f32 acc
    # order: w1, b1, w2p, b2p, w34p, b34p, w5p, b5, w6, b6
    return flat


def autoencoder_forward(x, params, *, tile_b=512, compute_dtype=jnp.bfloat16):
    """x: [B, INPUT_DIM] float32 -> reconstructed [B, INPUT_DIM] float32."""
    B, D = x.shape
    assert D == INPUT_DIM

    flat_params = _prepare_params(params, compute_dtype)

    # Effective batch tile: multiple of 8, no larger than the padded batch.
    b_pad8 = ((B + 7) // 8) * 8
    tile = max(8, (min(tile_b, b_pad8) // 8) * 8)
    b_pad = ((b_pad8 + tile - 1) // tile) * tile
    if b_pad != B:
        x = jnp.pad(x, ((0, b_pad - B), (0, 0)))

    grid = (b_pad // tile,)

    def full_spec(arr):
        nd = arr.ndim
        return pl.BlockSpec(arr.shape, lambda i, nd=nd: (0,) * nd)

    in_specs = [pl.BlockSpec((tile, INPUT_DIM), lambda i: (i, 0))]
    in_specs += [full_spec(p) for p in flat_params]
    out_spec = pl.BlockSpec((tile, INPUT_DIM), lambda i: (i, 0))

    # Advisory cost estimate for XLA's scheduler.
    flops = 2 * b_pad * (INPUT_DIM * H1 + H1 * H2_PAD + H2_PAD * H2_PAD
                         + H2_PAD * H1 + H1 * INPUT_DIM)
    param_bytes = sum(int(p.size) * p.dtype.itemsize for p in flat_params)
    bytes_accessed = 2 * b_pad * INPUT_DIM * 4 + param_bytes
    cost = pl.CostEstimate(flops=flops,
                           transcendentals=b_pad * INPUT_DIM,
                           bytes_accessed=bytes_accessed)

    fn = pl.pallas_call(
        _autoencoder_kernel,
        out_shape=jax.ShapeDtypeStruct((b_pad, INPUT_DIM), jnp.float32),
        grid_spec=pltpu.PrefetchScalarGridSpec(
            num_scalar_prefetch=0,
            grid=grid,
            in_specs=in_specs,
            out_specs=out_spec,
        ),
        compiler_params=pltpu.CompilerParams(
            dimension_semantics=("parallel",),
            vmem_limit_bytes=48 * 1024 * 1024),
        cost_estimate=cost,
    )
    out = fn(x, *flat_params)
    return out[:B] if b_pad != B else out


def init_params(key):
    """Deterministic init matching PyTorch layer shapes.
    Weights stored as [in, out]; biases as [1, out] (2-D for TPU layout)."""
    dims = [
        (INPUT_DIM, H1), (H1, H2), (H2, LATENT_DIM),      # encoder
        (LATENT_DIM, H2), (H2, H1), (H1, INPUT_DIM),      # decoder
    ]
    params = []
    for (fan_in, fan_out) in dims:
        key, kw, kb = jax.random.split(key, 3)
        bound = 1.0 / jnp.sqrt(fan_in)
        w = jax.random.uniform(kw, (fan_in, fan_out), jnp.float32,
                               -bound, bound)
        b = jax.random.uniform(kb, (1, fan_out), jnp.float32, -bound, bound)
        params.append((w, b))
    return params


def reference_forward(x, params):
    """Plain-JAX f32 reference of the original (unfused, unpadded) forward."""
    (w1, b1), (w2, b2), (w3, b3), (w4, b4), (w5, b5), (w6, b6) = params
    h = jnp.maximum(x @ w1 + b1, 0.0)
    h = jnp.maximum(h @ w2 + b2, 0.0)
    lat = h @ w3 + b3
    h = jnp.maximum(lat @ w4 + b4, 0.0)
    h = jnp.maximum(h @ w5 + b5, 0.0)
    return jax.nn.sigmoid(h @ w6 + b6)


if __name__ == "__main__":
    key = jax.random.PRNGKey(0)
    key, kx = jax.random.split(key)

    # Small deterministic test batch (not a multiple of the tile, to exercise
    # the padding path and a multi-step "parallel" grid).
    B = 200
    x = jax.random.normal(kx, (B, INPUT_DIM), jnp.float32)
    params = init_params(key)

    ref = reference_forward(x, params)

    # multi-tile path (tile=64 -> grid of 4 steps, batch padded 200 -> 256)
    out_a = jax.block_until_ready(autoencoder_forward(x, params, tile_b=64))
    # default big-tile path (tile clamps to the batch -> single grid step)
    out_b = jax.block_until_ready(autoencoder_forward(x, params))

    assert out_a.shape == (B, INPUT_DIM)
    assert out_b.shape == (B, INPUT_DIM)
    # bf16 MXU inputs + approx reciprocal => compare with a loose abs tolerance
    # (sigmoid outputs are in (0,1), observed error is ~1e-3).
    err_a = float(jnp.max(jnp.abs(out_a - ref)))
    err_b = float(jnp.max(jnp.abs(out_b - ref)))
    assert err_a < 2e-2, f"mismatch vs reference (multi-tile): {err_a}"
    assert err_b < 2e-2, f"mismatch vs reference (single-tile): {err_b}"

    print("KERNEL_OK")
</pallas_src>

<mosaic_0001>
module attributes {stable_mosaic.version = 11 : i64} {
  func.func @_autoencoder_kernel(%arg0: i32, %arg1: memref<64x768xf32, #tpu.memory_space<vmem>>, %arg2: memref<768x256xbf16, #tpu.memory_space<vmem>>, %arg3: memref<1x256xf32, #tpu.memory_space<vmem>>, %arg4: memref<256x128xbf16, #tpu.memory_space<vmem>>, %arg5: memref<1x128xf32, #tpu.memory_space<vmem>>, %arg6: memref<128x128xbf16, #tpu.memory_space<vmem>>, %arg7: memref<1x128xf32, #tpu.memory_space<vmem>>, %arg8: memref<128x256xbf16, #tpu.memory_space<vmem>>, %arg9: memref<1x256xf32, #tpu.memory_space<vmem>>, %arg10: memref<256x768xbf16, #tpu.memory_space<vmem>>, %arg11: memref<1x768xf32, #tpu.memory_space<vmem>>, %arg12: memref<64x768xf32, #tpu.memory_space<vmem>>) attributes {dimension_semantics = [#tpu.dimension_semantics<parallel>], iteration_bounds = array<i64: 4>, scalar_prefetch = 0 : i64, scratch_operands = 0 : i64, tpu.core_type = #tpu.core_type<tc>, window_params = [{transform_indices = @transform_0, window_bounds = array<i64: 64, 768>}, {pipeline_mode = #tpu.pipeline_mode<synchronous>, transform_indices = @transform_1, window_bounds = array<i64: 768, 256>}, {pipeline_mode = #tpu.pipeline_mode<synchronous>, transform_indices = @transform_2, window_bounds = array<i64: 1, 256>}, {pipeline_mode = #tpu.pipeline_mode<synchronous>, transform_indices = @transform_3, window_bounds = array<i64: 256, 128>}, {pipeline_mode = #tpu.pipeline_mode<synchronous>, transform_indices = @transform_4, window_bounds = array<i64: 1, 128>}, {pipeline_mode = #tpu.pipeline_mode<synchronous>, transform_indices = @transform_5, window_bounds = array<i64: 128, 128>}, {pipeline_mode = #tpu.pipeline_mode<synchronous>, transform_indices = @transform_6, window_bounds = array<i64: 1, 128>}, {pipeline_mode = #tpu.pipeline_mode<synchronous>, transform_indices = @transform_7, window_bounds = array<i64: 128, 256>}, {pipeline_mode = #tpu.pipeline_mode<synchronous>, transform_indices = @transform_8, window_bounds = array<i64: 1, 256>}, {pipeline_mode = #tpu.pipeline_mode<synchronous>, transform_indices = @transform_9, window_bounds = array<i64: 256, 768>}, {pipeline_mode = #tpu.pipeline_mode<synchronous>, transform_indices = @transform_10, window_bounds = array<i64: 1, 768>}, {transform_indices = @transform_11, window_bounds = array<i64: 64, 768>}]} {
    %c0 = arith.constant 0 : index
    %c0_0 = arith.constant 0 : index
    %0 = vector.load %arg1[%c0, %c0_0] : memref<64x768xf32, #tpu.memory_space<vmem>>, vector<64x768xf32>
    %1 = arith.truncf %0 : vector<64x768xf32> to vector<64x768xbf16>
    %c0_1 = arith.constant 0 : index
    %c0_2 = arith.constant 0 : index
    %2 = vector.load %arg2[%c0_1, %c0_2] : memref<768x256xbf16, #tpu.memory_space<vmem>>, vector<768x256xbf16>
    %cst = arith.constant dense<0.000000e+00> : vector<64x256xf32>
    %3 = tpu.matmul %1, %2, %cst {dimension_numbers = #tpu.dot_dimension_numbers<[1], [0], [0], [1], [0, 0, 1, 1], [], []>} : vector<64x768xbf16>, vector<768x256xbf16>, vector<64x256xf32> -> vector<64x256xf32>
    %c0_3 = arith.constant 0 : index
    %c0_4 = arith.constant 0 : index
    %4 = vector.load %arg3[%c0_3, %c0_4] : memref<1x256xf32, #tpu.memory_space<vmem>>, vector<1x256xf32>
    %5 = vector.broadcast %4 : vector<1x256xf32> to vector<64x256xf32>
    %6 = arith.addf %3, %5 : vector<64x256xf32>
    %cst_5 = arith.constant 0.000000e+00 : f32
    %7 = vector.broadcast %cst_5 : f32 to vector<64x256xf32>
    %8 = arith.maximumf %6, %7 : vector<64x256xf32>
    %9 = arith.truncf %8 : vector<64x256xf32> to vector<64x256xbf16>
    %c0_6 = arith.constant 0 : index
    %c0_7 = arith.constant 0 : index
    %10 = vector.load %arg4[%c0_6, %c0_7] : memref<256x128xbf16, #tpu.memory_space<vmem>>, vector<256x128xbf16>
    %cst_8 = arith.constant dense<0.000000e+00> : vector<64x128xf32>
    %11 = tpu.matmul %9, %10, %cst_8 {dimension_numbers = #tpu.dot_dimension_numbers<[1], [0], [0], [1], [0, 0, 1, 1], [], []>} : vector<64x256xbf16>, vector<256x128xbf16>, vector<64x128xf32> -> vector<64x128xf32>
    %c0_9 = arith.constant 0 : index
    %c0_10 = arith.constant 0 : index
    %12 = vector.load %arg5[%c0_9, %c0_10] : memref<1x128xf32, #tpu.memory_space<vmem>>, vector<1x128xf32>
    %13 = vector.broadcast %12 : vector<1x128xf32> to vector<64x128xf32>
    %14 = arith.addf %11, %13 : vector<64x128xf32>
    %cst_11 = arith.constant 0.000000e+00 : f32
    %15 = vector.broadcast %cst_11 : f32 to vector<64x128xf32>
    %16 = arith.maximumf %14, %15 : vector<64x128xf32>
    %17 = arith.truncf %16 : vector<64x128xf32> to vector<64x128xbf16>
    %c0_12 = arith.constant 0 : index
    %c0_13 = arith.constant 0 : index
    %18 = vector.load %arg6[%c0_12, %c0_13] : memref<128x128xbf16, #tpu.memory_space<vmem>>, vector<128x128xbf16>
    %cst_14 = arith.constant dense<0.000000e+00> : vector<64x128xf32>
    %19 = tpu.matmul %17, %18, %cst_14 {dimension_numbers = #tpu.dot_dimension_numbers<[1], [0], [0], [1], [0, 0, 1, 1], [], []>} : vector<64x128xbf16>, vector<128x128xbf16>, vector<64x128xf32> -> vector<64x128xf32>
    %c0_15 = arith.constant 0 : index
    %c0_16 = arith.constant 0 : index
    %20 = vector.load %arg7[%c0_15, %c0_16] : memref<1x128xf32, #tpu.memory_space<vmem>>, vector<1x128xf32>
    %21 = vector.broadcast %20 : vector<1x128xf32> to vector<64x128xf32>
    %22 = arith.addf %19, %21 : vector<64x128xf32>
    %cst_17 = arith.constant 0.000000e+00 : f32
    %23 = vector.broadcast %cst_17 : f32 to vector<64x128xf32>
    %24 = arith.maximumf %22, %23 : vector<64x128xf32>
    %25 = arith.truncf %24 : vector<64x128xf32> to vector<64x128xbf16>
    %c0_18 = arith.constant 0 : index
    %c0_19 = arith.constant 0 : index
    %26 = vector.load %arg8[%c0_18, %c0_19] : memref<128x256xbf16, #tpu.memory_space<vmem>>, vector<128x256xbf16>
    %cst_20 = arith.constant dense<0.000000e+00> : vector<64x256xf32>
    %27 = tpu.matmul %25, %26, %cst_20 {dimension_numbers = #tpu.dot_dimension_numbers<[1], [0], [0], [1], [0, 0, 1, 1], [], []>} : vector<64x128xbf16>, vector<128x256xbf16>, vector<64x256xf32> -> vector<64x256xf32>
    %c0_21 = arith.constant 0 : index
    %c0_22 = arith.constant 0 : index
    %28 = vector.load %arg9[%c0_21, %c0_22] : memref<1x256xf32, #tpu.memory_space<vmem>>, vector<1x256xf32>
    %29 = vector.broadcast %28 : vector<1x256xf32> to vector<64x256xf32>
    %30 = arith.addf %27, %29 : vector<64x256xf32>
    %cst_23 = arith.constant 0.000000e+00 : f32
    %31 = vector.broadcast %cst_23 : f32 to vector<64x256xf32>
    %32 = arith.maximumf %30, %31 : vector<64x256xf32>
    %33 = arith.truncf %32 : vector<64x256xf32> to vector<64x256xbf16>
    %c0_24 = arith.constant 0 : index
    %c0_25 = arith.constant 0 : index
    %34 = vector.load %arg10[%c0_24, %c0_25] : memref<256x768xbf16, #tpu.memory_space<vmem>>, vector<256x768xbf16>
    %cst_26 = arith.constant dense<0.000000e+00> : vector<64x768xf32>
    %35 = tpu.matmul %33, %34, %cst_26 {dimension_numbers = #tpu.dot_dimension_numbers<[1], [0], [0], [1], [0, 0, 1, 1], [], []>} : vector<64x256xbf16>, vector<256x768xbf16>, vector<64x768xf32> -> vector<64x768xf32>
    %c0_27 = arith.constant 0 : index
    %c0_28 = arith.constant 0 : index
    %36 = vector.load %arg11[%c0_27, %c0_28] : memref<1x768xf32, #tpu.memory_space<vmem>>, vector<1x768xf32>
    %37 = vector.broadcast %36 : vector<1x768xf32> to vector<64x768xf32>
    %38 = arith.addf %35, %37 : vector<64x768xf32>
    %cst_29 = arith.constant 0.000000e+00 : f32
    %39 = vector.broadcast %cst_29 : f32 to vector<64x768xf32>
    %40 = arith.subf %39, %38 : vector<64x768xf32>
    %41 = math.exp %40 : vector<64x768xf32>
    %cst_30 = arith.constant 1.000000e+00 : f32
    %42 = vector.broadcast %cst_30 : f32 to vector<64x768xf32>
    %43 = arith.addf %42, %41 : vector<64x768xf32>
    %44 = tpu.reciprocal %43 {approx = true} : vector<64x768xf32> -> vector<64x768xf32>
    %c0_31 = arith.constant 0 : index
    %c0_32 = arith.constant 0 : index
    %45 = vector.load %arg12[%c0_31, %c0_32] : memref<64x768xf32, #tpu.memory_space<vmem>>, vector<64x768xf32>
    tpu.vector_store %arg12[%c0_31, %c0_32], %44 {strides = array<i32>} : memref<64x768xf32, #tpu.memory_space<vmem>>, vector<64x768xf32>,
    return
  }
  func.func @transform_0(%arg0: i32) -> (i32, i32) {
    %c0_i32 = arith.constant 0 : i32
    %c0_i32_0 = arith.constant 0 : i32
    return %arg0, %c0_i32 : i32, i32
  }
  func.func @transform_1(%arg0: i32) -> (i32, i32) {
    %c0_i32 = arith.constant 0 : i32
    %c0_i32_0 = arith.constant 0 : i32
    %c0_i32_1 = arith.constant 0 : i32
    return %c0_i32, %c0_i32_0 : i32, i32
  }
  func.func @transform_2(%arg0: i32) -> (i32, i32) {
    %c0_i32 = arith.constant 0 : i32
    %c0_i32_0 = arith.constant 0 : i32
    %c0_i32_1 = arith.constant 0 : i32
    return %c0_i32, %c0_i32_0 : i32, i32
  }
  func.func @transform_3(%arg0: i32) -> (i32, i32) {
    %c0_i32 = arith.constant 0 : i32
    %c0_i32_0 = arith.constant 0 : i32
    %c0_i32_1 = arith.constant 0 : i32
    return %c0_i32, %c0_i32_0 : i32, i32
  }
  func.func @transform_4(%arg0: i32) -> (i32, i32) {
    %c0_i32 = arith.constant 0 : i32
    %c0_i32_0 = arith.constant 0 : i32
    %c0_i32_1 = arith.constant 0 : i32
    return %c0_i32, %c0_i32_0 : i32, i32
  }
  func.func @transform_5(%arg0: i32) -> (i32, i32) {
    %c0_i32 = arith.constant 0 : i32
    %c0_i32_0 = arith.constant 0 : i32
    %c0_i32_1 = arith.constant 0 : i32
    return %c0_i32, %c0_i32_0 : i32, i32
  }
  func.func @transform_6(%arg0: i32) -> (i32, i32) {
    %c0_i32 = arith.constant 0 : i32
    %c0_i32_0 = arith.constant 0 : i32
    %c0_i32_1 = arith.constant 0 : i32
    return %c0_i32, %c0_i32_0 : i32, i32
  }
  func.func @transform_7(%arg0: i32) -> (i32, i32) {
    %c0_i32 = arith.constant 0 : i32
    %c0_i32_0 = arith.constant 0 : i32
    %c0_i32_1 = arith.constant 0 : i32
    return %c0_i32, %c0_i32_0 : i32, i32
  }
  func.func @transform_8(%arg0: i32) -> (i32, i32) {
    %c0_i32 = arith.constant 0 : i32
    %c0_i32_0 = arith.constant 0 : i32
    %c0_i32_1 = arith.constant 0 : i32
    return %c0_i32, %c0_i32_0 : i32, i32
  }
  func.func @transform_9(%arg0: i32) -> (i32, i32) {
    %c0_i32 = arith.constant 0 : i32
    %c0_i32_0 = arith.constant 0 : i32
    %c0_i32_1 = arith.constant 0 : i32
    return %c0_i32, %c0_i32_0 : i32, i32
  }
  func.func @transform_10(%arg0: i32) -> (i32, i32) {
    %c0_i32 = arith.constant 0 : i32
    %c0_i32_0 = arith.constant 0 : i32
    %c0_i32_1 = arith.constant 0 : i32
    return %c0_i32, %c0_i32_0 : i32, i32
  }
  func.func @transform_11(%arg0: i32) -> (i32, i32) {
    %c0_i32 = arith.constant 0 : i32
    %c0_i32_0 = arith.constant 0 : i32
    return %arg0, %c0_i32 : i32, i32
  }
}

</mosaic_0001>

<bundles_post_ra>
// kernel: tpu_custom_call.1
= control target key start
LH: loop header
LB: loop body
LE: loop exit
PB: predicated region body
PF: predicated region fallthrough
CT: control target
= control target key end

     0   :  { %s6050_s0 = inlined_call_operand.hbm [shape: f32[256,768], index: 0, kind: input, shape index: {}]   ;;  %s6051_s1 = inlined_call_operand.hbm [shape: bf16[768,256], index: 1, kind: input, shape index: {}]   ;;  %s6052_s2 = inlined_call_operand.hbm [shape: f32[1,256], index: 2, kind: input, shape index: {}]   ;;  %s6053_s3 = inlined_call_operand.hbm [shape: bf16[256,128], index: 3, kind: input, shape index: {}]   ;;  %s6054_s4 = inlined_call_operand.vmem [shape: f32[1,128], index: 4, kind: input, shape index: {}]   ;;  %s6055_s5 = inlined_call_operand.hbm [shape: bf16[128,128], index: 5, kind: input, shape index: {}]   ;;  %s6056_s6 = inlined_call_operand.hbm [shape: f32[1,128], index: 6, kind: input, shape index: {}]   ;;  %s6057_s7 = inlined_call_operand.hbm [shape: bf16[128,256], index: 7, kind: input, shape index: {}]   ;;  %s6058_s8 = inlined_call_operand.vmem [shape: f32[1,256], index: 8, kind: input, shape index: {}]   ;;  %s6059_s9 = inlined_call_operand.hbm [shape: bf16[256,768], index: 9, kind: input, shape index: {}]   ;;  %s6060_s10 = inlined_call_operand.vmem [shape: f32[1,768], index: 10, kind: input, shape index: {}]   ;;  %s6061_s11 = inlined_call_operand.hbm [shape: f32[256,768], index: 11, kind: output, shape index: {}]  }
   0x1   :  { %6064 = sst [smem:[#allocation23_spill]] %s6051_s1 }
   0x2   :  { %6065 = sst [smem:[#allocation24_spill]] %s6052_s2 }
   0x3   :  { %6066 = sst [smem:[#allocation25_spill]] %s6053_s3 }
   0x4   :  { %6067 = sst [smem:[#allocation26_spill]] %s6055_s5 }
   0x5   :  { %6068 = sst [smem:[#allocation27_spill]] %s6056_s6 }
   0x6   :  { %6069 = sst [smem:[#allocation28_spill]] %s6057_s7 }
   0x7   :  { %6070 = sst [smem:[#allocation29_spill]] %s6060_s10 }
   0x8   :  { %6071 = sst [smem:[#allocation30_spill]] %s6061_s11 }
   0x9   :  { %16 = vsyncpa [#allocation3], 0 }
   0xa   :  { %18 = vsyncpa [#allocation3 + $0x1], 0 }
   0xb   :  { %19 = vsyncpa [#allocation6], 0 }
   0xc   :  { %20 = vsyncpa [#allocation9], 0 }
   0xd   :  { %21 = vsyncpa [#allocation12], 0 }
   0xe   :  { %22 = vsyncpa [#allocation15], 0 }
   0xf   :  { %23 = vsyncpa [#allocation4], 0 }
  0x10   :  { %25 = vsyncpa [#allocation4 + $0x1], 0  ;;  %s5354_s17 = smov 0   ;;  %s5356_s18 = smov 0  }
  0x11   :  { %s5358_s19 = smov 0   ;;  %s5360_s20 = smov 0  }
  0x12 LB: > { %s6072_s1 = sld [smem:[#allocation23_spill]]  ;;  %s5378_s24 = sadd.s32 4294967295, %s5275_s20   ;;  %s5275_s20 = sphi %s5360_s20, %s6090_s20   ;;  %s5271_s19 = sphi %s5358_s19, %s6089_s19   ;;  %s5267_s18 = sphi %s5356_s18, %s6088_s18   ;;  %s5263_s17 = sphi %s5354_s17, %s6087_s17  }
  0x13   : > { %p3427_p0 = scmp.ge.s32.totalorder %s5275_s20, 1  ;;  %p52_p1 = scmp.eq.s32.totalorder %s5378_s24, 0 }
  0x14   : > { %p298_p2 = scmp.lt.s32.totalorder %s5275_s20, 5  ;;  %s5277_s26 = smov [#allocation5]  }
  0x15   : > { %s311_s27 = sshll.u32 %s5277_s26, 4  ;;  %s6074_s3 = sld [smem:[#allocation25_spill]]  ;;  %s312_s27 = int_to_ptr.vmem [resolvable:$true] %s311_s27 }
  0x16   : > { %p5383_p3 = pnand %p3427_p0, %p298_p2  ;;  %s5278_s13 = smov [#allocation8]  }
  0x17   : > { %s337_s14 = sshll.u32 %s5278_s13, 4  ;;  %s6063_s15 = smov 128   ;;  %s338_s14 = int_to_ptr.vmem [resolvable:$true] %s337_s14 }
  0x18   : > { %s309_s23 = sshll.u32 %s6072_s1, 4  ;;  %p4664_p4 = pneg %p5383_p3  ;;  %s310_s23 = int_to_ptr.hbm [resolvable:$true] %s309_s23 }
  0x19   : > { %s5280_s16 = smov 8   ;;  %s5281_s21 = smov 64  }
  0x1a   : > { %p5394_p5 = pnand %p4664_p4, %p52_p1  ;;  %s5282_s22 = smov 4  }
  0x1b   : > { %s335_s30 = sshll.u32 %s6074_s3, 4  ;;  %s6076_s6 = sld [smem:[#allocation27_spill]]  ;;  %s336_s30 = int_to_ptr.hbm [resolvable:$true] %s335_s30 }
  0x1c   : > { %4667 = dma.hbm_to_vmem [thread:$0]  (!%p5394_p5), %s310_s23, 12288, %s312_s27, [#allocation6], %s6063_s15, %s6063_s15, %s5280_s16  }
  0x1d   : > { %4673 = dma.hbm_to_vmem [thread:$0]  (!%p5394_p5), %s336_s30, 2048, %s338_s14, [#allocation9], %s5281_s21, %s5281_s21, %s5282_s22  }
  0x1e   : > { %s5283_s1 = smov [#allocation11]   ;;  %s6077_s2 = sld [smem:[#allocation24_spill]] }
  0x1f   : > { %s369_s13 = sshll.u32 %s5283_s1, 4  ;;  %s5284_s23 = smov [#allocation7]   ;;  %s370_s13 = int_to_ptr.vmem [resolvable:$true] %s369_s13 }
  0x20   : > { %s326_s27 = sshll.u32 %s5284_s23, 4  ;;  %s6078_s5 = sld [smem:[#allocation26_spill]]  ;;  %s327_s27 = int_to_ptr.vmem [resolvable:$true] %s326_s27 }
  0x21   : > { %s367_s29 = sshll.u32 %s6076_s6, 4  ;;  %s6079_s7 = sld [smem:[#allocation28_spill]]  ;;  %s368_s29 = int_to_ptr.hbm [resolvable:$true] %s367_s29 }
  0x22   : > { %4679 = dma.hbm_to_vmem [thread:$0]  (!%p5394_p5), %s368_s29, 16, %s370_s13, [#allocation12]  }
  0x23   : > { %s5285_s3 = smov [#allocation10]   ;;  %s5286_s15 = smov [#allocation13]  }
  0x24   : > { %s324_s10 = sshll.u32 %s6077_s2, 4  ;;  %s354_s11 = sshll.u32 %s5285_s3, 4  ;;  %s325_s10 = int_to_ptr.hbm [resolvable:$true] %s324_s10  ;;  %s355_s11 = int_to_ptr.vmem [resolvable:$true] %s354_s11 }
  0x25   : > { %4670 = dma.hbm_to_vmem [thread:$0]  (!%p5394_p5), %s325_s10, 32, %s327_s27, [#allocation6]  }
  0x26   : > { %s352_s14 = sshll.u32 %s6078_s5, 4  ;;  %s380_s29 = sshll.u32 %s5286_s15, 4  ;;  %s353_s14 = int_to_ptr.hbm [resolvable:$true] %s352_s14  ;;  %s381_s29 = int_to_ptr.vmem [resolvable:$true] %s380_s29 }
  0x27   : > { %s378_s28 = sshll.u32 %s6079_s7, 4  ;;  %s395_s23 = sshll.u32 %s6059_s9, 4  ;;  %s379_s28 = int_to_ptr.hbm [resolvable:$true] %s378_s28  ;;  %s396_s23 = int_to_ptr.hbm [resolvable:$true] %s395_s23 }
  0x28   : > { %4676 = dma.hbm_to_vmem [thread:$0]  (!%p5394_p5), %s353_s14, 1024, %s355_s11, [#allocation9], %s5281_s21, %s5281_s21, %s5282_s22  }
  0x29   : > { %s6080_s27 = smov 128   ;;  %s5287_s21 = smov [#allocation14]  }
  0x2a   : > { %4682 = dma.hbm_to_vmem [thread:$0]  (!%p5394_p5), %s379_s28, 2048, %s381_s29, [#allocation12], %s6080_s27, %s6080_s27, %s5280_s16  }
  0x2b   : > { %s397_s22 = sshll.u32 %s5287_s21, 4  ;;  %s5288_s30 = smov 384   ;;  %s398_s22 = int_to_ptr.vmem [resolvable:$true] %s397_s22 }
  0x2c   : > { %s5289_s14 = smov 24   ;;  %s3426_s1 = sadd.s32 4294967294, %s5275_s20  }
  0x2d   : > { %4685 = dma.hbm_to_vmem [thread:$0]  (!%p5394_p5), %s396_s23, 12288, %s398_s22, [#allocation15], %s5288_s30, %s5288_s30, %s5289_s14  }
  0x2e   : > { %s5435_s26 = sadd.s32 1, %s5275_s20   ;;  %s38_s3 = sadd.s32 1, %s5271_s19 }
  0x2f   : > { %s35_s11 = ssub.s32 %s5275_s20, %s5435_s26  ;;  %p45_p6 = scmp.ne.s32.totalorder %s5271_s19, %s5267_s18 }
  0x30   : > { %p36_p7 = scmp.eq.s32.totalorder %s35_s11, 0  ;;  %p46_p8 = scmp.eq.s32.totalorder %s5275_s20, 0 }
  0x31   : > { %p51_p9 = scmp.ne.s32.totalorder %s5267_s18, %s5263_s17  ;;  %p285_p10 = scmp.eq.s32.totalorder %s5378_s24, 3 }
  0x32   : > { %s5447_s16 = scalar_select %p36_p7, %s5271_s19, %s38_s3  }
  0x33   : > { %p47_p11 = por %p46_p8, %p45_p6  ;;  %p5451_p12 = por %p52_p1, %p51_p9 }
  0x34   : > { %p5455_p13 = por %p285_p10, %p45_p6  ;;  %p291_p0 = scmp.eq.s32.totalorder %s3426_s1, 3 }
  0x35   : > { %p4701_p2 = scmp.lt.s32.totalorder %s5275_s20, 4  ;;  %s414_s15 = sand.u32 1, %s5271_s19  }
  0x36   : > { %p5461_p4 = por %p291_p0, %p51_p9  ;;  %s4628_s10 = smul.u32 384, %s414_s15 }
  0x37   : > { %p5465_p5 = pnand %p4701_p2, %p47_p11  ;;  %s4629_s23 = smul.u32 384, %s5275_s20 }
  0x38   : > { %s418_s30 = scalar_lea.vmem [#allocation2], %s4628_s10  ;;  %s415_s3 = scalar_lea.sflag [#allocation3], %s414_s15 }
  0x39   : > { %s424_s22 = scalar_lea.hbm %s6050_s0, %s4629_s23  ;;  %s427_s14 = sshll.u32 %s418_s30, 4  ;;  %s428_s14 = int_to_ptr.vmem [resolvable:$true] %s427_s14 }
  0x3a   : > { %s425_s1 = sshll.u32 %s424_s22, 4  ;;  %p5167_p7 = pneg %p5465_p5  ;;  %s426_s1 = int_to_ptr.hbm [resolvable:$true] %s425_s1 }
  0x3b   : > { %s5163_s11 = sshra.s32 %s426_s1, 4  ;;  %s5170_s7 = scalar_lea.hbm %s6050_s0, 1536  ;;  %s5164_s11 = int_to_ptr.hbm [resolvable:$true] %s5163_s11 }
  0x3c   : > { %s5165_s2 = scalar_lea.hbm %s5164_s11, 384  ;;  %p5171_p10 = scmp.lt.s32.totalorder %s5164_s11, %s6050_s0 }
  0x3d   : > { %p5166_p6 = scmp.ne.s32.totalorder %s5164_s11, %s5165_s2  ;;  %p5172_p11 = scmp.lt.s32.totalorder %s5170_s7, %s5165_s2 }
  0x3f   : > { %p5168_p8 = pnand %p5167_p7, %p5166_p6  ;;  %p5173_p0 = por %p5172_p11, %p5171_p10 }
  0x41   : > { %p5169_p9 = pneg %p5168_p8 }
  0x43   : > { %p5174_p2 = pnand %p5173_p0, %p5169_p9 }
  0x45   : > { %5177 = shalt.err (!%p5174_p2)
}
  0x46   : > { %s5290_s15 = smov 768   ;;  %s5291_s10 = smov 48  }
  0x47   : > { %4689 = dma.hbm_to_vmem [thread:$0]  (!%p5465_p5), %s426_s1, 6144, %s428_s14, %s415_s3, %s5290_s15, %s5290_s15, %s5291_s10  }
  0x48   : > { %439 = sbr.rel (%p5383_p3) target bundleno = 1209 (0x4b9), region = 64  ;;  %s5486_s5 = sand.u32 (!%p5383_p3), 1, %s5267_s18  }
  0x49   : > { %s4630_s6 = smul.u32 (!%p5383_p3), 384, %s5486_s5  ;;  %s442_s2 = scalar_lea.sflag (!%p5383_p3), [#allocation3], %s5486_s5 }
  0x4b   : > { %s5492_s7 = scalar_lea.vmem (!%p5383_p3), [#allocation2], %s4630_s6 }
  0x4d   : > { %5238 = dma.done.wait (%p5451_p12), %s442_s2, 6144  }
  0x4e   : > { %5240 = vsyncadd (%p5451_p12), %s442_s2, 4294961152 }
  0x4f   : > { %5242 = dma.done.wait (%p52_p1), [#allocation6], 12320  }
  0x50   : > { %5244 = vsyncadd (%p52_p1), [#allocation6], 4294954976 }
  0x51   : > { %5246 = dma.done.wait (%p52_p1), [#allocation9], 3072  }
  0x52   : > { %5248 = vsyncadd (%p52_p1), [#allocation9], 4294964224 }
  0x53   : > { %5250 = dma.done.wait (%p52_p1), [#allocation12], 2064  }
  0x54   : > { %5252 = vsyncadd (%p52_p1), [#allocation12], 4294965232 }
  0x55   : > { %5254 = dma.done.wait (%p52_p1), [#allocation15], 12288  }
  0x56   : > { %5256 = vsyncadd (%p52_p1), [#allocation15], 4294955008  ;;  %v3505_v0 = vld [vmem:[#allocation5 + $0x70] sm:$0xf]  ;;  %v4395_v1 = vld [vmem:[#allocation5 + $0x74] sm:$0xf0] }
  0x57   : > { %v3497_v2 = vld [vmem:[#allocation5 + $0x60] sm:$0xf]  ;;  %v3506_v3 = vor.u32 %v4395_v1, %v3505_v0  ;;  %v4393_v4 = vld [vmem:[#allocation5 + $0x64] sm:$0xf0]  ;;  %v3489_v6 = vld [vmem:[#allocation5 + $0x50] sm:$0xf] }
  0x58   : > { %v3498_v5 = vor.u32 %v4393_v4, %v3497_v2  ;;  %v4391_v7 = vld [vmem:[#allocation5 + $0x54] sm:$0xf0]  ;;  %v3633_v8 = vld [vmem:[#allocation5 + $0x170] sm:$0xf]  ;;  %v3625_v14 = vld [vmem:[#allocation5 + $0x160] sm:$0xf] }
  0x59   : > { %1176 = vmatpush.bf16.msra.mxu0 %v3506_v3  ;;  %4612 = vmatpush.bf16.msra.mxu1 %v3506_v3  ;;  %v4427_v9 = vld [vmem:[#allocation5 + $0x174] sm:$0xf0]  ;;  %v3697_v10 = vld [vmem:[#allocation5 + $0x1f0] sm:$0xf]  ;;  %v4425_v15 = vld [vmem:[#allocation5 + $0x164] sm:$0xf0]  ;;  %v3490_v17 = vor.u32 %v4391_v7, %v3489_v6 }
  0x5a   : > { %v3634_v11 = vor.u32 %v4427_v9, %v3633_v8  ;;  %v4443_v12 = vld [vmem:[#allocation5 + $0x1f4] sm:$0xf0]  ;;  %v3689_v16 = vld [vmem:[#allocation5 + $0x1e0] sm:$0xf]  ;;  %v4441_v18 = vld [vmem:[#allocation5 + $0x1e4] sm:$0xf0]  ;;  %v3626_v21 = vor.u32 %v4425_v15, %v3625_v14 }
  0x5b   : > { %v3698_v13 = vor.u32 %v4443_v12, %v3697_v10  ;;  %v3481_v19 = vld [vmem:[#allocation5 + $0x40] sm:$0xf]  ;;  %v4389_v20 = vld [vmem:[#allocation5 + $0x44] sm:$0xf0]  ;;  %v3690_v22 = vor.u32 %v4441_v18, %v3689_v16  ;;  %v3617_v23 = vld [vmem:[#allocation5 + $0x150] sm:$0xf] }
  0x5c   : > { %1234 = vmatpush.bf16.msra.mxu2 %v3634_v11  ;;  %v4423_v24 = vld [vmem:[#allocation5 + $0x154] sm:$0xf0]  ;;  %v3681_v25 = vld [vmem:[#allocation5 + $0x1d0] sm:$0xf]  ;;  %v3482_v27 = vor.u32 %v4389_v20, %v3481_v19  ;;  %v3609_v32 = vld [vmem:[#allocation5 + $0x140] sm:$0xf] }
  0x5d   : > { %1177 = vmatpush.bf16.msra.mxu0 %v3498_v5  ;;  %4613 = vmatpush.bf16.msra.mxu1 %v3498_v5  ;;  %v4439_v26 = vld [vmem:[#allocation5 + $0x1d4] sm:$0xf0]  ;;  %v3473_v28 = vld [vmem:[#allocation5 + $0x30] sm:$0xf]  ;;  %v3618_v30 = vor.u32 %v4423_v24, %v3617_v23  ;;  %v4421_v33 = vld [vmem:[#allocation5 + $0x144] sm:$0xf0] }
  0x5e   : > { %1263 = vmatpush.bf16.msra.mxu3 %v3698_v13  ;;  %v4387_v29 = vld [vmem:[#allocation5 + $0x34] sm:$0xf0]  ;;  %v3682_v31 = vor.u32 %v4439_v26, %v3681_v25  ;;  %v3673_v34 = vld [vmem:[#allocation5 + $0x1c0] sm:$0xf]  ;;  %v4437_v35 = vld [vmem:[#allocation5 + $0x1c4] sm:$0xf0]  ;;  %v3610_v39 = vor.u32 %v4421_v33, %v3609_v32 }
  0x5f   : > { %v3474_v36 = vor.u32 %v4387_v29, %v3473_v28  ;;  %v3465_v37 = vld [vmem:[#allocation5 + $0x20] sm:$0xf]  ;;  %v4385_v38 = vld [vmem:[#allocation5 + $0x24] sm:$0xf0]  ;;  %v3674_v40 = vor.u32 %v4437_v35, %v3673_v34  ;;  %v3601_v41 = vld [vmem:[#allocation5 + $0x130] sm:$0xf] }
  0x60   : > { %1235 = vmatpush.bf16.msra.mxu2 %v3626_v21  ;;  %v4419_v42 = vld [vmem:[#allocation5 + $0x134] sm:$0xf0]  ;;  %v3665_v43 = vld [vmem:[#allocation5 + $0x1b0] sm:$0xf]  ;;  %v3466_v45 = vor.u32 %v4385_v38, %v3465_v37  ;;  %v3593_v50 = vld [vmem:[#allocation5 + $0x120] sm:$0xf] }
  0x61   : > { %1178 = vmatpush.bf16.msra.mxu0 %v3490_v17  ;;  %4614 = vmatpush.bf16.msra.mxu1 %v3490_v17  ;;  %v4435_v44 = vld [vmem:[#allocation5 + $0x1b4] sm:$0xf0]  ;;  %v3457_v46 = vld [vmem:[#allocation5 + $0x10] sm:$0xf]  ;;  %v3602_v48 = vor.u32 %v4419_v42, %v3601_v41  ;;  %v4417_v51 = vld [vmem:[#allocation5 + $0x124] sm:$0xf0] }
  0x62   : > { %1264 = vmatpush.bf16.msra.mxu3 %v3690_v22  ;;  %v4383_v47 = vld [vmem:[#allocation5 + $0x14] sm:$0xf0]  ;;  %v3666_v49 = vor.u32 %v4435_v44, %v3665_v43  ;;  %v3657_v52 = vld [vmem:[#allocation5 + $0x1a0] sm:$0xf]  ;;  %v4433_v53 = vld [vmem:[#allocation5 + $0x1a4] sm:$0xf0]  ;;  %v3594_v59 = vor.u32 %v4417_v51, %v3593_v50 }
  0x63   : > { %v3458_v54 = vor.u32 %v4383_v47, %v3457_v46  ;;  %v3449_v55 = vld [vmem:[#allocation5] sm:$0xf]  ;;  %v4381_v56 = vld [vmem:[#allocation5 + $0x4] sm:$0xf0]  ;;  %v3569_v57 = vld [vmem:[#allocation5 + $0xf0] sm:$0xf]  ;;  %v3658_v60 = vor.u32 %v4433_v53, %v3657_v52 }
  0x64   : > { %1236 = vmatpush.bf16.msra.mxu2 %v3618_v30  ;;  %v4411_v58 = vld [vmem:[#allocation5 + $0xf4] sm:$0xf0]  ;;  %v522_v61 = vld [vmem:[%s5492_s7] sm:$0xff]  ;;  %v3761_v62 = vld [vmem:[#allocation5 + $0x270] sm:$0xf]  ;;  %v3450_v4 = vor.u32 %v4381_v56, %v3449_v55  ;;  %s6085_s14 = sld [smem:[#allocation29_spill]] }
  0x65   : > { %1179 = vmatpush.bf16.msra.mxu0 %v3482_v27  ;;  %4615 = vmatpush.bf16.msra.mxu1 %v3482_v27  ;;  %v4459_v63 = vld [vmem:[#allocation5 + $0x274] sm:$0xf0]  ;;  %v3585_v0 = vld [vmem:[#allocation5 + $0x110] sm:$0xf]  ;;  %v546_v6 = vld [vmem:[%s5492_s7 + $0xc0] sm:$0xff]  ;;  %v3570_v8 = vor.u32 %v4411_v58, %v3569_v57  ;;  %s5905_s1 = scalar_lea.vmem [#allocation16], %s4630_s6 }
  0x66   : > { %1265 = vmatpush.bf16.msra.mxu3 %v3682_v31  ;;  %v4415_v1 = vld [vmem:[#allocation5 + $0x114] sm:$0xf0]  ;;  %v3649_v2 = vld [vmem:[#allocation5 + $0x190] sm:$0xf]  ;;  %v3762_v9 = vor.u32 %v4459_v63, %v3761_v62  ;;  %v3561_v10 = vld [vmem:[#allocation5 + $0xe0] sm:$0xf] }
  0x67   : > { %v4431_v3 = vld [vmem:[#allocation5 + $0x194] sm:$0xf0]  ;;  %v528_v5 = vld [vmem:[%s5492_s7 + $0x30] sm:$0xff]  ;;  %v4409_v11 = vld [vmem:[#allocation5 + $0xe4] sm:$0xf0]  ;;  %v3586_v14 = vor.u32 %v4415_v1, %v3585_v0  ;;  %s4631_s3 = smul.u32 384, %s5378_s24 }
  0x68   : > { %1237 = vmatpush.bf16.msra.mxu2 %v3610_v39  ;;  %v552_v7 = vld [vmem:[%s5492_s7 + $0xf0] sm:$0xff]  ;;  %v3753_v12 = vld [vmem:[#allocation5 + $0x260] sm:$0xf]  ;;  %v4457_v13 = vld [vmem:[#allocation5 + $0x264] sm:$0xf0]  ;;  %v3650_v15 = vor.u32 %v4431_v3, %v3649_v2  ;;  %v5518_v18 = vpack.c.bf16 %v528_v5, %v522_v61  ;;  %v3562_v27 = vor.u32 %v4409_v11, %v3561_v10  ;;  %s6086_s23 = sld [smem:[#allocation30_spill]] }
  0x69   : > { %1180 = vmatpush.bf16.msra.mxu0 %v3474_v36  ;;  %4616 = vmatpush.bf16.msra.mxu1 %v3474_v36  ;;  %v3577_v16 = vld [vmem:[#allocation5 + $0x100] sm:$0xf]  ;;  %v4413_v17 = vld [vmem:[#allocation5 + $0x104] sm:$0xf0]  ;;  %v5520_v19 = vpack.c.bf16 %v552_v7, %v546_v6  ;;  %v4394_v22 = vld [vmem:[#allocation5 + $0x74] sm:$0xf]  ;;  %v3754_v28 = vor.u32 %v4457_v13, %v3753_v12 }
  0x6a   : > { %1266 = vmatpush.bf16.msra.mxu3 %v3674_v40  ;;  %v3641_v20 = vld [vmem:[#allocation5 + $0x180] sm:$0xf]  ;;  %v4429_v21 = vld [vmem:[#allocation5 + $0x184] sm:$0xf0]  ;;  %v3553_v23 = vld [vmem:[#allocation5 + $0xd0] sm:$0xf]  ;;  %v3578_v32 = vor.u32 %v4413_v17, %v3577_v16 }
  0x6b   : > { %v3507_v24 = vld [vmem:[#allocation5 + $0x78] sm:$0xf0]  ;;  %v4410_v25 = vld [vmem:[#allocation5 + $0xf4] sm:$0xf]  ;;  %v4407_v29 = vld [vmem:[#allocation5 + $0xd4] sm:$0xf0]  ;;  %v3642_v33 = vor.u32 %v4429_v21, %v3641_v20 }
  0x6c   : > { %1238 = vmatpush.bf16.msra.mxu2 %v3602_v48  ;;  %v3571_v26 = vld [vmem:[#allocation5 + $0xf8] sm:$0xf0]  ;;  %v3745_v30 = vld [vmem:[#allocation5 + $0x250] sm:$0xf]  ;;  %v4455_v31 = vld [vmem:[#allocation5 + $0x254] sm:$0xf0]  ;;  %v3510_v38 = vor.u32 %v4394_v22, %v3507_v24  ;;  %v3554_v42 = vor.u32 %v4407_v29, %v3553_v23 }
  0x6d   : > { %1181 = vmatpush.bf16.msra.mxu0 %v3466_v45  ;;  %4617 = vmatpush.bf16.msra.mxu1 %v3466_v45  ;;  %v524_v34 = vld [vmem:[%s5492_s7 + $0x10] sm:$0xff]  ;;  %v530_v35 = vld [vmem:[%s5492_s7 + $0x40] sm:$0xff]  ;;  %v525_v36 = vld [vmem:[%s5492_s7 + $0x18] sm:$0xff]  ;;  %v3574_v39 = vor.u32 %v4410_v25, %v3571_v26  ;;  %v3746_v43 = vor.u32 %v4455_v31, %v3745_v30  ;;  %s3283_s10 = sshll.u32 %s5905_s1, 4  ;;  %s3270_s2 = scalar_lea.sflag [#allocation4], %s5486_s5  ;;  %s3284_s10 = int_to_ptr.vmem [resolvable:$true] %s3283_s10 }
  0x6e   : > { %1267 = vmatpush.bf16.msra.mxu3 %v3666_v49  ;;  %v531_v37 = vld [vmem:[%s5492_s7 + $0x48] sm:$0xff]  ;;  %v4392_v40 = vld [vmem:[#allocation5 + $0x64] sm:$0xf]  ;;  %v3545_v44 = vld [vmem:[#allocation5 + $0xc0] sm:$0xf]  ;;  %v5528_v49 = vpack.c.bf16 %v530_v35, %v524_v34  ;;  %s3282_s15 = scalar_lea.hbm %s6086_s23, %s4631_s3  ;;  %s5213_s13 = scalar_lea.hbm %s6086_s23, 1536 }
  0x6f   : > { %v3499_v41 = vld [vmem:[#allocation5 + $0x68] sm:$0xf0]  ;;  %v4405_v45 = vld [vmem:[#allocation5 + $0xc4] sm:$0xf0]  ;;  %v4408_v46 = vld [vmem:[#allocation5 + $0xe4] sm:$0xf]  ;;  %v5530_v50 = vpack.c.bf16 %v531_v37, %v525_v36 }
  0x70   : > { %1239 = vmatpush.bf16.msra.mxu2 %v3594_v59  ;;  %v3737_v47 = vld [vmem:[#allocation5 + $0x240] sm:$0xf]  ;;  %v4453_v48 = vld [vmem:[#allocation5 + $0x244] sm:$0xf0]  ;;  %v3563_v51 = vld [vmem:[#allocation5 + $0xe8] sm:$0xf0]  ;;  %v3502_v52 = vor.u32 %v4392_v40, %v3499_v41  ;;  %v3546_v58 = vor.u32 %v4405_v45, %v3545_v44 }
  0x71   : > { %1182 = vmatpush.bf16.msra.mxu0 %v3458_v54  ;;  %4618 = vmatpush.bf16.msra.mxu1 %v3458_v54  ;;  %v3566_v53 = vor.u32 %v4408_v46, %v3563_v51  ;;  %v4390_v54 = vld [vmem:[#allocation5 + $0x54] sm:$0xf]  ;;  %v3491_v55 = vld [vmem:[#allocation5 + $0x58] sm:$0xf0]  ;;  %v3738_v59 = vor.u32 %v4453_v48, %v3737_v47  ;;  %v4403_v61 = vld [vmem:[#allocation5 + $0xb4] sm:$0xf0] }
  0x72   : > { %1268 = vmatpush.bf16.msra.mxu3 %v3658_v60  ;;  %v4406_v56 = vld [vmem:[#allocation5 + $0xd4] sm:$0xf]  ;;  %v3555_v57 = vld [vmem:[#allocation5 + $0xd8] sm:$0xf0]  ;;  %v3537_v60 = vld [vmem:[#allocation5 + $0xb0] sm:$0xf]  ;;  %v3494_v1 = vor.u32 %v4390_v54, %v3491_v55 }
  0x73   : > { %v3729_v62 = vld [vmem:[#allocation5 + $0x230] sm:$0xf]  ;;  %v4451_v63 = vld [vmem:[#allocation5 + $0x234] sm:$0xf0]  ;;  %v534_v0 = vld [vmem:[%s5492_s7 + $0x60] sm:$0xff]  ;;  %v3558_v2 = vor.u32 %v4406_v56, %v3555_v57  ;;  %v3538_v6 = vor.u32 %v4403_v61, %v3537_v60  ;;  %s3285_s6 = sshll.u32 %s3282_s15, 4  ;;  %s3286_s6 = int_to_ptr.hbm [resolvable:$true] %s3285_s6 }
  0x74   : > { %1240 = vmatpush.bf16.msra.mxu2 %v3586_v14  ;;  %v540_v3 = vld [vmem:[%s5492_s7 + $0x90] sm:$0xff]  ;;  %v3730_v7 = vor.u32 %v4451_v63, %v3729_v62  ;;  %v3721_v10 = vld [vmem:[#allocation5 + $0x220] sm:$0xf]  ;;  %v4449_v11 = vld [vmem:[#allocation5 + $0x224] sm:$0xf0] }
  0x75   : > { %1183 = vmatpush.bf16.msra.mxu0 %v3450_v4  ;;  %4619 = vmatpush.bf16.msra.mxu1 %v3450_v4  ;;  %v558_v4 = vld [vmem:[%s5492_s7 + $0x120] sm:$0xff]  ;;  %v564_v5 = vld [vmem:[%s5492_s7 + $0x150] sm:$0xff]  ;;  %v5538_v12 = vpack.c.bf16 %v540_v3, %v534_v0  ;;  %v4399_v17 = vld [vmem:[#allocation5 + $0x94] sm:$0xf0] }
  0x76   : > { %1269 = vmatpush.bf16.msra.mxu3 %v3650_v15  ;;  %v5540_v13 = vpack.c.bf16 %v564_v5, %v558_v4  ;;  %v3722_v15 = vor.u32 %v4449_v11, %v3721_v10  ;;  %v3521_v16 = vld [vmem:[#allocation5 + $0x90] sm:$0xf]  ;;  %v4447_v21 = vld [vmem:[#allocation5 + $0x214] sm:$0xf0]  ;;  %v542_v23 = vld [vmem:[%s5492_s7 + $0xa0] sm:$0xff] }
  0x77   : > { %v3713_v20 = vld [vmem:[#allocation5 + $0x210] sm:$0xf]  ;;  %v537_v24 = vld [vmem:[%s5492_s7 + $0x78] sm:$0xff]  ;;  %v543_v25 = vld [vmem:[%s5492_s7 + $0xa8] sm:$0xff]  ;;  %v3522_v29 = vor.u32 %v4399_v17, %v3521_v16 }
  0x78   : > { %1184 = vmatmul.bf16.vlgmr.msra.gmra.mxu0 %v5518_v18  ;;  %1194 = vmatmul.bf16.vlgmr.msra.gmra.mxu1 %v5520_v19  ;;  %v536_v22 = vld [vmem:[%s5492_s7 + $0x70] sm:$0xff]  ;;  %v3513_v26 = vld [vmem:[#allocation5 + $0x80] sm:$0xf]  ;;  %v3714_v30 = vor.u32 %v4447_v21, %v3713_v20  ;;  %v4397_v31 = vld [vmem:[#allocation5 + $0x84] sm:$0xf0] }
  0x79   : > { %1205 = vmatpush.bf16.msrb.mxu1 %v3570_v8  ;;  %1292 = vmatpush.bf16.msrb.mxu0 %v3762_v9  ;;  %v3529_v8 = vld [vmem:[#allocation5 + $0xa0] sm:$0xf]  ;;  %v4401_v9 = vld [vmem:[#allocation5 + $0xa4] sm:$0xf0]  ;;  %v4404_v34 = vld [vmem:[#allocation5 + $0xc4] sm:$0xf]  ;;  %v5548_v37 = vpack.c.bf16 %v542_v23, %v536_v22  ;;  %v3514_v47 = vor.u32 %v4397_v31, %v3513_v26 }
  0x7a   : > { %1241 = vmatpush.bf16.msra.mxu2 %v3578_v32  ;;  %1270 = vmatpush.bf16.msra.mxu3 %v3642_v33  ;;  %v3530_v14 = vor.u32 %v4401_v9, %v3529_v8  ;;  %v3705_v32 = vld [vmem:[#allocation5 + $0x200] sm:$0xf]  ;;  %v4445_v35 = vld [vmem:[#allocation5 + $0x204] sm:$0xf0]  ;;  %v3825_v36 = vld [vmem:[#allocation5 + $0x2f0] sm:$0xf] }
  0x7b   : > { %v4475_v40 = vld [vmem:[#allocation5 + $0x2f4] sm:$0xf0]  ;;  %v4402_v45 = vld [vmem:[#allocation5 + $0xb4] sm:$0xf]  ;;  %v3539_v46 = vld [vmem:[#allocation5 + $0xb8] sm:$0xf0]  ;;  %v3706_v48 = vor.u32 %v4445_v35, %v3705_v32 }
  0x7c   : > { %v3826_v51 = vor.u32 %v4475_v40, %v3825_v36  ;;  %v4473_v54 = vld [vmem:[#allocation5 + $0x2e4] sm:$0xf0]  ;;  %v3542_v55 = vor.u32 %v4402_v45, %v3539_v46  ;;  %v529_v56 = vld [vmem:[%s5492_s7 + $0x38] sm:$0xff]  ;;  %v526_v57 = vld [vmem:[%s5492_s7 + $0x20] sm:$0xff] }
  0x7d   : > { %1206 = vmatpush.bf16.msrb.mxu1 %v3562_v27  ;;  %1293 = vmatpush.bf16.msrb.mxu0 %v3754_v28  ;;  %v4388_v27 = vld [vmem:[#allocation5 + $0x44] sm:$0xf]  ;;  %v3483_v28 = vld [vmem:[#allocation5 + $0x48] sm:$0xf0]  ;;  %v3809_v62 = vld [vmem:[#allocation5 + $0x2d0] sm:$0xf] }
  0x7e   : > { %1350 = vmatpush.bf16.msrb.mxu2 %v3510_v38  ;;  %1379 = vmatpush.bf16.msrb.mxu3 %v3574_v39  ;;  %v3486_v33 = vor.u32 %v4388_v27, %v3483_v28  ;;  %v5550_v38 = vpack.c.bf16 %v543_v25, %v537_v24  ;;  %v3547_v39 = vld [vmem:[#allocation5 + $0xc8] sm:$0xf0]  ;;  %v4471_v63 = vld [vmem:[#allocation5 + $0x2d4] sm:$0xf0]  ;;  %v4426_v0 = vld [vmem:[#allocation5 + $0x174] sm:$0xf] }
  0x7f   : > { %1242 = vmatmul.bf16.vlgmr.msra.gmra.mxu2 %v5528_v49  ;;  %1271 = vmatmul.bf16.vlgmr.msra.gmra.mxu3 %v5530_v50  ;;  %v3550_v41 = vor.u32 %v4404_v34, %v3547_v39  ;;  %v548_v3 = vld [vmem:[%s5492_s7 + $0xd0] sm:$0xff]  ;;  %v554_v4 = vld [vmem:[%s5492_s7 + $0x100] sm:$0xff]  ;;  %v4469_v9 = vld [vmem:[#allocation5 + $0x2c4] sm:$0xf0] }
  0x80   : > { %v3801_v8 = vld [vmem:[#allocation5 + $0x2c0] sm:$0xf]  ;;  %v4384_v10 = vld [vmem:[#allocation5 + $0x24] sm:$0xf]  ;;  %v3467_v11 = vld [vmem:[#allocation5 + $0x28] sm:$0xf0]  ;;  %v5568_v17 = vpack.c.bf16 %v554_v4, %v548_v3 }
  0x81   : > { %1207 = vmatpush.bf16.msrb.mxu1 %v3554_v42  ;;  %1294 = vmatpush.bf16.msrb.mxu0 %v3746_v43  ;;  %v4386_v42 = vld [vmem:[#allocation5 + $0x34] sm:$0xf]  ;;  %v3475_v43 = vld [vmem:[#allocation5 + $0x38] sm:$0xf0]  ;;  %v3627_v16 = vld [vmem:[#allocation5 + $0x168] sm:$0xf0]  ;;  %v3802_v24 = vor.u32 %v4469_v9, %v3801_v8 }
  0x82   : > { %1351 = vmatpush.bf16.msrb.mxu2 %v3502_v52  ;;  %1380 = vmatpush.bf16.msrb.mxu3 %v3566_v53  ;;  %v3478_v44 = vor.u32 %v4386_v42, %v3475_v43  ;;  %v523_v52 = vld [vmem:[%s5492_s7 + $0x8] sm:$0xff]  ;;  %v3817_v53 = vld [vmem:[#allocation5 + $0x2e0] sm:$0xf]  ;;  %v4400_v22 = vld [vmem:[#allocation5 + $0xa4] sm:$0xf] }
  0x83   : > { %v5558_v60 = vpack.c.bf16 %v529_v56, %v523_v52  ;;  %v3531_v23 = vld [vmem:[#allocation5 + $0xa8] sm:$0xf0]  ;;  %v3793_v25 = vld [vmem:[#allocation5 + $0x2b0] sm:$0xf]  ;;  %v4467_v26 = vld [vmem:[#allocation5 + $0x2b4] sm:$0xf0] }
  0x84   : > { %v3534_v27 = vor.u32 %v4400_v22, %v3531_v23  ;;  %v4422_v28 = vld [vmem:[#allocation5 + $0x154] sm:$0xf]  ;;  %v3459_v31 = vld [vmem:[#allocation5 + $0x18] sm:$0xf0]  ;;  %v4420_v34 = vld [vmem:[#allocation5 + $0x144] sm:$0xf] }
  0x85   : > { %1208 = vmatpush.bf16.msrb.mxu1 %v3546_v58  ;;  %1295 = vmatpush.bf16.msrb.mxu0 %v3738_v59  ;;  %v532_v58 = vld [vmem:[%s5492_s7 + $0x50] sm:$0xff]  ;;  %v3818_v59 = vor.u32 %v4473_v54, %v3817_v53  ;;  %v3611_v35 = vld [vmem:[#allocation5 + $0x148] sm:$0xf0]  ;;  %v3523_v39 = vld [vmem:[#allocation5 + $0x98] sm:$0xf0] }
  0x86   : > { %1352 = vmatpush.bf16.msrb.mxu2 %v3494_v1  ;;  %1381 = vmatpush.bf16.msrb.mxu3 %v3558_v2  ;;  %v5560_v61 = vpack.c.bf16 %v532_v58, %v526_v57  ;;  %v3635_v1 = vld [vmem:[#allocation5 + $0x178] sm:$0xf0]  ;;  %v3810_v2 = vor.u32 %v4471_v63, %v3809_v62  ;;  %v4398_v36 = vld [vmem:[#allocation5 + $0x94] sm:$0xf]  ;;  %v535_v40 = vld [vmem:[%s5492_s7 + $0x68] sm:$0xff]  ;;  %v3614_v46 = vor.u32 %v4420_v34, %v3611_v35 }
  0x87   : > { %v3638_v5 = vor.u32 %v4426_v0, %v3635_v1  ;;  %v3526_v42 = vor.u32 %v4398_v36, %v3523_v39  ;;  %v541_v43 = vld [vmem:[%s5492_s7 + $0x98] sm:$0xff]  ;;  %v544_v45 = vld [vmem:[%s5492_s7 + $0xb0] sm:$0xff]  ;;  %v4380_v56 = vld [vmem:[#allocation5 + $0x4] sm:$0xf] }
  0x88   : > { %1189 = vmatmul.bf16.gmra.mxu0 %v5538_v12  ;;  %1199 = vmatmul.bf16.gmra.mxu1 %v5540_v13  ;;  %v560_v54 = vld [vmem:[%s5492_s7 + $0x130] sm:$0xff]  ;;  %v3451_v57 = vld [vmem:[#allocation5 + $0x8] sm:$0xf0]  ;;  %v3603_v0 = vld [vmem:[#allocation5 + $0x138] sm:$0xf0] }
  0x89   : > { %1209 = vmatpush.bf16.msrb.mxu1 %v3538_v6  ;;  %1296 = vmatpush.bf16.msrb.mxu0 %v3730_v7  ;;  %v549_v6 = vld [vmem:[%s5492_s7 + $0xd8] sm:$0xff]  ;;  %v555_v7 = vld [vmem:[%s5492_s7 + $0x108] sm:$0xff]  ;;  %v4418_v58 = vld [vmem:[#allocation5 + $0x134] sm:$0xf]  ;;  %v3454_v63 = vor.u32 %v4380_v56, %v3451_v57 }
  0x8a   : > { %1353 = vmatpush.bf16.msrb.mxu2 %v3486_v33  ;;  %1382 = vmatpush.bf16.msrb.mxu3 %v3550_v41  ;;  %v5570_v20 = vpack.c.bf16 %v555_v7, %v549_v6  ;;  %v3794_v41 = vor.u32 %v4467_v26, %v3793_v25  ;;  %v567_v62 = vld [vmem:[%s5492_s7 + $0x168] sm:$0xff]  ;;  %v3777_v1 = vld [vmem:[#allocation5 + $0x290] sm:$0xf]  ;;  %v3606_v3 = vor.u32 %v4418_v58, %v3603_v0  ;;  %v4396_v4 = vld [vmem:[#allocation5 + $0x84] sm:$0xf] }
  0x8b   : > { %v3515_v6 = vld [vmem:[#allocation5 + $0x88] sm:$0xf0]  ;;  %v4416_v7 = vld [vmem:[#allocation5 + $0x124] sm:$0xf]  ;;  %v3587_v22 = vld [vmem:[#allocation5 + $0x118] sm:$0xf0] }
  0x8c   : > { %v3595_v8 = vld [vmem:[#allocation5 + $0x128] sm:$0xf0]  ;;  %v3518_v9 = vor.u32 %v4396_v4, %v3515_v6  ;;  %v4458_v23 = vld [vmem:[#allocation5 + $0x274] sm:$0xf]  ;;  %v553_v34 = vld [vmem:[%s5492_s7 + $0xf8] sm:$0xff] }
  0x8d   : > { %1210 = vmatpush.bf16.msrb.mxu1 %v3530_v14  ;;  %1297 = vmatpush.bf16.msrb.mxu0 %v3722_v15  ;;  %v3470_v14 = vor.u32 %v4384_v10, %v3467_v11  ;;  %v4424_v15 = vld [vmem:[#allocation5 + $0x164] sm:$0xf]  ;;  %v3598_v10 = vor.u32 %v4416_v7, %v3595_v8  ;;  %v3769_v11 = vld [vmem:[#allocation5 + $0x280] sm:$0xf]  ;;  %v4474_v26 = vld [vmem:[#allocation5 + $0x2f4] sm:$0xf] }
  0x8e   : > { %1354 = vmatpush.bf16.msrb.mxu2 %v3478_v44  ;;  %1383 = vmatpush.bf16.msrb.mxu3 %v3542_v55  ;;  %v3630_v21 = vor.u32 %v4424_v15, %v3627_v16  ;;  %v538_v44 = vld [vmem:[%s5492_s7 + $0x80] sm:$0xff]  ;;  %v4414_v15 = vld [vmem:[#allocation5 + $0x114] sm:$0xf]  ;;  %v3691_v56 = vld [vmem:[#allocation5 + $0x1e8] sm:$0xf0] }
  0x8f   : > { %1247 = vmatmul.bf16.gmra.mxu2 %v5548_v37  ;;  %1276 = vmatmul.bf16.gmra.mxu3 %v5550_v38  ;;  %v5580_v52 = vpack.c.bf16 %v544_v45, %v538_v44  ;;  %v566_v55 = vld [vmem:[%s5492_s7 + $0x160] sm:$0xff]  ;;  %v556_v36 = vld [vmem:[%s5492_s7 + $0x110] sm:$0xff]  ;;  %v3747_v58 = vld [vmem:[#allocation5 + $0x258] sm:$0xf0] }
  0x90   : > { %v5588_v16 = vpack.c.bf16 %v566_v55, %v560_v54  ;;  %v550_v35 = vld [vmem:[%s5492_s7 + $0xe0] sm:$0xff]  ;;  %v4454_v57 = vld [vmem:[#allocation5 + $0x254] sm:$0xf] }
  0x91   : > { %1211 = vmatpush.bf16.msrb.mxu1 %v3522_v29  ;;  %1298 = vmatpush.bf16.msrb.mxu0 %v3714_v30  ;;  %v3619_v29 = vld [vmem:[#allocation5 + $0x158] sm:$0xf0]  ;;  %v4382_v30 = vld [vmem:[#allocation5 + $0x14] sm:$0xf]  ;;  %v4456_v44 = vld [vmem:[#allocation5 + $0x264] sm:$0xf]  ;;  %v3750_v0 = vor.u32 %v4454_v57, %v3747_v58 }
  0x92   : > { %1355 = vmatpush.bf16.msrb.mxu2 %v3470_v14  ;;  %1384 = vmatpush.bf16.msrb.mxu3 %v3534_v27  ;;  %v3622_v32 = vor.u32 %v4422_v28, %v3619_v29  ;;  %v3462_v33 = vor.u32 %v4382_v30, %v3459_v31  ;;  %v4461_v14 = vld [vmem:[#allocation5 + $0x284] sm:$0xf0]  ;;  %v3827_v28 = vld [vmem:[#allocation5 + $0x2f8] sm:$0xf0]  ;;  %v3590_v29 = vor.u32 %v4414_v15, %v3587_v22  ;;  %v4412_v31 = vld [vmem:[#allocation5 + $0x104] sm:$0xf] }
  0x93   : > { %v3770_v27 = vor.u32 %v4461_v14, %v3769_v11  ;;  %v3830_v30 = vor.u32 %v4474_v26, %v3827_v28  ;;  %v4440_v55 = vld [vmem:[#allocation5 + $0x1e4] sm:$0xf]  ;;  %v4438_v8 = vld [vmem:[#allocation5 + $0x1d4] sm:$0xf]  ;;  %v3803_v14 = vld [vmem:[#allocation5 + $0x2c8] sm:$0xf0] }
  0x94   : > { %v562_v4 = vld [vmem:[%s5492_s7 + $0x140] sm:$0xff]  ;;  %v3731_v26 = vld [vmem:[#allocation5 + $0x238] sm:$0xf0]  ;;  %v4462_v58 = vld [vmem:[#allocation5 + $0x294] sm:$0xf] }
  0x95   : > { %1212 = vmatpush.bf16.msrb.mxu1 %v3514_v47  ;;  %1299 = vmatpush.bf16.msrb.mxu0 %v3706_v48  ;;  %v3785_v47 = vld [vmem:[#allocation5 + $0x2a0] sm:$0xf]  ;;  %v4465_v48 = vld [vmem:[#allocation5 + $0x2a4] sm:$0xf0]  ;;  %v4468_v11 = vld [vmem:[#allocation5 + $0x2c4] sm:$0xf] }
  0x96   : > { %1356 = vmatpush.bf16.msrb.mxu2 %v3462_v33  ;;  %1385 = vmatpush.bf16.msrb.mxu3 %v3526_v42  ;;  %v3786_v53 = vor.u32 %v4465_v48, %v3785_v47  ;;  %v547_v33 = vld [vmem:[%s5492_s7 + $0xc8] sm:$0xff]  ;;  %v4442_v42 = vld [vmem:[#allocation5 + $0x1f4] sm:$0xf]  ;;  %v4472_v47 = vld [vmem:[#allocation5 + $0x2e4] sm:$0xf]  ;;  %v3806_v22 = vor.u32 %v4468_v11, %v3803_v14 }
  0x97   : > { %v3819_v48 = vld [vmem:[#allocation5 + $0x2e8] sm:$0xf0] }
  0x98   : > { %1213 = vmatmul.bf16.vlgmr.msrb.gmra.mxu1 %v5558_v60  ;;  %1300 = vmatmul.bf16.vlgmr.msrb.gmra.mxu0 %v5560_v61  ;;  %v3822_v54 = vor.u32 %v4472_v47, %v3819_v48  ;;  %v4446_v47 = vld [vmem:[#allocation5 + $0x214] sm:$0xf]  ;;  %v3715_v48 = vld [vmem:[#allocation5 + $0x218] sm:$0xf0] }
  0x99   : > { %1321 = vmatpush.bf16.msra.mxu1 %v3826_v51  ;;  %1408 = vmatpush.bf16.msra.mxu0 %v3638_v5  ;;  %v5578_v51 = vpack.c.bf16 %v541_v43, %v535_v40  ;;  %v5598_v40 = vpack.c.bf16 %v553_v34, %v547_v33  ;;  %v3699_v43 = vld [vmem:[#allocation5 + $0x1f8] sm:$0xf0] }
  0x9a   : > { %1357 = vmatpush.bf16.msrb.mxu2 %v3454_v63  ;;  %1386 = vmatpush.bf16.msrb.mxu3 %v3518_v9  ;;  %v3702_v45 = vor.u32 %v4442_v42, %v3699_v43  ;;  %v3694_v63 = vor.u32 %v4440_v55, %v3691_v56  ;;  %v3683_v9 = vld [vmem:[#allocation5 + $0x1d8] sm:$0xf0]  ;;  %v4464_v43 = vld [vmem:[#allocation5 + $0x2a4] sm:$0xf]  ;;  %v539_v55 = vld [vmem:[%s5492_s7 + $0x88] sm:$0xff] }
  0x9b   : > { %v3795_v33 = vld [vmem:[#allocation5 + $0x2b8] sm:$0xf0] }
  0x9c   : > { %v545_v56 = vld [vmem:[%s5492_s7 + $0xb8] sm:$0xff] }
  0x9d   : > { %1322 = vmatpush.bf16.msra.mxu1 %v3818_v59  ;;  %1409 = vmatpush.bf16.msra.mxu0 %v3630_v21  ;;  %v561_v59 = vld [vmem:[%s5492_s7 + $0x138] sm:$0xff]  ;;  %v581_v57 = vpack.c.bf16 %v545_v56, %v539_v55  ;;  %v4480_v56 = vld [vmem:[#allocation8 + $0x20] sm:$0xff] }
  0x9e   : > { %v5590_v21 = vpack.c.bf16 %v567_v62, %v561_v59  ;;  %1495 = vmatpush.bf16.msra.mxu3 %v3830_v30  ;;  %v4470_v59 = vld [vmem:[#allocation5 + $0x2d4] sm:$0xf]  ;;  %v3811_v62 = vld [vmem:[#allocation5 + $0x2d8] sm:$0xf0] }
  0x9f   : > { %1252 = vmatmul.bf16.gmra.mxu2 %v5568_v17  ;;  %1281 = vmatmul.bf16.gmra.mxu3 %v5570_v20  ;;  %v533_v30 = vld [vmem:[%s5492_s7 + $0x58] sm:$0xff] }
  0xa1   : > { %1323 = vmatpush.bf16.msra.mxu1 %v3810_v2  ;;  %1410 = vmatpush.bf16.msra.mxu0 %v3622_v32  ;;  %v4463_v2 = vld [vmem:[#allocation5 + $0x294] sm:$0xf0]  ;;  %v3579_v32 = vld [vmem:[#allocation5 + $0x108] sm:$0xf0] }
  0xa2   : > { %v3778_v5 = vor.u32 %v4463_v2, %v3777_v1  ;;  %v3582_v39 = vor.u32 %v4412_v31, %v3579_v32  ;;  %1496 = vmatpush.bf16.msra.mxu3 %v3822_v54  ;;  %v3814_v1 = vor.u32 %v4470_v59, %v3811_v62  ;;  %v559_v2 = vld [vmem:[%s5492_s7 + $0x128] sm:$0xff]  ;;  %v4466_v32 = vld [vmem:[#allocation5 + $0x2b4] sm:$0xf]  ;;  %v3718_v54 = vor.u32 %v4446_v47, %v3715_v48  ;;  %v3779_v59 = vld [vmem:[#allocation5 + $0x298] sm:$0xf0] }
  0xa3   : > { %v3798_v34 = vor.u32 %v4466_v32, %v3795_v33  ;;  %v3782_v62 = vor.u32 %v4462_v58, %v3779_v59  ;;  %v4479_v59 = vld [vmem:[#allocation8 + $0x18] sm:$0xff] }
  0xa5   : > { %1324 = vmatpush.bf16.msra.mxu1 %v3802_v24  ;;  %1411 = vmatpush.bf16.msra.mxu0 %v3614_v46  ;;  %v3763_v24 = vld [vmem:[#allocation5 + $0x278] sm:$0xf0]  ;;  %v3755_v46 = vld [vmem:[#allocation5 + $0x268] sm:$0xf0] }
  0xa6   : > { %v3766_v25 = vor.u32 %v4458_v23, %v3763_v24  ;;  %1497 = vmatpush.bf16.msra.mxu3 %v3814_v1  ;;  %v4436_v23 = vld [vmem:[#allocation5 + $0x1c4] sm:$0xf]  ;;  %v3675_v24 = vld [vmem:[#allocation5 + $0x1c8] sm:$0xf0]  ;;  %v3651_v1 = vld [vmem:[#allocation5 + $0x198] sm:$0xf0] }
  0xa8   : > { %1218 = vmatmul.bf16.gmra.mxu1 %v5578_v51  ;;  %1305 = vmatmul.bf16.gmra.mxu0 %v5580_v52 }
  0xa9   : > { %1325 = vmatpush.bf16.msra.mxu1 %v3794_v41  ;;  %1412 = vmatpush.bf16.msra.mxu0 %v3606_v3  ;;  %v5600_v41 = vpack.c.bf16 %v556_v36, %v550_v35  ;;  %v565_v3 = vld [vmem:[%s5492_s7 + $0x158] sm:$0xff]  ;;  %v4434_v35 = vld [vmem:[#allocation5 + $0x1b4] sm:$0xf] }
  0xaa   : > { %1466 = vmatpush.bf16.msra.mxu2 %v3766_v25  ;;  %v5610_v6 = vpack.c.bf16 %v565_v3, %v559_v2  ;;  %v4450_v25 = vld [vmem:[#allocation5 + $0x234] sm:$0xf]  ;;  %1498 = vmatpush.bf16.msra.mxu3 %v3806_v22  ;;  %v3667_v36 = vld [vmem:[#allocation5 + $0x1b8] sm:$0xf0]  ;;  %v4460_v2 = vld [vmem:[#allocation5 + $0x284] sm:$0xf] }
  0xab   : > { %v3734_v28 = vor.u32 %v4450_v25, %v3731_v26 }
  0xad   : > { %1326 = vmatpush.bf16.msra.mxu1 %v3786_v53  ;;  %1413 = vmatpush.bf16.msra.mxu0 %v3598_v10  ;;  %v3758_v53 = vor.u32 %v4456_v44, %v3755_v46  ;;  %v3686_v10 = vor.u32 %v4438_v8, %v3683_v9  ;;  %v3787_v44 = vld [vmem:[#allocation5 + $0x2a8] sm:$0xf0]  ;;  %v4428_v8 = vld [vmem:[#allocation5 + $0x184] sm:$0xf] }
  0xae   : > { %1499 = vmatpush.bf16.msra.mxu3 %v3798_v34  ;;  %v3790_v46 = vor.u32 %v4464_v43, %v3787_v44  ;;  %v3643_v9 = vld [vmem:[#allocation5 + $0x188] sm:$0xf0]  ;;  %v4483_v44 = vld [vmem:[#allocation8 + $0x38] sm:$0xff] }
  0xaf   : > { %1257 = vmatmul.bf16.gmra.mxu2 %v5588_v16  ;;  %1286 = vmatmul.bf16.gmra.mxu3 %v5590_v21 }
  0xb0   : > { %1467 = vmatpush.bf16.msra.mxu2 %v3758_v53 }
  0xb1   : > { %1327 = vmatpush.bf16.msra.mxu1 %v3778_v5  ;;  %1414 = vmatpush.bf16.msra.mxu0 %v3590_v29  ;;  %v568_v5 = vld [vmem:[%s5492_s7 + $0x170] sm:$0xff]  ;;  %v527_v29 = vld [vmem:[%s5492_s7 + $0x28] sm:$0xff] }
  0xb2   : > { %v5612_v7 = vpack.c.bf16 %v568_v5, %v562_v4  ;;  %v5620_v31 = vpack.c.bf16 %v533_v30, %v527_v29  ;;  %1500 = vmatpush.bf16.msra.mxu3 %v3790_v46  ;;  %v3771_v4 = vld [vmem:[#allocation5 + $0x288] sm:$0xf0]  ;;  %v4482_v46 = vld [vmem:[#allocation8 + $0x30] sm:$0xff] }
  0xb3   : > { %v3774_v5 = vor.u32 %v4460_v2, %v3771_v4 }
  0xb4   : > { %1468 = vmatpush.bf16.msra.mxu2 %v3750_v0  ;;  %v3707_v0 = vld [vmem:[#allocation5 + $0x208] sm:$0xf0] }
  0xb5   : > { %1328 = vmatpush.bf16.msra.mxu1 %v3770_v27  ;;  %1415 = vmatpush.bf16.msra.mxu0 %v3582_v39  ;;  %v3678_v27 = vor.u32 %v4436_v23, %v3675_v24  ;;  %v4448_v39 = vld [vmem:[#allocation5 + $0x224] sm:$0xf] }
  0xb6   : > { %1501 = vmatpush.bf16.msra.mxu3 %v3782_v62 }
  0xb8   : > { %1223 = vmatmul.bf16.gmra.mxu1 %v5598_v40  ;;  %1310 = vmatmul.bf16.gmra.mxu0 %v5600_v41 }
  0xb9   : > { %1437 = vmatpush.bf16.msrb.mxu1 %v3702_v45  ;;  %v4432_v45 = vld [vmem:[#allocation5 + $0x1a4] sm:$0xf]  ;;  %1680 = vmatpush.bf16.msrb.mxu0 %v4483_v44  ;;  %v4489_v44 = vld [vmem:[#allocation8 + $0x68] sm:$0xff] }
  0xba   : > { %1502 = vmatpush.bf16.msra.mxu3 %v3774_v5 }
  0xbd   : > { %1438 = vmatpush.bf16.msrb.mxu1 %v3694_v63  ;;  %v4444_v63 = vld [vmem:[#allocation5 + $0x204] sm:$0xf]  ;;  %1681 = vmatpush.bf16.msrb.mxu0 %v4482_v46 }
  0xbf   : > { %1358 = vmatmul.bf16.vlgmr.msrb.gmra.mxu2 %v5518_v18  ;;  %1387 = vmatmul.bf16.vlgmr.msrb.gmra.mxu3 %v5558_v60  ;;  %v4452_v18 = vld [vmem:[#allocation5 + $0x244] sm:$0xf]  ;;  %v3739_v60 = vld [vmem:[#allocation5 + $0x248] sm:$0xf0] }
  0xc0   : > { %v3742_v15 = vor.u32 %v4452_v18, %v3739_v60  ;;  %v3646_v18 = vor.u32 %v4428_v8, %v3643_v9  ;;  %v4476_v9 = vld [vmem:[#allocation8] sm:$0xff] }
  0xc1   : > { %1439 = vmatpush.bf16.msrb.mxu1 %v3686_v10  ;;  %v557_v10 = vld [vmem:[%s5492_s7 + $0x118] sm:$0xff] }
  0xc2   : > { %1469 = vmatpush.bf16.msra.mxu2 %v3742_v15  ;;  %v563_v15 = vld [vmem:[%s5492_s7 + $0x148] sm:$0xff] }
  0xc5   : > { %1440 = vmatpush.bf16.msrb.mxu1 %v3678_v27  ;;  %v690_v27 = vld [vmem:[#allocation7] sm:$0x3] }
  0xc6   : > { %1470 = vmatpush.bf16.msra.mxu2 %v3734_v28  ;;  %v5691_v8 = vperm.slane %v690_v27, 1 }
  0xc8   : > { %1228 = vmatmul.bf16.gmra.mxu1 %v5610_v6  ;;  %1315 = vmatmul.bf16.gmra.mxu0 %v5612_v7 }
  0xcf   : > { %1363 = vmatmul.bf16.gmra.mxu2 %v5538_v12  ;;  %1392 = vmatmul.bf16.gmra.mxu3 %v5578_v51  ;;  %v3670_v12 = vor.u32 %v4434_v35, %v3667_v36  ;;  %v3723_v51 = vld [vmem:[#allocation5 + $0x228] sm:$0xf0] }
  0xd0   : > { %v3726_v42 = vor.u32 %v4448_v39, %v3723_v51 }
  0xd1   : > { %1441 = vmatpush.bf16.msrb.mxu1 %v3670_v12 }
  0xd2   : > { %1471 = vmatpush.bf16.msra.mxu2 %v3726_v42 }
  0xd6   : > { %1472 = vmatpush.bf16.msra.mxu2 %v3718_v54  ;;  %v4481_v54 = vld [vmem:[#allocation8 + $0x28] sm:$0xff] }
  0xd7   : > { %1682 = vmatpush.bf16.msrb.mxu0 %v4481_v54 }
  0xd8   : > { %1329 = vmatmul.bf16.vlgmr.msra.gmra.mxu1 %v5620_v31  ;;  %1416 = vmatmul.bf16.vlgmr.msra.gmra.mxu0 %v5528_v49  ;;  %v3659_v49 = vld [vmem:[#allocation5 + $0x1a8] sm:$0xf0] }
  0xd9   : > { %v3662_v53 = vor.u32 %v4432_v45, %v3659_v49 }
  0xdb   : > { %1442 = vmatpush.bf16.msrb.mxu1 %v3662_v53  ;;  %1683 = vmatpush.bf16.msrb.mxu0 %v4480_v56 }
  0xdf   : > { %1368 = vmatmul.bf16.gmra.mxu2 %v5520_v19  ;;  %1397 = vmatmul.bf16.gmra.mxu3 %v5598_v40  ;;  %v3710_v19 = vor.u32 %v4444_v63, %v3707_v0  ;;  %v4430_v40 = vld [vmem:[#allocation5 + $0x194] sm:$0xf] }
  0xe0   : > { %v3654_v3 = vor.u32 %v4430_v40, %v3651_v1  ;;  %1684 = vmatpush.bf16.msrb.mxu0 %v4479_v59  ;;  %v4488_v59 = vld [vmem:[#allocation8 + $0x60] sm:$0xff] }
  0xe1   : > { %1473 = vmatpush.bf16.msra.mxu2 %v3710_v19  ;;  %v4478_v19 = vld [vmem:[#allocation8 + $0x10] sm:$0xff] }
  0xe2   : > { %1443 = vmatpush.bf16.msrb.mxu1 %v3654_v3  ;;  %v4477_v3 = vld [vmem:[#allocation8 + $0x8] sm:$0xff] }
  0xe4   : > { %1685 = vmatpush.bf16.msrb.mxu0 %v4478_v19 }
  0xe6   : > { %1444 = vmatpush.bf16.msrb.mxu1 %v3646_v18 }
  0xe8   : > { %1334 = vmatmul.bf16.gmra.mxu1 %v581_v57  ;;  %1421 = vmatmul.bf16.gmra.mxu0 %v5548_v37  ;;  %v551_v37 = vld [vmem:[%s5492_s7 + $0xe8] sm:$0xff] }
  0xe9   : > { %v587_v60 = vpack.c.bf16 %v557_v10, %v551_v37  ;;  %1686 = vmatpush.bf16.msrb.mxu0 %v4477_v3 }
  0xed   : > { %1687 = vmatpush.bf16.msrb.mxu0 %v4476_v9 }
  0xef   : > { %1373 = vmatmul.bf16.gmra.mxu2 %v5540_v13  ;;  %1402 = vmatmul.bf16.gmra.mxu3 %v5610_v6  ;;  %v569_v13 = vld [vmem:[%s5492_s7 + $0x178] sm:$0xff]  ;;  %s5207_s7 = sshra.s32 %s3286_s6, 4  ;;  %s5208_s7 = int_to_ptr.hbm [resolvable:$true] %s5207_s7 }
  0xf0   : > { %v593_v23 = vpack.c.bf16 %v569_v13, %v563_v15  ;;  %s5209_s24 = scalar_lea.hbm %s5208_s7, 384  ;;  %p5214_p5 = scmp.lt.s32.totalorder %s5208_s7, %s6086_s23 }
  0xf1   : > { %p5210_p1 = scmp.ne.s32.totalorder %s5208_s7, %s5209_s24  ;;  %p5215_p6 = scmp.lt.s32.totalorder %s5213_s13, %s5209_s24 }
  0xf3   : > { %p5211_p3 = pnand %p5210_p1, %p5455_p13  ;;  %p5216_p7 = por %p5215_p6, %p5214_p5 }
  0xf5   : > { %v5633_v11 = vpop.f32.mrf.mxu1  ;;  %p5212_p12 = pneg %p5211_p3 }
  0xf7   : > { %p5217_p8 = pnand %p5216_p7, %p5212_p12 }
  0xf8   : > { %1339 = vmatmul.bf16.gmra.mxu1 %v587_v60  ;;  %1426 = vmatmul.bf16.gmra.mxu0 %v5568_v17  ;;  %v1185_v17 = vpop.f32.mrf.mxu0 }
  0xfd   : > { %v5636_v14 = vpop.f32.mrf.mxu1 }
  0xff   : > { %1474 = vmatmul.bf16.vlgmr.msra.gmra.mxu2 %v5560_v61  ;;  %1503 = vmatmul.bf16.vlgmr.msra.gmra.mxu3 %v5620_v31  ;;  %v5652_v61 = vperm.slane %v690_v27, 0 }
 0x100   : > { %v5655_v32 = vpop.f32.mrf.mxu0 }
 0x101   : > { %v1186_v29 = vadd.f32 %v1185_v17, %v5652_v61  ;;  %v1196_v62 = vadd.f32 %v5633_v11, %v5652_v61 }
 0x102   : > { %v1243_v22 = vpop.f32.mrf.mxu2  ;;  %v1272_v6 = vpop.f32.mrf.mxu3 }
 0x105   : > { %v5642_v24 = vpop.f32.mrf.mxu1 }
 0x106   : > { %v1201_v10 = vadd.f32 %v5642_v24, %v5652_v61 }
 0x108   : > { %1344 = vmatmul.bf16.gmra.mxu1 %v593_v23  ;;  %1431 = vmatmul.bf16.gmra.mxu0 %v5588_v16  ;;  %v1190_v12 = vpop.f32.mrf.mxu0 }
 0x109   : > { %v1191_v51 = vadd.f32 %v1190_v12, %v5652_v61 }
 0x10a   : > { %v5645_v25 = vpop.f32.mrf.mxu2  ;;  %v5647_v26 = vpop.f32.mrf.mxu3 }
 0x10d   : > { %v5649_v28 = vpop.f32.mrf.mxu1 }
 0x10f   : > { %1479 = vmatmul.bf16.gmra.mxu2 %v5580_v52  ;;  %1508 = vmatmul.bf16.gmra.mxu3 %v581_v57 }
 0x110   : > { %v5669_v47 = vpop.f32.mrf.mxu0 }
 0x111   : > { %v1193_v46 = vadd.f32 %v5669_v47, %v5652_v61 }
 0x112   : > { %v1248_v30 = vpop.f32.mrf.mxu2  ;;  %v1277_v31 = vpop.f32.mrf.mxu3 }
 0x115   : > { %v1214_v16 = vpop.f32.mrf.mxu1 }
 0x116   : > { %v1215_v33 = vadd.f32 %v1214_v16, %v1186_v29  ;;  %v1188_v29 = vadd.f32 %v5655_v32, %v5652_v61 }
 0x118   : > { %v1244_v34 = vadd.f32 %v1243_v22, %v1215_v33  ;;  %1445 = vmatmul.bf16.vlgmr.msrb.gmra.mxu1 %v5530_v50  ;;  %v1301_v58 = vpop.f32.mrf.mxu0 }
 0x11a   : > { %v5658_v35 = vadd.f32 %v1272_v6, %v1244_v34  ;;  %v5660_v36 = vpop.f32.mrf.mxu2  ;;  %v5662_v39 = vpop.f32.mrf.mxu3  ;;  %v4491_v6 = vld [vmem:[#allocation8 + $0x78] sm:$0xff] }
 0x11b   : > { %1709 = vmatpush.bf16.msra.mxu1 %v4491_v6 }
 0x11c   : > { %v1302_v32 = vadd.f32 %v1301_v58, %v5658_v35 }
 0x11d   : > { %v5664_v52 = vpop.f32.mrf.mxu1 }
 0x11f   : > { %1484 = vmatmul.bf16.gmra.mxu2 %v5600_v41  ;;  %1513 = vmatmul.bf16.gmra.mxu3 %v587_v60 }
 0x120   : > { %v1303_v4 = vpop.f32.mrf.mxu0 }
 0x122   : > { %v1253_v42 = vpop.f32.mrf.mxu2  ;;  %v1282_v43 = vpop.f32.mrf.mxu3 }
 0x125   : > { %v1219_v45 = vpop.f32.mrf.mxu1 }
 0x126   : > { %v1220_v50 = vadd.f32 %v1219_v45, %v1191_v51 }
 0x128   : > { %v1249_v49 = vadd.f32 %v1248_v30, %v1220_v50  ;;  %1450 = vmatmul.bf16.gmra.mxu1 %v5550_v38  ;;  %v1306_v13 = vpop.f32.mrf.mxu0  ;;  %v1217_v30 = vadd.f32 %v5664_v52, %v1188_v29  ;;  %v4486_v29 = vld [vmem:[#allocation8 + $0x50] sm:$0xff] }
 0x12a   : > { %v5671_v48 = vadd.f32 %v1277_v31, %v1249_v49  ;;  %v5673_v53 = vpop.f32.mrf.mxu2  ;;  %v5675_v41 = vpop.f32.mrf.mxu3  ;;  %v4490_v31 = vld [vmem:[#allocation8 + $0x70] sm:$0xff]  ;;  %v1246_v12 = vadd.f32 %v5645_v25, %v1217_v30 }
 0x12b   : > { %1710 = vmatpush.bf16.msra.mxu1 %v4490_v31 }
 0x12d   : > { %v5677_v55 = vpop.f32.mrf.mxu1 }
 0x12f   : > { %1489 = vmatmul.bf16.gmra.mxu2 %v5612_v7  ;;  %1518 = vmatmul.bf16.gmra.mxu3 %v593_v23 }
 0x130   : > { %v1308_v16 = vpop.f32.mrf.mxu0  ;;  %1711 = vmatpush.bf16.msra.mxu1 %v4489_v44 }
 0x132   : > { %v1258_v57 = vpop.f32.mrf.mxu2  ;;  %v1287_v38 = vpop.f32.mrf.mxu3 }
 0x134   : > { %1712 = vmatpush.bf16.msra.mxu1 %v4488_v59 }
 0x135   : > { %v1224_v63 = vpop.f32.mrf.mxu1 }
 0x136   : > { %v1225_v0 = vadd.f32 %v1224_v63, %v1196_v62 }
 0x138   : > { %v1254_v40 = vadd.f32 %v1253_v42, %v1225_v0  ;;  %1455 = vmatmul.bf16.gmra.mxu1 %v5570_v20  ;;  %v1311_v50 = vpop.f32.mrf.mxu0 }
 0x13a   : > { %v5683_v1 = vadd.f32 %v1282_v43, %v1254_v40  ;;  %v5685_v7 = vpop.f32.mrf.mxu2  ;;  %v5687_v2 = vpop.f32.mrf.mxu3  ;;  %v1275_v43 = vadd.f32 %v5647_v26, %v1246_v12 }
 0x13c   : > { %v1304_v49 = vadd.f32 %v1303_v4, %v1275_v43  ;;  %v4487_v4 = vld [vmem:[#allocation8 + $0x58] sm:$0xff]  ;;  %v4485_v43 = vld [vmem:[#allocation8 + $0x48] sm:$0xff] }
 0x13d   : > { %v5689_v5 = vpop.f32.mrf.mxu1  ;;  %1713 = vmatpush.bf16.msra.mxu1 %v4487_v4 }
 0x140   : > { %v1313_v19 = vpop.f32.mrf.mxu0 }
 0x141   : > { %1714 = vmatpush.bf16.msra.mxu1 %v4486_v29 }
 0x142   : > { %v1359_v18 = vpop.f32.mrf.mxu2  ;;  %v1388_v37 = vpop.f32.mrf.mxu3 }
 0x143   : > { %v1360_v20 = vadd.f32 %v1359_v18, %v5691_v8 }
 0x145   : > { %v1229_v60 = vpop.f32.mrf.mxu1  ;;  %v5696_v11 = vadd.f32 %v1388_v37, %v1360_v20  ;;  %1715 = vmatpush.bf16.msra.mxu1 %v4485_v43 }
 0x146   : > { %v1230_v15 = vadd.f32 %v1229_v60, %v1201_v10 }
 0x148   : > { %v1259_v22 = vadd.f32 %v1258_v57, %v1230_v15  ;;  %1460 = vmatmul.bf16.gmra.mxu1 %v5590_v21  ;;  %v1222_v57 = vadd.f32 %v5677_v55, %v1193_v46  ;;  %v1307_v55 = vadd.f32 %v1306_v13, %v5671_v48  ;;  %v1316_v15 = vpop.f32.mrf.mxu0 }
 0x14a   : > { %v5699_v23 = vadd.f32 %v1287_v38, %v1259_v22  ;;  %v5701_v17 = vpop.f32.mrf.mxu2  ;;  %v5703_v27 = vpop.f32.mrf.mxu3  ;;  %v1251_v0 = vadd.f32 %v5660_v36, %v1222_v57  ;;  %v1198_v36 = vadd.f32 %v5636_v14, %v5652_v61 }
 0x14c   : > { %v1280_v3 = vadd.f32 %v5662_v39, %v1251_v0  ;;  %v1227_v22 = vadd.f32 %v5689_v5, %v1198_v36  ;;  %v1312_v5 = vadd.f32 %v1311_v50, %v5683_v1  ;;  %v4484_v1 = vld [vmem:[#allocation8 + $0x40] sm:$0xff] }
 0x14d   : > { %v5707_v24 = vpop.f32.mrf.mxu1  ;;  %1716 = vmatpush.bf16.msra.mxu1 %v4484_v1 }
 0x14e   : > { %v1309_v37 = vadd.f32 %v1308_v16, %v1280_v3  ;;  %v1256_v31 = vadd.f32 %v5673_v53, %v1227_v22 }
 0x150   : > { %v1285_v14 = vadd.f32 %v5675_v41, %v1256_v31 }
 0x152   : > { %v1364_v33 = vpop.f32.mrf.mxu2  ;;  %v1393_v34 = vpop.f32.mrf.mxu3  ;;  %v1314_v12 = vadd.f32 %v1313_v19, %v1285_v14 }
 0x153   : > { %v1365_v21 = vadd.f32 %v1364_v33, %v5691_v8 }
 0x155   : > { %v1330_v51 = vpop.f32.mrf.mxu1  ;;  %v5712_v42 = vadd.f32 %v1393_v34, %v1365_v21  ;;  %v1318_v21 = vpop.f32.mrf.mxu0 }
 0x156   : > { %v1331_v54 = vadd.f32 %v1330_v51, %v1302_v32  ;;  %v1203_v32 = vadd.f32 %v5649_v28, %v5652_v61 }
 0x158   : > { %v1524_v38 = vmax.f32 %v1331_v54, 0.0 }
 0x15a   : > { %v5716_v45 = vpop.f32.mrf.mxu2  ;;  %v5718_v52 = vpop.f32.mrf.mxu3 }
 0x15d   : > { %v1332_v25 = vpop.f32.mrf.mxu1  ;;  %v1417_v57 = vpop.f32.mrf.mxu0 }
 0x15e   : > { %v1333_v56 = vadd.f32 %v1332_v25, %v1304_v49  ;;  %v1232_v49 = vadd.f32 %v5707_v24, %v1203_v32 }
 0x160   : > { %v1526_v26 = vmax.f32 %v1333_v56, 0.0  ;;  %v1261_v50 = vadd.f32 %v5685_v7, %v1232_v49 }
 0x162   : > { %v1540_v62 = vpack.c.bf16 %v1526_v26, %v1524_v38  ;;  %v1369_v35 = vpop.f32.mrf.mxu2  ;;  %v1398_v58 = vpop.f32.mrf.mxu3  ;;  %v1290_v28 = vadd.f32 %v5687_v2, %v1261_v50  ;;  %v1317_v26 = vadd.f32 %v1316_v15, %v5699_v23  ;;  %v1362_v2 = vadd.f32 %v5701_v17, %v5691_v8 }
 0x163   : > { %v1370_v63 = vadd.f32 %v1369_v35, %v5691_v8  ;;  %v1367_v17 = vadd.f32 %v5716_v45, %v5691_v8 }
 0x164   : > { %1688 = vmatmul.bf16.vlgmr.msrb.gmra.mxu0 %v1540_v62  ;;  %v1319_v62 = vadd.f32 %v1318_v21, %v1290_v28 }
 0x165   : > { %v1335_v47 = vpop.f32.mrf.mxu1  ;;  %v5725_v40 = vadd.f32 %v1398_v58, %v1370_v63  ;;  %v1419_v35 = vpop.f32.mrf.mxu0 }
 0x166   : > { %v1336_v20 = vadd.f32 %v1335_v47, %v1307_v55  ;;  %v1418_v55 = vadd.f32 %v1417_v57, %v5696_v11 }
 0x168   : > { %v1528_v6 = vmax.f32 %v1336_v20, 0.0  ;;  %v1391_v20 = vadd.f32 %v5703_v27, %v1362_v2 }
 0x16a   : > { %v5729_v9 = vpop.f32.mrf.mxu2  ;;  %v5731_v18 = vpop.f32.mrf.mxu3 }
 0x16d   : > { %v1337_v10 = vpop.f32.mrf.mxu1 }
 0x16e   : > { %v1338_v60 = vadd.f32 %v1337_v10, %v1309_v37  ;;  %v1422_v37 = vpop.f32.mrf.mxu0  ;;  %v1420_v10 = vadd.f32 %v1419_v35, %v1391_v20 }
 0x170   : > { %v1530_v39 = vmax.f32 %v1338_v60, 0.0 }
 0x172   : > { %v1542_v30 = vpack.c.bf16 %v1530_v39, %v1528_v6  ;;  %v1374_v48 = vpop.f32.mrf.mxu2  ;;  %v1403_v16 = vpop.f32.mrf.mxu3 }
 0x173   : > { %v1375_v13 = vadd.f32 %v1374_v48, %v5691_v8 }
 0x174   : > { %1693 = vmatmul.bf16.gmra.mxu0 %v1542_v30 }
 0x175   : > { %v1340_v33 = vpop.f32.mrf.mxu1  ;;  %v5738_v34 = vadd.f32 %v1403_v16, %v1375_v13  ;;  %v1423_v16 = vadd.f32 %v1422_v37, %v5712_v42 }
 0x176   : > { %v1341_v51 = vadd.f32 %v1340_v33, %v1312_v5  ;;  %v1424_v30 = vpop.f32.mrf.mxu0  ;;  %v1396_v5 = vadd.f32 %v5718_v52, %v1367_v17  ;;  %v4493_v17 = vld [vmem:[#allocation10 + $0x8] sm:$0xff] }
 0x178   : > { %v1532_v54 = vmax.f32 %v1341_v51, 0.0  ;;  %v1425_v51 = vadd.f32 %v1424_v30, %v1396_v5  ;;  %v5771_v5 = vld [vmem:[%s6054_s4] ss:$0 sm:$0xff] }
 0x17a   : > { %v5744_v53 = vpop.f32.mrf.mxu2  ;;  %v5747_v56 = vpop.f32.mrf.mxu3 }
 0x17d   : > { %v1342_v44 = vpop.f32.mrf.mxu1 }
 0x17e   : > { %v1343_v46 = vadd.f32 %v1342_v44, %v1314_v12  ;;  %v1427_v12 = vpop.f32.mrf.mxu0 }
 0x17f   : > { %v1428_v50 = vadd.f32 %v1427_v12, %v5725_v40 }
 0x180   : > { %v1534_v25 = vmax.f32 %v1343_v46, 0.0 }
 0x182   : > { %v1544_v41 = vpack.c.bf16 %v1534_v25, %v1532_v54  ;;  %v1475_v61 = vpop.f32.mrf.mxu2  ;;  %v1504_v59 = vpop.f32.mrf.mxu3 }
 0x184   : > { %1698 = vmatmul.bf16.gmra.mxu0 %v1544_v41 }
 0x185   : > { %v1345_v38 = vpop.f32.mrf.mxu1 }
 0x186   : > { %v1346_v24 = vadd.f32 %v1345_v38, %v1317_v26  ;;  %v1429_v45 = vpop.f32.mrf.mxu0  ;;  %v1372_v38 = vadd.f32 %v5729_v9, %v5691_v8 }
 0x188   : > { %v1536_v0 = vmax.f32 %v1346_v24, 0.0 }
 0x18a   : > { %v1477_v3 = vpop.f32.mrf.mxu2  ;;  %v1506_v4 = vpop.f32.mrf.mxu3 }
 0x18d   : > { %v1347_v58 = vpop.f32.mrf.mxu1 }
 0x18e   : > { %v1348_v63 = vadd.f32 %v1347_v58, %v1319_v62 }
 0x190   : > { %v1538_v19 = vmax.f32 %v1348_v63, 0.0  ;;  %v1432_v63 = vpop.f32.mrf.mxu0 }
 0x191   : > { %v1433_v9 = vadd.f32 %v1432_v63, %v5738_v34  ;;  %v4499_v34 = vld [vmem:[#allocation10 + $0x38] sm:$0xff] }
 0x192   : > { %v1546_v47 = vpack.c.bf16 %v1538_v19, %v1536_v0  ;;  %v1480_v15 = vpop.f32.mrf.mxu2  ;;  %v1509_v6 = vpop.f32.mrf.mxu3  ;;  %1818 = vmatpush.bf16.msrb.mxu2 %v4499_v34 }
 0x194   : > { %1703 = vmatmul.bf16.gmra.mxu0 %v1546_v47 }
 0x195   : > { %v1446_v7 = vpop.f32.mrf.mxu1 }
 0x196   : > { %v1447_v23 = vadd.f32 %v1446_v7, %v1418_v55  ;;  %v1377_v55 = vadd.f32 %v5744_v53, %v5691_v8  ;;  %v4498_v53 = vld [vmem:[#allocation10 + $0x30] sm:$0xff] }
 0x197   : > { %1819 = vmatpush.bf16.msrb.mxu2 %v4498_v53 }
 0x198   : > { %v1476_v36 = vadd.f32 %v1475_v61, %v1447_v23  ;;  %v1401_v61 = vadd.f32 %v5731_v18, %v1372_v38  ;;  %v1434_v23 = vpop.f32.mrf.mxu0  ;;  %v1406_v20 = vadd.f32 %v5747_v56, %v1377_v55  ;;  %v4496_v56 = vld [vmem:[#allocation10 + $0x20] sm:$0xff]  ;;  %v4510_v55 = vld [vmem:[#allocation13 + $0x54] sm:$0xf] }
 0x19a   : > { %v1505_v39 = vadd.f32 %v1504_v59, %v1476_v36  ;;  %v1482_v27 = vpop.f32.mrf.mxu2  ;;  %v1511_v21 = vpop.f32.mrf.mxu3  ;;  %v1430_v59 = vadd.f32 %v1429_v45, %v1401_v61 }
 0x19c   : > { %v1525_v13 = vmax.f32 %v1505_v39, 0.0 }
 0x19d   : > { %v1448_v60 = vpop.f32.mrf.mxu1 }
 0x19e   : > { %v1449_v22 = vadd.f32 %v1448_v60, %v1420_v10  ;;  %v1435_v10 = vadd.f32 %v1434_v23, %v1406_v20 }
 0x1a0   : > { %v1478_v29 = vadd.f32 %v1477_v3, %v1449_v22 }
 0x1a2   : > { %v1507_v48 = vadd.f32 %v1506_v4, %v1478_v29  ;;  %v1485_v54 = vpop.f32.mrf.mxu2  ;;  %v1514_v42 = vpop.f32.mrf.mxu3 }
 0x1a4   : > { %v1527_v31 = vmax.f32 %v1507_v48, 0.0 }
 0x1a5   : > { %v1451_v11 = vpop.f32.mrf.mxu1 }
 0x1a6   : > { %v1541_v33 = vpack.c.bf16 %v1527_v31, %v1525_v13  ;;  %v1452_v14 = vadd.f32 %v1451_v11, %v1423_v16  ;;  %v4497_v31 = vld [vmem:[#allocation10 + $0x28] sm:$0xff]  ;;  %v4495_v11 = vld [vmem:[#allocation10 + $0x18] sm:$0xff]  ;;  %v4494_v16 = vld [vmem:[#allocation10 + $0x10] sm:$0xff] }
 0x1a7   : > { %1820 = vmatpush.bf16.msrb.mxu2 %v4497_v31  ;;  %v4506_v31 = vld [vmem:[#allocation13 + $0x34] sm:$0xf] }
 0x1a8   : > { %1717 = vmatmul.bf16.vlgmr.msra.gmra.mxu1 %v1541_v33  ;;  %v1481_v43 = vadd.f32 %v1480_v15, %v1452_v14  ;;  %v4492_v33 = vld [vmem:[#allocation10] sm:$0xff] }
 0x1aa   : > { %v1510_v46 = vadd.f32 %v1509_v6, %v1481_v43  ;;  %v1487_v26 = vpop.f32.mrf.mxu2  ;;  %v1516_v24 = vpop.f32.mrf.mxu3 }
 0x1ab   : > { %1821 = vmatpush.bf16.msrb.mxu2 %v4496_v56  ;;  %v3955_v56 = vld [vmem:[#allocation13 + $0x38] sm:$0xf0] }
 0x1ac   : > { %v1529_v41 = vmax.f32 %v1510_v46, 0.0 }
 0x1ad   : > { %v1453_v44 = vpop.f32.mrf.mxu1 }
 0x1ae   : > { %v1454_v32 = vadd.f32 %v1453_v44, %v1425_v51 }
 0x1af   : > { %1822 = vmatpush.bf16.msrb.mxu2 %v4495_v11  ;;  %v3953_v11 = vld [vmem:[#allocation13 + $0x30] sm:$0xf] }
 0x1b0   : > { %v1483_v49 = vadd.f32 %v1482_v27, %v1454_v32 }
 0x1b2   : > { %v1512_v25 = vadd.f32 %v1511_v21, %v1483_v49  ;;  %v1490_v7 = vpop.f32.mrf.mxu2  ;;  %v1519_v2 = vpop.f32.mrf.mxu3 }
 0x1b3   : > { %1823 = vmatpush.bf16.msrb.mxu2 %v4494_v16  ;;  %v4507_v16 = vld [vmem:[#allocation13 + $0x34] sm:$0xf0] }
 0x1b4   : > { %v1531_v57 = vmax.f32 %v1512_v25, 0.0 }
 0x1b5   : > { %v1456_v1 = vpop.f32.mrf.mxu1 }
 0x1b6   : > { %v1543_v52 = vpack.c.bf16 %v1531_v57, %v1529_v41  ;;  %v1457_v28 = vadd.f32 %v1456_v1, %v1428_v50 }
 0x1b7   : > { %1824 = vmatpush.bf16.msrb.mxu2 %v4493_v17 }
 0x1b8   : > { %1722 = vmatmul.bf16.gmra.mxu1 %v1543_v52  ;;  %v1486_v62 = vadd.f32 %v1485_v54, %v1457_v28 }
 0x1ba   : > { %v1515_v0 = vadd.f32 %v1514_v42, %v1486_v62  ;;  %v1492_v22 = vpop.f32.mrf.mxu2  ;;  %v1521_v29 = vpop.f32.mrf.mxu3  ;;  %v3987_v62 = vld [vmem:[#allocation13 + $0x78] sm:$0xf0] }
 0x1bb   : > { %1825 = vmatpush.bf16.msrb.mxu2 %v4492_v33  ;;  %v3958_v33 = vor.u32 %v4506_v31, %v3955_v56  ;;  %v4305_v31 = vld [vmem:[#allocation14 + $0x270] sm:$0xf]  ;;  %v4597_v56 = vld [vmem:[#allocation14 + $0x284] sm:$0xf0] }
 0x1bc   : > { %v1533_v3 = vmax.f32 %v1515_v0, 0.0  ;;  %v4515_v0 = vld [vmem:[#allocation13 + $0x74] sm:$0xf0] }
 0x1bd   : > { %v1458_v35 = vpop.f32.mrf.mxu1 }
 0x1be   : > { %v1459_v58 = vadd.f32 %v1458_v35, %v1430_v59  ;;  %v4514_v59 = vld [vmem:[#allocation13 + $0x74] sm:$0xf] }
 0x1bf   : > { %v3990_v63 = vor.u32 %v4514_v59, %v3987_v62  ;;  %v3931_v62 = vld [vmem:[#allocation13 + $0x8] sm:$0xf0] }
 0x1c0   : > { %v1488_v19 = vadd.f32 %v1487_v26, %v1459_v58 }
 0x1c1   : > { %1990 = vmatpush.bf16.msra.mxu0 %v3990_v63 }
 0x1c2   : > { %v1517_v47 = vadd.f32 %v1516_v24, %v1488_v19  ;;  %v3985_v24 = vld [vmem:[#allocation13 + $0x70] sm:$0xf]  ;;  %v4512_v19 = vld [vmem:[#allocation13 + $0x64] sm:$0xf] }
 0x1c4   : > { %v1535_v40 = vmax.f32 %v1517_v47, 0.0  ;;  %v3979_v47 = vld [vmem:[#allocation13 + $0x68] sm:$0xf0] }
 0x1c5   : > { %v1461_v4 = vpop.f32.mrf.mxu1 }
 0x1c6   : > { %v1545_v18 = vpack.c.bf16 %v1535_v40, %v1533_v3  ;;  %v1462_v37 = vadd.f32 %v1461_v4, %v1433_v9  ;;  %v3986_v3 = vor.u32 %v4515_v0, %v3985_v24  ;;  %v3977_v40 = vld [vmem:[#allocation13 + $0x60] sm:$0xf]  ;;  %v3982_v4 = vor.u32 %v4512_v19, %v3979_v47  ;;  %v5781_v0 = vld [vmem:[#allocation11] ss:$0 sm:$0xff] }
 0x1c8   : > { %1727 = vmatmul.bf16.gmra.mxu1 %v1545_v18  ;;  %v1491_v36 = vadd.f32 %v1490_v7, %v1462_v37  ;;  %v4513_v7 = vld [vmem:[#allocation13 + $0x64] sm:$0xf0]  ;;  %1961 = vmatpush.bf16.msrb.mxu3 %v3986_v3  ;;  %v3971_v18 = vld [vmem:[#allocation13 + $0x58] sm:$0xf0]  ;;  %v4511_v37 = vld [vmem:[#allocation13 + $0x54] sm:$0xf0] }
 0x1c9   : > { %v3978_v9 = vor.u32 %v4513_v7, %v3977_v40  ;;  %1991 = vmatpush.bf16.msra.mxu0 %v3982_v4  ;;  %v3974_v20 = vor.u32 %v4510_v55, %v3971_v18 }
 0x1ca   : > { %v1520_v6 = vadd.f32 %v1519_v2, %v1491_v36  ;;  %v3969_v2 = vld [vmem:[#allocation13 + $0x50] sm:$0xf] }
 0x1cc   : > { %v1537_v48 = vmax.f32 %v1520_v6, 0.0  ;;  %1962 = vmatpush.bf16.msrb.mxu3 %v3978_v9 }
 0x1cd   : > { %v1463_v60 = vpop.f32.mrf.mxu1  ;;  %1992 = vmatpush.bf16.msra.mxu0 %v3974_v20 }
 0x1ce   : > { %v1464_v15 = vadd.f32 %v1463_v60, %v1435_v10  ;;  %v3970_v60 = vor.u32 %v4511_v37, %v3969_v2 }
 0x1d0   : > { %v1493_v39 = vadd.f32 %v1492_v22, %v1464_v15  ;;  %v4508_v15 = vld [vmem:[#allocation13 + $0x44] sm:$0xf]  ;;  %v3963_v22 = vld [vmem:[#allocation13 + $0x48] sm:$0xf0]  ;;  %1963 = vmatpush.bf16.msrb.mxu3 %v3970_v60  ;;  %v4329_v60 = vld [vmem:[#allocation14 + $0x2a0] sm:$0xf] }
 0x1d2   : > { %v1522_v30 = vadd.f32 %v1521_v29, %v1493_v39  ;;  %v3961_v39 = vld [vmem:[#allocation13 + $0x40] sm:$0xf]  ;;  %v4509_v29 = vld [vmem:[#allocation13 + $0x44] sm:$0xf0] }
 0x1d3   : > { %v3962_v53 = vor.u32 %v4509_v29, %v3961_v39  ;;  %v4558_v39 = vld [vmem:[#allocation14 + $0x154] sm:$0xf]  ;;  %v4163_v29 = vld [vmem:[#allocation14 + $0x168] sm:$0xf0] }
 0x1d4   : > { %v1539_v13 = vmax.f32 %v1522_v30, 0.0 }
 0x1d5   : > { %1964 = vmatpush.bf16.msrb.mxu3 %v3962_v53  ;;  %v4139_v53 = vld [vmem:[#allocation14 + $0x138] sm:$0xf0] }
 0x1d6   : > { %v1547_v8 = vpack.c.bf16 %v1539_v13, %v1537_v48  ;;  %v3966_v48 = vor.u32 %v4508_v15, %v3963_v22 }
 0x1d8   : > { %1732 = vmatmul.bf16.gmra.mxu1 %v1547_v8  ;;  %1993 = vmatpush.bf16.msra.mxu0 %v3966_v48 }
 0x1dc   : > { %1994 = vmatpush.bf16.msra.mxu0 %v3958_v33  ;;  %v4555_v33 = vld [vmem:[#allocation14 + $0x134] sm:$0xf0] }
 0x1e1   : > { %v1689_v27 = vpop.f32.mrf.mxu0 }
 0x1e2   : > { %v1690_v51 = vadd.f32 %v5771_v5, %v1689_v27  ;;  %v3954_v27 = vor.u32 %v4507_v16, %v3953_v11 }
 0x1e4   : > { %1965 = vmatpush.bf16.msrb.mxu3 %v3954_v27  ;;  %v4546_v27 = vld [vmem:[#allocation14 + $0xf4] sm:$0xf] }
 0x1e9   : > { %v1691_v14 = vpop.f32.mrf.mxu0 }
 0x1ea   : > { %v1692_v43 = vadd.f32 %v5771_v5, %v1691_v14  ;;  %v4504_v14 = vld [vmem:[#allocation13 + $0x24] sm:$0xf] }
 0x1f1   : > { %v1694_v12 = vpop.f32.mrf.mxu0 }
 0x1f2   : > { %v1695_v57 = vadd.f32 %v5771_v5, %v1694_v12 }
 0x1f9   : > { %v1696_v25 = vpop.f32.mrf.mxu0 }
 0x1fa   : > { %v1697_v1 = vadd.f32 %v5771_v5, %v1696_v25 }
 0x201   : > { %v1699_v45 = vpop.f32.mrf.mxu0 }
 0x202   : > { %v1700_v23 = vadd.f32 %v5771_v5, %v1699_v45 }
 0x209   : > { %v1701_v35 = vpop.f32.mrf.mxu0 }
 0x20a   : > { %v1702_v10 = vadd.f32 %v5771_v5, %v1701_v35  ;;  %v3929_v35 = vld [vmem:[#allocation13] sm:$0xf] }
 0x211   : > { %v1704_v34 = vpop.f32.mrf.mxu0 }
 0x212   : > { %v1705_v25 = vadd.f32 %v5771_v5, %v1704_v34  ;;  %v4161_v34 = vld [vmem:[#allocation14 + $0x150] sm:$0xf] }
 0x225   : > { %v1718_v21 = vpop.f32.mrf.mxu1 }
 0x226   : > { %v1719_v44 = vadd.f32 %v1718_v21, %v1690_v51  ;;  %v3947_v21 = vld [vmem:[#allocation13 + $0x28] sm:$0xf0]  ;;  %v3945_v51 = vld [vmem:[#allocation13 + $0x20] sm:$0xf] }
 0x228   : > { %v1738_v49 = vmax.f32 %v1719_v44, 0.0  ;;  %v3950_v44 = vor.u32 %v4504_v14, %v3947_v21  ;;  %v4281_v14 = vld [vmem:[#allocation14 + $0x240] sm:$0xf]  ;;  %v4591_v21 = vld [vmem:[#allocation14 + $0x254] sm:$0xf0] }
 0x22a   : > { %1995 = vmatpush.bf16.msra.mxu0 %v3950_v44  ;;  %v4606_v44 = vld [vmem:[#allocation14 + $0x2d4] sm:$0xf] }
 0x22d   : > { %v1720_v32 = vpop.f32.mrf.mxu1 }
 0x22e   : > { %v1721_v46 = vadd.f32 %v1720_v32, %v1692_v43  ;;  %v4505_v43 = vld [vmem:[#allocation13 + $0x24] sm:$0xf0] }
 0x22f   : > { %v3946_v32 = vor.u32 %v4505_v43, %v3945_v51  ;;  %v4115_v51 = vld [vmem:[#allocation14 + $0x108] sm:$0xf0]  ;;  %v4306_v43 = vor.u32 %v4597_v56, %v4305_v31  ;;  %v4576_v31 = vld [vmem:[#allocation14 + $0x1e4] sm:$0xf]  ;;  %v4235_v56 = vld [vmem:[#allocation14 + $0x1f8] sm:$0xf0] }
 0x230   : > { %v1739_v54 = vmax.f32 %v1721_v46, 0.0  ;;  %v4502_v46 = vld [vmem:[#allocation13 + $0x14] sm:$0xf] }
 0x231   : > { %1966 = vmatpush.bf16.msrb.mxu3 %v3946_v32  ;;  %v4355_v32 = vld [vmem:[#allocation14 + $0x2e8] sm:$0xf0] }
 0x232   : > { %v1746_v42 = vpack.c.bf16 %v1739_v54, %v1738_v49  ;;  %v3939_v49 = vld [vmem:[#allocation13 + $0x18] sm:$0xf0]  ;;  %v1706_v54 = vpop.f32.mrf.mxu0 }
 0x234   : > { %1826 = vmatmul.bf16.vlgmr.msrb.gmra.mxu2 %v1746_v42  ;;  %v3942_v42 = vor.u32 %v4502_v46, %v3939_v49  ;;  %v4113_v46 = vld [vmem:[#allocation14 + $0xf0] sm:$0xf] }
 0x235   : > { %v1723_v41 = vpop.f32.mrf.mxu1 }
 0x236   : > { %v1724_v50 = vadd.f32 %v1723_v41, %v1695_v57  ;;  %v1707_v41 = vadd.f32 %v5771_v5, %v1706_v54  ;;  %1996 = vmatpush.bf16.msra.mxu0 %v3942_v42  ;;  %v4118_v54 = vor.u32 %v4546_v27, %v4115_v51  ;;  %v4549_v42 = vld [vmem:[#allocation14 + $0x104] sm:$0xf0] }
 0x238   : > { %v1740_v28 = vmax.f32 %v1724_v50, 0.0 }
 0x23d   : > { %v1725_v38 = vpop.f32.mrf.mxu1 }
 0x23e   : > { %v1726_v52 = vadd.f32 %v1725_v38, %v1697_v1 }
 0x240   : > { %v1741_v61 = vmax.f32 %v1726_v52, 0.0 }
 0x242   : > { %v1747_v26 = vpack.c.bf16 %v1741_v61, %v1740_v28  ;;  %v3937_v28 = vld [vmem:[#allocation13 + $0x10] sm:$0xf]  ;;  %v4503_v61 = vld [vmem:[#allocation13 + $0x14] sm:$0xf0] }
 0x243   : > { %v3938_v59 = vor.u32 %v4503_v61, %v3937_v28  ;;  %v4091_v28 = vld [vmem:[#allocation14 + $0xd8] sm:$0xf0]  ;;  %v4594_v61 = vld [vmem:[#allocation14 + $0x274] sm:$0xf] }
 0x244   : > { %1831 = vmatmul.bf16.gmra.mxu2 %v1747_v26  ;;  %v4500_v26 = vld [vmem:[#allocation13 + $0x4] sm:$0xf] }
 0x245   : > { %v1728_v58 = vpop.f32.mrf.mxu1  ;;  %v3934_v24 = vor.u32 %v4500_v26, %v3931_v62  ;;  %1967 = vmatpush.bf16.msrb.mxu3 %v3938_v59  ;;  %v4282_v26 = vor.u32 %v4591_v21, %v4281_v14  ;;  %v4307_v59 = vld [vmem:[#allocation14 + $0x288] sm:$0xf0]  ;;  %v4089_v62 = vld [vmem:[#allocation14 + $0xc0] sm:$0xf]  ;;  %v4043_v14 = vld [vmem:[#allocation14 + $0x78] sm:$0xf0] }
 0x246   : > { %v1729_v36 = vadd.f32 %v1728_v58, %v1700_v23  ;;  %v4501_v58 = vld [vmem:[#allocation13 + $0x4] sm:$0xf0]  ;;  %v4570_v21 = vld [vmem:[#allocation14 + $0x1b4] sm:$0xf] }
 0x247   : > { %1997 = vmatpush.bf16.msra.mxu0 %v3934_v24  ;;  %v3930_v5 = vor.u32 %v4501_v58, %v3929_v35  ;;  %v4543_v24 = vld [vmem:[#allocation14 + $0xd4] sm:$0xf0] }
 0x248   : > { %v1742_v13 = vmax.f32 %v1729_v36, 0.0  ;;  %v4609_v36 = vld [vmem:[#allocation14 + $0x2e4] sm:$0xf0] }
 0x249   : > { %1968 = vmatpush.bf16.msrb.mxu3 %v3930_v5  ;;  %v4257_v5 = vld [vmem:[#allocation14 + $0x210] sm:$0xf] }
 0x24d   : > { %v1730_v6 = vpop.f32.mrf.mxu1 }
 0x24e   : > { %v1731_v30 = vadd.f32 %v1730_v6, %v1702_v10  ;;  %v4353_v10 = vld [vmem:[#allocation14 + $0x2d0] sm:$0xf]  ;;  %v4603_v6 = vld [vmem:[#allocation14 + $0x2b4] sm:$0xf0] }
 0x24f   : > { %v4354_v22 = vor.u32 %v4609_v36, %v4353_v10  ;;  %v4330_v48 = vor.u32 %v4603_v6, %v4329_v60  ;;  %v4209_v60 = vld [vmem:[#allocation14 + $0x1b0] sm:$0xf] }
 0x250   : > { %v1743_v8 = vmax.f32 %v1731_v30, 0.0  ;;  %v4166_v30 = vor.u32 %v4558_v39, %v4163_v29 }
 0x251   : > { %2662 = vmatpush.bf16.msra.mxu2 %v4354_v22 }
 0x252   : > { %v1748_v17 = vpack.c.bf16 %v1743_v8, %v1742_v13  ;;  %v4561_v13 = vld [vmem:[#allocation14 + $0x164] sm:$0xf0]  ;;  %v4552_v8 = vld [vmem:[#allocation14 + $0x124] sm:$0xf]  ;;  %2691 = vmatpush.bf16.msra.mxu3 %v4166_v30 }
 0x253   : > { %v4162_v11 = vor.u32 %v4561_v13, %v4161_v34  ;;  %v4142_v16 = vor.u32 %v4552_v8, %v4139_v53  ;;  %v4582_v13 = vld [vmem:[#allocation14 + $0x214] sm:$0xf]  ;;  %v4259_v8 = vld [vmem:[#allocation14 + $0x228] sm:$0xf0] }
 0x254   : > { %1836 = vmatmul.bf16.gmra.mxu2 %v1748_v17  ;;  %v4137_v17 = vld [vmem:[#allocation14 + $0x120] sm:$0xf]  ;;  %v4262_v53 = vor.u32 %v4582_v13, %v4259_v8 }
 0x255   : > { %v1733_v12 = vpop.f32.mrf.mxu1  ;;  %2633 = vmatpush.bf16.msrb.mxu1 %v4162_v11  ;;  %2663 = vmatpush.bf16.msra.mxu2 %v4330_v48  ;;  %v4238_v11 = vor.u32 %v4576_v31, %v4235_v56 }
 0x256   : > { %v1734_v57 = vadd.f32 %v1733_v12, %v1705_v25  ;;  %v4138_v12 = vor.u32 %v4555_v33, %v4137_v17  ;;  %2692 = vmatpush.bf16.msra.mxu3 %v4142_v16  ;;  %v4358_v25 = vor.u32 %v4606_v44, %v4355_v32  ;;  %v4065_v16 = vld [vmem:[#allocation14 + $0x90] sm:$0xf]  ;;  %v4537_v17 = vld [vmem:[#allocation14 + $0xa4] sm:$0xf0]  ;;  %v4528_v33 = vld [vmem:[#allocation14 + $0x64] sm:$0xf] }
 0x257   : > { %v4066_v27 = vor.u32 %v4537_v17, %v4065_v16  ;;  %v4531_v44 = vld [vmem:[#allocation14 + $0x74] sm:$0xf0]  ;;  %v4556_v16 = vld [vmem:[#allocation14 + $0x13c] sm:$0xf0]  ;;  %v4547_v17 = vld [vmem:[#allocation14 + $0xfc] sm:$0xf] }
 0x258   : > { %v1744_v50 = vmax.f32 %v1734_v57, 0.0  ;;  %v4331_v57 = vld [vmem:[#allocation14 + $0x2b8] sm:$0xf0]  ;;  %2720 = vmatpush.bf16.msrb.mxu0 %v4358_v25 }
 0x259   : > { %2634 = vmatpush.bf16.msrb.mxu1 %v4138_v12  ;;  %2664 = vmatpush.bf16.msra.mxu2 %v4306_v43  ;;  %v4211_v12 = vld [vmem:[#allocation14 + $0x1c8] sm:$0xf0]  ;;  %v4041_v43 = vld [vmem:[#allocation14 + $0x60] sm:$0xf] }
 0x25a   : > { %2693 = vmatpush.bf16.msra.mxu3 %v4118_v54  ;;  %v4214_v51 = vor.u32 %v4570_v21, %v4211_v12  ;;  %v4042_v32 = vor.u32 %v4531_v44, %v4041_v43  ;;  %v4564_v54 = vld [vmem:[#allocation14 + $0x184] sm:$0xf]  ;;  %v4363_v21 = vld [vmem:[#allocation14 + $0x2f0] sm:$0xf0] }
 0x25d   : > { %v1735_v45 = vpop.f32.mrf.mxu1  ;;  %2665 = vmatpush.bf16.msra.mxu2 %v4282_v26  ;;  %v4516_v26 = vld [vmem:[#allocation14 + $0x4] sm:$0xf] }
 0x25e   : > { %v1736_v1 = vadd.f32 %v1735_v45, %v1707_v41  ;;  %v4600_v41 = vld [vmem:[#allocation14 + $0x2a4] sm:$0xf] }
 0x260   : > { %v1745_v38 = vmax.f32 %v1736_v1, 0.0 }
 0x262   : > { %v1749_v52 = vpack.c.bf16 %v1745_v38, %v1744_v50  ;;  %v4114_v50 = vor.u32 %v4549_v42, %v4113_v46  ;;  %v4334_v38 = vor.u32 %v4600_v41, %v4331_v57  ;;  %v4185_v46 = vld [vmem:[#allocation14 + $0x180] sm:$0xf]  ;;  %v4187_v42 = vld [vmem:[#allocation14 + $0x198] sm:$0xf0]  ;;  %v4522_v57 = vld [vmem:[#allocation14 + $0x34] sm:$0xf] }
 0x263   : > { %v4190_v41 = vor.u32 %v4564_v54, %v4187_v42  ;;  %v4339_v54 = vld [vmem:[#allocation14 + $0x2c0] sm:$0xf0] }
 0x264   : > { %1841 = vmatmul.bf16.gmra.mxu2 %v1749_v52  ;;  %v4540_v52 = vld [vmem:[#allocation14 + $0xc4] sm:$0xf]  ;;  %2635 = vmatpush.bf16.msrb.mxu1 %v4114_v50 }
 0x265   : > { %2721 = vmatpush.bf16.msrb.mxu0 %v4334_v38  ;;  %v4525_v38 = vld [vmem:[#allocation14 + $0x44] sm:$0xf0] }
 0x2b7   : > { %v1827_v63 = vpop.f32.mrf.mxu2 }
 0x2b8   : > { %v1828_v19 = vadd.f32 %v5781_v0, %v1827_v63  ;;  %v4585_v63 = vld [vmem:[#allocation14 + $0x224] sm:$0xf0] }
 0x2ba   : > { %v1847_v40 = vmax.f32 %v1828_v19, 0.0  ;;  %v4094_v19 = vor.u32 %v4540_v52, %v4091_v28  ;;  %v3993_v28 = vld [vmem:[#allocation14] sm:$0xf] }
 0x2bc   : > { %2694 = vmatpush.bf16.msra.mxu3 %v4094_v19  ;;  %v4604_v19 = vld [vmem:[#allocation14 + $0x2bc] sm:$0xf0] }
 0x2bf   : > { %v1829_v47 = vpop.f32.mrf.mxu2 }
 0x2c0   : > { %v1830_v3 = vadd.f32 %v5781_v0, %v1829_v47 }
 0x2c2   : > { %v1848_v7 = vmax.f32 %v1830_v3, 0.0  ;;  %v4310_v3 = vor.u32 %v4594_v61, %v4307_v59  ;;  %v4519_v61 = vld [vmem:[#allocation14 + $0x14] sm:$0xf0] }
 0x2c3   : > { %v3994_v59 = vor.u32 %v4519_v61, %v3993_v28  ;;  %v4099_v28 = vld [vmem:[#allocation14 + $0xe0] sm:$0xf0]  ;;  %v4595_v61 = vld [vmem:[#allocation14 + $0x27c] sm:$0xf] }
 0x2c4   : > { %v1855_v4 = vpack.c.bf16 %v1848_v7, %v1847_v40  ;;  %v4090_v40 = vor.u32 %v4543_v24, %v4089_v62  ;;  %v4534_v7 = vld [vmem:[#allocation14 + $0x94] sm:$0xf]  ;;  %2722 = vmatpush.bf16.msrb.mxu0 %v4310_v3  ;;  %v3995_v62 = vld [vmem:[#allocation14 + $0x18] sm:$0xf0] }
 0x2c5   : > { %v3998_v24 = vor.u32 %v4516_v26, %v3995_v62  ;;  %v4559_v3 = vld [vmem:[#allocation14 + $0x15c] sm:$0xf]  ;;  %v4315_v62 = vld [vmem:[#allocation14 + $0x290] sm:$0xf0] }
 0x2c6   : > { %1969 = vmatmul.bf16.vlgmr.msrb.gmra.mxu3 %v1855_v4  ;;  %1998 = vmatmul.bf16.vlgmr.msra.gmra.mxu0 %v1855_v4  ;;  %v4067_v4 = vld [vmem:[#allocation14 + $0xa8] sm:$0xf0] }
 0x2c7   : > { %v1832_v9 = vpop.f32.mrf.mxu2  ;;  %2636 = vmatpush.bf16.msrb.mxu1 %v4090_v40  ;;  %v4171_v40 = vld [vmem:[#allocation14 + $0x170] sm:$0xf0] }
 0x2c8   : > { %v1833_v55 = vadd.f32 %v5781_v0, %v1832_v9  ;;  %v4258_v9 = vor.u32 %v4585_v63, %v4257_v5  ;;  %v4337_v63 = vld [vmem:[#allocation14 + $0x2a8] sm:$0xf] }
 0x2ca   : > { %v1849_v37 = vmax.f32 %v1833_v55, 0.0  ;;  %v4588_v55 = vld [vmem:[#allocation14 + $0x244] sm:$0xf]  ;;  %2666 = vmatpush.bf16.msra.mxu2 %v4258_v9 }
 0x2cb   : > { %2637 = vmatpush.bf16.msrb.mxu1 %v4066_v27 }
 0x2cf   : > { %v1834_v18 = vpop.f32.mrf.mxu2  ;;  %2638 = vmatpush.bf16.msrb.mxu1 %v4042_v32 }
 0x2d0   : > { %v1835_v2 = vadd.f32 %v5781_v0, %v1834_v18  ;;  %v4283_v18 = vld [vmem:[#allocation14 + $0x258] sm:$0xf0] }
 0x2d1   : > { %v4286_v10 = vor.u32 %v4588_v55, %v4283_v18  ;;  %v4313_v18 = vld [vmem:[#allocation14 + $0x278] sm:$0xf] }
 0x2d2   : > { %v1850_v23 = vmax.f32 %v1835_v2, 0.0  ;;  %v4233_v2 = vld [vmem:[#allocation14 + $0x1e0] sm:$0xf] }
 0x2d3   : > { %2723 = vmatpush.bf16.msrb.mxu0 %v4286_v10 }
 0x2d4   : > { %v1856_v20 = vpack.c.bf16 %v1850_v23, %v1849_v37  ;;  %v4579_v37 = vld [vmem:[#allocation14 + $0x1f4] sm:$0xf0] }
 0x2d5   : > { %v4234_v36 = vor.u32 %v4579_v37, %v4233_v2  ;;  %v4598_v2 = vld [vmem:[#allocation14 + $0x28c] sm:$0xf0] }
 0x2d6   : > { %1974 = vmatmul.bf16.gmra.mxu3 %v1856_v20  ;;  %2003 = vmatmul.bf16.gmra.mxu0 %v1856_v20  ;;  %v4070_v20 = vor.u32 %v4534_v7, %v4067_v4  ;;  %v4174_v7 = vor.u32 %v4559_v3, %v4171_v40  ;;  %v1875_v4 = vld [vmem:[%s6058_s8] sm:$0x3]  ;;  %v4314_v37 = vor.u32 %v4598_v2, %v4313_v18  ;;  %v4589_v3 = vld [vmem:[#allocation14 + $0x24c] sm:$0xf]  ;;  %v4291_v40 = vld [vmem:[#allocation14 + $0x260] sm:$0xf0] }
 0x2d7   : > { %v1837_v15 = vpop.f32.mrf.mxu2  ;;  %2667 = vmatpush.bf16.msra.mxu2 %v4234_v36  ;;  %2724 = vmatpush.bf16.msrb.mxu0 %v4262_v53  ;;  %v5794_v55 = vperm.slane %v1875_v4, 1  ;;  %v4553_v36 = vld [vmem:[#allocation14 + $0x12c] sm:$0xf] }
 0x2d8   : > { %v1838_v49 = vadd.f32 %v5781_v0, %v1837_v15  ;;  %v4573_v15 = vld [vmem:[#allocation14 + $0x1c4] sm:$0xf0]  ;;  %2695 = vmatpush.bf16.msra.mxu3 %v4070_v20  ;;  %v4562_v20 = vld [vmem:[#allocation14 + $0x16c] sm:$0xf0] }
 0x2d9   : > { %v4210_v22 = vor.u32 %v4573_v15, %v4209_v60  ;;  %v4147_v60 = vld [vmem:[#allocation14 + $0x140] sm:$0xf0] }
 0x2da   : > { %v1851_v35 = vmax.f32 %v1838_v49, 0.0  ;;  %v4567_v49 = vld [vmem:[#allocation14 + $0x194] sm:$0xf0] }
 0x2db   : > { %2668 = vmatpush.bf16.msra.mxu2 %v4210_v22  ;;  %2725 = vmatpush.bf16.msrb.mxu0 %v4238_v11  ;;  %v4186_v25 = vor.u32 %v4567_v49, %v4185_v46  ;;  %v4150_v22 = vor.u32 %v4553_v36, %v4147_v60  ;;  %v4145_v11 = vld [vmem:[#allocation14 + $0x128] sm:$0xf]  ;;  %v4601_v49 = vld [vmem:[#allocation14 + $0x2ac] sm:$0xf]  ;;  %v4075_v60 = vld [vmem:[#allocation14 + $0xb0] sm:$0xf0] }
 0x2dc   : > { %v4146_v27 = vor.u32 %v4556_v16, %v4145_v11  ;;  %v4217_v16 = vld [vmem:[#allocation14 + $0x1b8] sm:$0xf] }
 0x2df   : > { %v1839_v45 = vpop.f32.mrf.mxu2  ;;  %2726 = vmatpush.bf16.msrb.mxu0 %v4214_v51  ;;  %2669 = vmatpush.bf16.msra.mxu2 %v4186_v25  ;;  %v4342_v25 = vor.u32 %v4601_v49, %v4339_v54  ;;  %v4219_v49 = vld [vmem:[#allocation14 + $0x1d0] sm:$0xf0] }
 0x2e0   : > { %v1840_v1 = vadd.f32 %v5781_v0, %v1839_v45  ;;  %v4019_v45 = vld [vmem:[#allocation14 + $0x48] sm:$0xf0] }
 0x2e1   : > { %v4022_v50 = vor.u32 %v4522_v57, %v4019_v45  ;;  %v4586_v57 = vld [vmem:[#allocation14 + $0x22c] sm:$0xf0] }
 0x2e2   : > { %v1852_v58 = vmax.f32 %v1840_v1, 0.0  ;;  %v4017_v1 = vld [vmem:[#allocation14 + $0x30] sm:$0xf] }
 0x2e3   : > { %2727 = vmatpush.bf16.msrb.mxu0 %v4190_v41  ;;  %v4018_v52 = vor.u32 %v4525_v38, %v4017_v1  ;;  %v4265_v41 = vld [vmem:[#allocation14 + $0x218] sm:$0xf] }
 0x2e4   : > { %v1857_v47 = vpack.c.bf16 %v1852_v58, %v1851_v35  ;;  %v4361_v35 = vld [vmem:[#allocation14 + $0x2d8] sm:$0xf]  ;;  %v4610_v58 = vld [vmem:[#allocation14 + $0x2ec] sm:$0xf0]  ;;  %v4266_v45 = vor.u32 %v4586_v57, %v4265_v41  ;;  %v4049_v57 = vld [vmem:[#allocation14 + $0x68] sm:$0xf] }
 0x2e5   : > { %2639 = vmatpush.bf16.msrb.mxu1 %v4018_v52  ;;  %v4362_v5 = vor.u32 %v4610_v58, %v4361_v35  ;;  %v4121_v1 = vld [vmem:[#allocation14 + $0xf8] sm:$0xf]  ;;  %v4541_v52 = vld [vmem:[#allocation14 + $0xcc] sm:$0xf]  ;;  %v4318_v35 = vor.u32 %v4595_v61, %v4315_v62  ;;  %v4027_v61 = vld [vmem:[#allocation14 + $0x50] sm:$0xf0] }
 0x2e6   : > { %1979 = vmatmul.bf16.gmra.mxu3 %v1857_v47  ;;  %2008 = vmatmul.bf16.gmra.mxu0 %v1857_v47  ;;  %v4338_v47 = vor.u32 %v4604_v19, %v4337_v63  ;;  %v4241_v63 = vld [vmem:[#allocation14 + $0x1e8] sm:$0xf]  ;;  %v4580_v19 = vld [vmem:[#allocation14 + $0x1fc] sm:$0xf0]  ;;  %v4025_v62 = vld [vmem:[#allocation14 + $0x38] sm:$0xf] }
 0x2e7   : > { %v1842_v23 = vpop.f32.mrf.mxu2  ;;  %2778 = vmatpush.bf16.msrb.mxu2 %v4362_v5 }
 0x2e8   : > { %v1843_v6 = vadd.f32 %v5781_v0, %v1842_v23  ;;  %v4169_v23 = vld [vmem:[#allocation14 + $0x158] sm:$0xf] }
 0x2e9   : > { %2640 = vmatpush.bf16.msrb.mxu1 %v3994_v59  ;;  %v4170_v10 = vor.u32 %v4562_v20, %v4169_v23  ;;  %v4102_v59 = vor.u32 %v4541_v52, %v4099_v28  ;;  %v4544_v23 = vld [vmem:[#allocation14 + $0xdc] sm:$0xf0]  ;;  %v4535_v20 = vld [vmem:[#allocation14 + $0x9c] sm:$0xf]  ;;  %v4195_v52 = vld [vmem:[#allocation14 + $0x1a0] sm:$0xf0] }
 0x2ea   : > { %v1853_v30 = vmax.f32 %v1843_v6, 0.0  ;;  %v4523_v28 = vld [vmem:[#allocation14 + $0x3c] sm:$0xf] }
 0x2eb   : > { %2779 = vmatpush.bf16.msrb.mxu2 %v4338_v47  ;;  %v4242_v47 = vor.u32 %v4580_v19, %v4241_v63 }
 0x2ed   : > { %2749 = vmatpush.bf16.msra.mxu1 %v4170_v10 }
 0x2ef   : > { %v1844_v39 = vpop.f32.mrf.mxu2  ;;  %2780 = vmatpush.bf16.msrb.mxu2 %v4314_v37  ;;  %v4097_v37 = vld [vmem:[#allocation14 + $0xc8] sm:$0xf] }
 0x2f0   : > { %v1845_v29 = vadd.f32 %v5781_v0, %v1844_v39  ;;  %v4046_v0 = vor.u32 %v4528_v33, %v4043_v14  ;;  %v4123_v14 = vld [vmem:[#allocation14 + $0x110] sm:$0xf0]  ;;  %v4098_v36 = vor.u32 %v4544_v23, %v4097_v37  ;;  %v4520_v23 = vld [vmem:[#allocation14 + $0x1c] sm:$0xf0] }
 0x2f1   : > { %v4126_v51 = vor.u32 %v4547_v17, %v4123_v14  ;;  %2750 = vmatpush.bf16.msra.mxu1 %v4146_v27  ;;  %v4574_v17 = vld [vmem:[#allocation14 + $0x1cc] sm:$0xf0]  ;;  %v4073_v27 = vld [vmem:[#allocation14 + $0x98] sm:$0xf] }
 0x2f2   : > { %v1854_v34 = vmax.f32 %v1845_v29, 0.0  ;;  %2696 = vmatpush.bf16.msra.mxu3 %v4046_v0  ;;  %v5797_v29 = vperm.slane %v1875_v4, 0  ;;  %v4607_v0 = vld [vmem:[#allocation14 + $0x2dc] sm:$0xf]  ;;  %v4538_v14 = vld [vmem:[#allocation14 + $0xac] sm:$0xf0] }
 0x2f3   : > { %v4366_v43 = vor.u32 %v4607_v0, %v4363_v21  ;;  %v4074_v0 = vor.u32 %v4538_v14, %v4073_v27  ;;  %v4529_v21 = vld [vmem:[#allocation14 + $0x6c] sm:$0xf] }
 0x2f4   : > { %v1858_v48 = vpack.c.bf16 %v1854_v34, %v1853_v30  ;;  %v4289_v34 = vld [vmem:[#allocation14 + $0x248] sm:$0xf] }
 0x2f5   : > { %2836 = vmatpush.bf16.msra.mxu0 %v4366_v43 }
 0x2f6   : > { %1984 = vmatmul.bf16.gmra.mxu3 %v1858_v48  ;;  %2013 = vmatmul.bf16.gmra.mxu0 %v1858_v48  ;;  %v4592_v48 = vld [vmem:[#allocation14 + $0x25c] sm:$0xf0] }
 0x2f7   : > { %2697 = vmatpush.bf16.msra.mxu3 %v4022_v50  ;;  %v4290_v13 = vor.u32 %v4592_v48, %v4289_v34  ;;  %v4550_v50 = vld [vmem:[#allocation14 + $0x10c] sm:$0xf0] }
 0x2f8   : > { %v4122_v38 = vor.u32 %v4550_v50, %v4121_v1  ;;  %v4565_v1 = vld [vmem:[#allocation14 + $0x18c] sm:$0xf] }
 0x2f9   : > { %2781 = vmatpush.bf16.msrb.mxu2 %v4290_v13  ;;  %2837 = vmatpush.bf16.msra.mxu0 %v4342_v25 }
 0x2fa   : > { %2751 = vmatpush.bf16.msra.mxu1 %v4122_v38 }
 0x2fb   : > { %2698 = vmatpush.bf16.msra.mxu3 %v3998_v24 }
 0x2fd   : > { %2782 = vmatpush.bf16.msrb.mxu2 %v4266_v45  ;;  %2838 = vmatpush.bf16.msra.mxu0 %v4318_v35  ;;  %v4532_v45 = vld [vmem:[#allocation14 + $0x7c] sm:$0xf0]  ;;  %v4198_v35 = vor.u32 %v4565_v1, %v4195_v52  ;;  %v4593_v1 = vld [vmem:[#allocation14 + $0x264] sm:$0xf0] }
 0x2fe   : > { %2752 = vmatpush.bf16.msra.mxu1 %v4098_v36  ;;  %v4050_v38 = vor.u32 %v4532_v45, %v4049_v57  ;;  %v4297_v57 = vld [vmem:[#allocation14 + $0x250] sm:$0xf] }
 0x2ff   : > { %2807 = vmatpush.bf16.msrb.mxu3 %v4174_v7  ;;  %v4298_v52 = vor.u32 %v4593_v1, %v4297_v57  ;;  %v4569_v57 = vld [vmem:[#allocation14 + $0x1a4] sm:$0xf0]  ;;  %v4227_v1 = vld [vmem:[#allocation14 + $0x1d8] sm:$0xf0] }
 0x301   : > { %2783 = vmatpush.bf16.msrb.mxu2 %v4242_v47 }
 0x302   : > { %2753 = vmatpush.bf16.msra.mxu1 %v4074_v0 }
 0x303   : > { %2808 = vmatpush.bf16.msrb.mxu3 %v4150_v22  ;;  %v4267_v22 = vld [vmem:[#allocation14 + $0x230] sm:$0xf0] }
 0x306   : > { %2754 = vmatpush.bf16.msra.mxu1 %v4050_v38  ;;  %v4557_v38 = vld [vmem:[#allocation14 + $0x144] sm:$0xf0] }
 0x307   : > { %2809 = vmatpush.bf16.msrb.mxu3 %v4126_v51  ;;  %v4193_v51 = vld [vmem:[#allocation14 + $0x188] sm:$0xf] }
 0x30b   : > { %2810 = vmatpush.bf16.msrb.mxu3 %v4102_v59  ;;  %v4030_v59 = vor.u32 %v4523_v28, %v4027_v61  ;;  %v4548_v61 = vld [vmem:[#allocation14 + $0x104] sm:$0xf] }
 0x343   : > { %v1999_v9 = vpop.f32.mrf.mxu0 }
 0x344   : > { %v2000_v6 = vadd.f32 %v1999_v9, %v5794_v55  ;;  %v4294_v9 = vor.u32 %v4589_v3, %v4291_v40 }
 0x346   : > { %v2020_v8 = vmax.f32 %v2000_v6, 0.0  ;;  %2839 = vmatpush.bf16.msra.mxu0 %v4294_v9  ;;  %v4001_v9 = vld [vmem:[#allocation14 + $0x8] sm:$0xf] }
 0x349   : > { %v1970_v15 = vpop.f32.mrf.mxu3 }
 0x34a   : > { %v1971_v31 = vadd.f32 %v1970_v15, %v5797_v29  ;;  %v4583_v15 = vld [vmem:[#allocation14 + $0x21c] sm:$0xf] }
 0x34b   : > { %v2001_v39 = vpop.f32.mrf.mxu0 }
 0x34c   : > { %v2002_v30 = vadd.f32 %v2001_v39, %v5794_v55  ;;  %v2019_v32 = vmax.f32 %v1971_v31, 0.0  ;;  %v4078_v39 = vor.u32 %v4535_v20, %v4075_v60  ;;  %v4517_v20 = vld [vmem:[#allocation14 + $0xc] sm:$0xf] }
 0x34e   : > { %v2022_v53 = vmax.f32 %v2002_v30, 0.0  ;;  %v4270_v30 = vor.u32 %v4583_v15, %v4267_v22  ;;  %2811 = vmatpush.bf16.msrb.mxu3 %v4078_v39  ;;  %v4002_v15 = vor.u32 %v4520_v23, %v4001_v9  ;;  %v4345_v39 = vld [vmem:[#allocation14 + $0x2b0] sm:$0xf] }
 0x34f   : > { %v4249_v23 = vld [vmem:[#allocation14 + $0x1f0] sm:$0xf] }
 0x350   : > { %v5801_v56 = vpack.c.bf16 %v2022_v53, %v2020_v8  ;;  %v4577_v8 = vld [vmem:[#allocation14 + $0x1ec] sm:$0xf]  ;;  %v4243_v53 = vld [vmem:[#allocation14 + $0x200] sm:$0xf0]  ;;  %2840 = vmatpush.bf16.msra.mxu0 %v4270_v30  ;;  %v4605_v30 = vld [vmem:[#allocation14 + $0x2c4] sm:$0xf0] }
 0x351   : > { %v1972_v33 = vpop.f32.mrf.mxu3  ;;  %v4246_v31 = vor.u32 %v4577_v8, %v4243_v53  ;;  %v4179_v8 = vld [vmem:[#allocation14 + $0x178] sm:$0xf0] }
 0x352   : > { %v1973_v12 = vadd.f32 %v1972_v33, %v5797_v29  ;;  %2670 = vmatmul.bf16.vlgmr.msra.gmra.mxu2 %v5801_v56  ;;  %2728 = vmatmul.bf16.vlgmr.msrb.gmra.mxu0 %v5801_v56  ;;  %v4218_v33 = vor.u32 %v4574_v17, %v4217_v16 }
 0x353   : > { %v2004_v44 = vpop.f32.mrf.mxu0 }
 0x354   : > { %v2021_v46 = vmax.f32 %v1973_v12, 0.0  ;;  %v2005_v24 = vadd.f32 %v2004_v44, %v5794_v55  ;;  %v4051_v12 = vld [vmem:[#allocation14 + $0x80] sm:$0xf0]  ;;  %2784 = vmatpush.bf16.msrb.mxu2 %v4218_v33  ;;  %2841 = vmatpush.bf16.msra.mxu0 %v4246_v31 }
 0x355   : > { %v4054_v44 = vor.u32 %v4529_v21, %v4051_v12 }
 0x356   : > { %v5806_v42 = vpack.c.bf16 %v2021_v46, %v2019_v32  ;;  %v2024_v7 = vmax.f32 %v2005_v24, 0.0  ;;  %v4568_v32 = vld [vmem:[#allocation14 + $0x19c] sm:$0xf0]  ;;  %v4571_v46 = vld [vmem:[#allocation14 + $0x1bc] sm:$0xf] }
 0x357   : > { %v4194_v25 = vor.u32 %v4568_v32, %v4193_v51  ;;  %v4222_v41 = vor.u32 %v4571_v46, %v4219_v49  ;;  %2812 = vmatpush.bf16.msrb.mxu3 %v4054_v44  ;;  %v4526_v24 = vld [vmem:[#allocation14 + $0x4c] sm:$0xf0]  ;;  %v4321_v51 = vld [vmem:[#allocation14 + $0x280] sm:$0xf]  ;;  %v4563_v46 = vld [vmem:[#allocation14 + $0x174] sm:$0xf0] }
 0x358   : > { %2641 = vmatmul.bf16.vlgmr.msrb.gmra.mxu1 %v5806_v42  ;;  %2699 = vmatmul.bf16.vlgmr.msra.gmra.mxu3 %v5806_v42  ;;  %v4026_v63 = vor.u32 %v4526_v24, %v4025_v62  ;;  %v4177_v44 = vld [vmem:[#allocation14 + $0x160] sm:$0xf]  ;;  %v4608_v62 = vld [vmem:[#allocation14 + $0x2e4] sm:$0xf]  ;;  %v4371_v24 = vld [vmem:[#allocation14 + $0x2f8] sm:$0xf0] }
 0x359   : > { %v1975_v26 = vpop.f32.mrf.mxu3  ;;  %2785 = vmatpush.bf16.msrb.mxu2 %v4194_v25  ;;  %2842 = vmatpush.bf16.msra.mxu0 %v4222_v41  ;;  %v4155_v41 = vld [vmem:[#allocation14 + $0x148] sm:$0xf0] }
 0x35a   : > { %v1976_v18 = vadd.f32 %v1975_v26, %v5797_v29  ;;  %2755 = vmatpush.bf16.msra.mxu1 %v4026_v63  ;;  %v4129_v63 = vld [vmem:[#allocation14 + $0x100] sm:$0xf] }
 0x35b   : > { %v2006_v58 = vpop.f32.mrf.mxu0  ;;  %2813 = vmatpush.bf16.msrb.mxu3 %v4030_v59 }
 0x35c   : > { %v2007_v5 = vadd.f32 %v2006_v58, %v5794_v55  ;;  %v2023_v48 = vmax.f32 %v1976_v18, 0.0 }
 0x35d   : > { %2843 = vmatpush.bf16.msra.mxu0 %v4198_v35  ;;  %v5846_v35 = vor.u32 %v4608_v62, %v4371_v24  ;;  %v4524_v24 = vld [vmem:[#allocation14 + $0x44] sm:$0xf] }
 0x35e   : > { %v2026_v4 = vmax.f32 %v2007_v5, 0.0  ;;  %2756 = vmatpush.bf16.msra.mxu1 %v4002_v15 }
 0x360   : > { %v5813_v2 = vpack.c.bf16 %v2026_v4, %v2024_v7  ;;  %v4369_v7 = vld [vmem:[#allocation14 + $0x2e0] sm:$0xf]  ;;  %v4611_v4 = vld [vmem:[#allocation14 + $0x2f4] sm:$0xf0] }
 0x361   : > { %v1977_v10 = vpop.f32.mrf.mxu3  ;;  %v4370_v37 = vor.u32 %v4611_v4, %v4369_v7  ;;  %2952 = vmatpush.bf16.msrb.mxu0 %v5846_v35  ;;  %v4347_v7 = vld [vmem:[#allocation14 + $0x2c8] sm:$0xf0] }
 0x362   : > { %v1978_v6 = vadd.f32 %v1977_v10, %v5797_v29  ;;  %2675 = vmatmul.bf16.gmra.mxu2 %v5813_v2  ;;  %2733 = vmatmul.bf16.gmra.mxu0 %v5813_v2  ;;  %v4003_v10 = vld [vmem:[#allocation14 + $0x20] sm:$0xf0] }
 0x363   : > { %v2009_v34 = vpop.f32.mrf.mxu0  ;;  %v4006_v22 = vor.u32 %v4517_v20, %v4003_v10  ;;  %2894 = vmatpush.bf16.msra.mxu2 %v4370_v37  ;;  %v4107_v37 = vld [vmem:[#allocation14 + $0xe8] sm:$0xf0]  ;;  %v4581_v10 = vld [vmem:[#allocation14 + $0x204] sm:$0xf0] }
 0x364   : > { %v2025_v13 = vmax.f32 %v1978_v6, 0.0  ;;  %v2010_v54 = vadd.f32 %v2009_v34, %v5794_v55  ;;  %v4560_v34 = vld [vmem:[#allocation14 + $0x164] sm:$0xf]  ;;  %v4250_v15 = vor.u32 %v4581_v10, %v4249_v23 }
 0x365   : > { %2814 = vmatpush.bf16.msrb.mxu3 %v4006_v22  ;;  %v4182_v31 = vor.u32 %v4560_v34, %v4179_v8  ;;  %v4590_v34 = vld [vmem:[#allocation14 + $0x254] sm:$0xf]  ;;  %v4536_v8 = vld [vmem:[#allocation14 + $0xa4] sm:$0xf] }
 0x366   : > { %v5818_v11 = vpack.c.bf16 %v2025_v13, %v2023_v48  ;;  %v2028_v58 = vmax.f32 %v2010_v54, 0.0  ;;  %v4346_v13 = vor.u32 %v4605_v30, %v4345_v39  ;;  %v4178_v54 = vor.u32 %v4563_v46, %v4177_v44  ;;  %v4105_v39 = vld [vmem:[#allocation14 + $0xd0] sm:$0xf]  ;;  %v4545_v30 = vld [vmem:[#allocation14 + $0xe4] sm:$0xf0] }
 0x367   : > { %v4578_v44 = vld [vmem:[#allocation14 + $0x1f4] sm:$0xf] }
 0x368   : > { %2646 = vmatmul.bf16.gmra.mxu1 %v5818_v11  ;;  %2704 = vmatmul.bf16.gmra.mxu3 %v5818_v11 }
 0x369   : > { %v1980_v43 = vpop.f32.mrf.mxu3  ;;  %2895 = vmatpush.bf16.msra.mxu2 %v4346_v13  ;;  %2923 = vmatpush.bf16.msra.mxu3 %v4182_v31  ;;  %v4299_v13 = vld [vmem:[#allocation14 + $0x268] sm:$0xf0] }
 0x36a   : > { %v1981_v19 = vadd.f32 %v1980_v43, %v5797_v29  ;;  %v4599_v43 = vld [vmem:[#allocation14 + $0x294] sm:$0xf0]  ;;  %2865 = vmatpush.bf16.msrb.mxu1 %v4178_v54  ;;  %v5859_v31 = vor.u32 %v4590_v34, %v4299_v13  ;;  %v4059_v54 = vld [vmem:[#allocation14 + $0x88] sm:$0xf0] }
 0x36b   : > { %v2011_v50 = vpop.f32.mrf.mxu0  ;;  %v4322_v32 = vor.u32 %v4599_v43, %v4321_v51  ;;  %v4539_v43 = vld [vmem:[#allocation14 + $0xb4] sm:$0xf0] }
 0x36c   : > { %v2012_v26 = vadd.f32 %v2011_v50, %v5794_v55  ;;  %v2027_v36 = vmax.f32 %v1981_v19, 0.0  ;;  %v4153_v50 = vld [vmem:[#allocation14 + $0x130] sm:$0xf] }
 0x36d   : > { %2896 = vmatpush.bf16.msra.mxu2 %v4322_v32  ;;  %v4154_v28 = vor.u32 %v4557_v38, %v4153_v50  ;;  %v4251_v32 = vld [vmem:[#allocation14 + $0x208] sm:$0xf0] }
 0x36e   : > { %v2030_v5 = vmax.f32 %v2012_v26, 0.0  ;;  %v4131_v26 = vld [vmem:[#allocation14 + $0x118] sm:$0xf0] }
 0x36f   : > { %v4134_v59 = vor.u32 %v4548_v61, %v4131_v26  ;;  %2866 = vmatpush.bf16.msrb.mxu1 %v4154_v28  ;;  %v4533_v28 = vld [vmem:[#allocation14 + $0x84] sm:$0xf0]  ;;  %v4566_v26 = vld [vmem:[#allocation14 + $0x194] sm:$0xf] }
 0x370   : > { %v5825_v47 = vpack.c.bf16 %v2030_v5, %v2028_v58  ;;  %v4273_v58 = vld [vmem:[#allocation14 + $0x220] sm:$0xf]  ;;  %v4587_v5 = vld [vmem:[#allocation14 + $0x234] sm:$0xf0] }
 0x371   : > { %v1982_v3 = vpop.f32.mrf.mxu3  ;;  %2897 = vmatpush.bf16.msra.mxu2 %v4298_v52  ;;  %v4274_v19 = vor.u32 %v4587_v5, %v4273_v58  ;;  %v4057_v52 = vld [vmem:[#allocation14 + $0x70] sm:$0xf]  ;;  %v4035_v58 = vld [vmem:[#allocation14 + $0x58] sm:$0xf0]  ;;  %v4033_v5 = vld [vmem:[#allocation14 + $0x40] sm:$0xf] }
 0x372   : > { %v1983_v40 = vadd.f32 %v1982_v3, %v5797_v29  ;;  %2680 = vmatmul.bf16.gmra.mxu2 %v5825_v47  ;;  %2738 = vmatmul.bf16.gmra.mxu0 %v5825_v47  ;;  %v4551_v3 = vld [vmem:[#allocation14 + $0x114] sm:$0xf0]  ;;  %v4058_v61 = vor.u32 %v4533_v28, %v4057_v52 }
 0x373   : > { %v2014_v18 = vpop.f32.mrf.mxu0  ;;  %v4130_v4 = vor.u32 %v4551_v3, %v4129_v63  ;;  %v4038_v63 = vor.u32 %v4524_v24, %v4035_v58 }
 0x374   : > { %v2029_v60 = vmax.f32 %v1983_v40, 0.0  ;;  %v2015_v53 = vadd.f32 %v2014_v18, %v5794_v55  ;;  %v4602_v40 = vld [vmem:[#allocation14 + $0x2b4] sm:$0xf] }
 0x375   : > { %v5851_v9 = vor.u32 %v4602_v40, %v4347_v7  ;;  %2898 = vmatpush.bf16.msra.mxu2 %v4274_v19  ;;  %2867 = vmatpush.bf16.msrb.mxu1 %v4130_v4  ;;  %v4542_v18 = vld [vmem:[#allocation14 + $0xd4] sm:$0xf]  ;;  %v4527_v19 = vld [vmem:[#allocation14 + $0x54] sm:$0xf0]  ;;  %v4009_v40 = vld [vmem:[#allocation14 + $0x10] sm:$0xf] }
 0x376   : > { %v5830_v6 = vpack.c.bf16 %v2029_v60, %v2027_v36  ;;  %v2032_v33 = vmax.f32 %v2015_v53, 0.0  ;;  %v4110_v20 = vor.u32 %v4542_v18, %v4107_v37  ;;  %v4596_v36 = vld [vmem:[#allocation14 + $0x284] sm:$0xf]  ;;  %v4323_v60 = vld [vmem:[#allocation14 + $0x298] sm:$0xf0]  ;;  %v4034_v3 = vor.u32 %v4527_v19, %v4033_v5 }
 0x377   : > { %2953 = vmatpush.bf16.msrb.mxu0 %v5851_v9  ;;  %v5856_v22 = vor.u32 %v4596_v36, %v4323_v60  ;;  %v4083_v53 = vld [vmem:[#allocation14 + $0xb8] sm:$0xf0]  ;;  %v4521_v7 = vld [vmem:[#allocation14 + $0x24] sm:$0xf0]  ;;  %v4518_v18 = vld [vmem:[#allocation14 + $0x14] sm:$0xf] }
 0x378   : > { %2651 = vmatmul.bf16.gmra.mxu1 %v5830_v6  ;;  %2709 = vmatmul.bf16.gmra.mxu3 %v5830_v6  ;;  %v4010_v4 = vor.u32 %v4521_v7, %v4009_v40  ;;  %v4011_v37 = vld [vmem:[#allocation14 + $0x28] sm:$0xf0] }
 0x379   : > { %v1985_v48 = vpop.f32.mrf.mxu3  ;;  %2899 = vmatpush.bf16.msra.mxu2 %v4250_v15  ;;  %v4014_v23 = vor.u32 %v4518_v18, %v4011_v37 }
 0x37a   : > { %v1986_v14 = vadd.f32 %v1985_v48, %v5797_v29  ;;  %v4106_v48 = vor.u32 %v4545_v30, %v4105_v39 }
 0x37b   : > { %v2016_v16 = vpop.f32.mrf.mxu0  ;;  %2954 = vmatpush.bf16.msrb.mxu0 %v5856_v22 }
 0x37c   : > { %v2017_v17 = vadd.f32 %v2016_v16, %v5794_v55  ;;  %v2031_v55 = vmax.f32 %v1986_v14, 0.0  ;;  %v4086_v16 = vor.u32 %v4536_v8, %v4083_v53  ;;  %2868 = vmatpush.bf16.msrb.mxu1 %v4106_v48  ;;  %v4225_v14 = vld [vmem:[#allocation14 + $0x1c0] sm:$0xf] }
 0x37e   : > { %v2034_v27 = vmax.f32 %v2017_v17, 0.0  ;;  %v4584_v17 = vld [vmem:[#allocation14 + $0x224] sm:$0xf] }
 0x37f   : > { %2955 = vmatpush.bf16.msrb.mxu0 %v5859_v31 }
 0x380   : > { %v5837_v0 = vpack.c.bf16 %v2034_v27, %v2032_v33  ;;  %v4275_v33 = vld [vmem:[#allocation14 + $0x238] sm:$0xf0] }
 0x381   : > { %v1987_v21 = vpop.f32.mrf.mxu3  ;;  %v4278_v27 = vor.u32 %v4584_v17, %v4275_v33 }
 0x382   : > { %v1988_v12 = vadd.f32 %v1987_v21, %v5797_v29  ;;  %2685 = vmatmul.bf16.gmra.mxu2 %v5837_v0  ;;  %2743 = vmatmul.bf16.gmra.mxu0 %v5837_v0  ;;  %v4554_v29 = vld [vmem:[#allocation14 + $0x134] sm:$0xf]  ;;  %v4575_v21 = vld [vmem:[#allocation14 + $0x1d4] sm:$0xf0] }
 0x383   : > { %v4158_v45 = vor.u32 %v4554_v29, %v4155_v41  ;;  %v4226_v51 = vor.u32 %v4575_v21, %v4225_v14  ;;  %2956 = vmatpush.bf16.msrb.mxu0 %v4278_v27  ;;  %v4201_v29 = vld [vmem:[#allocation14 + $0x190] sm:$0xf] }
 0x384   : > { %v2033_v49 = vmax.f32 %v1988_v12, 0.0  ;;  %v4081_v12 = vld [vmem:[#allocation14 + $0xa0] sm:$0xf]  ;;  %v4202_v50 = vor.u32 %v4569_v57, %v4201_v29 }
 0x385   : > { %2924 = vmatpush.bf16.msra.mxu3 %v4158_v45  ;;  %v4082_v46 = vor.u32 %v4539_v43, %v4081_v12  ;;  %2900 = vmatpush.bf16.msra.mxu2 %v4226_v51  ;;  %v4572_v45 = vld [vmem:[#allocation14 + $0x1c4] sm:$0xf] }
 0x386   : > { %v5842_v25 = vpack.c.bf16 %v2033_v49, %v2031_v55  ;;  %v4254_v55 = vor.u32 %v4578_v44, %v4251_v32  ;;  %v4530_v49 = vld [vmem:[#allocation14 + $0x74] sm:$0xf]  ;;  %v4230_v38 = vor.u32 %v4572_v45, %v4227_v1 }
 0x387   : > { %2869 = vmatpush.bf16.msrb.mxu1 %v4082_v46  ;;  %v4062_v41 = vor.u32 %v4530_v49, %v4059_v54 }
 0x388   : > { %2656 = vmatmul.bf16.gmra.mxu1 %v5842_v25  ;;  %2714 = vmatmul.bf16.gmra.mxu3 %v5842_v25 }
 0x389   : > { %2925 = vmatpush.bf16.msra.mxu3 %v4134_v59  ;;  %2957 = vmatpush.bf16.msrb.mxu0 %v4254_v55  ;;  %v4203_v59 = vld [vmem:[#allocation14 + $0x1a8] sm:$0xf0] }
 0x38a   : > { %2901 = vmatpush.bf16.msra.mxu2 %v4202_v50  ;;  %v4206_v62 = vor.u32 %v4566_v26, %v4203_v59 }
 0x38b   : > { %2870 = vmatpush.bf16.msrb.mxu1 %v4058_v61 }
 0x38d   : > { %2926 = vmatpush.bf16.msra.mxu3 %v4110_v20  ;;  %2958 = vmatpush.bf16.msrb.mxu0 %v4230_v38 }
 0x38f   : > { %2871 = vmatpush.bf16.msrb.mxu1 %v4034_v3 }
 0x391   : > { %2927 = vmatpush.bf16.msra.mxu3 %v4086_v16  ;;  %2959 = vmatpush.bf16.msrb.mxu0 %v4206_v62 }
 0x392   : > { %2786 = vmatmul.bf16.vlgmr.msrb.gmra.mxu2 %v5801_v56  ;;  %2844 = vmatmul.bf16.vlgmr.msra.gmra.mxu0 %v5801_v56 }
 0x393   : > { %4620 = vmatpush.bf16.msrb.mxu2 %v5846_v35  ;;  %2872 = vmatpush.bf16.msrb.mxu1 %v4010_v4 }
 0x395   : > { %2928 = vmatpush.bf16.msra.mxu3 %v4062_v41 }
 0x397   : > { %4621 = vmatpush.bf16.msrb.mxu2 %v5851_v9  ;;  %v5881_v9 = vld [vmem:[%s6085_s14] sm:$0x3f] }
 0x398   : > { %2757 = vmatmul.bf16.vlgmr.msra.gmra.mxu1 %v5806_v42  ;;  %2815 = vmatmul.bf16.vlgmr.msrb.gmra.mxu3 %v5806_v42  ;;  %v5886_v20 = vperm.slane %v5881_v9, 0  ;;  %v5892_v39 = vperm.slane %v5881_v9, 1 }
 0x399   : > { %2929 = vmatpush.bf16.msra.mxu3 %v4038_v63 }
 0x39b   : > { %4622 = vmatpush.bf16.msrb.mxu2 %v5856_v22 }
 0x39d   : > { %2930 = vmatpush.bf16.msra.mxu3 %v4014_v23 }
 0x39f   : > { %4623 = vmatpush.bf16.msrb.mxu2 %v5859_v31 }
 0x3a2   : > { %2791 = vmatmul.bf16.gmra.mxu2 %v5813_v2  ;;  %2849 = vmatmul.bf16.gmra.mxu0 %v5813_v2 }
 0x3a3   : > { %4624 = vmatpush.bf16.msrb.mxu2 %v4278_v27 }
 0x3a7   : > { %4625 = vmatpush.bf16.msrb.mxu2 %v4254_v55 }
 0x3a8   : > { %2762 = vmatmul.bf16.gmra.mxu1 %v5818_v11  ;;  %2820 = vmatmul.bf16.gmra.mxu3 %v5818_v11 }
 0x3ab   : > { %4626 = vmatpush.bf16.msrb.mxu2 %v4230_v38 }
 0x3af   : > { %4627 = vmatpush.bf16.msrb.mxu2 %v4206_v62 }
 0x3b2   : > { %2796 = vmatmul.bf16.gmra.mxu2 %v5825_v47  ;;  %2854 = vmatmul.bf16.gmra.mxu0 %v5825_v47 }
 0x3b8   : > { %2767 = vmatmul.bf16.gmra.mxu1 %v5830_v6  ;;  %2825 = vmatmul.bf16.gmra.mxu3 %v5830_v6 }
 0x3c2   : > { %2801 = vmatmul.bf16.gmra.mxu2 %v5837_v0  ;;  %2859 = vmatmul.bf16.gmra.mxu0 %v5837_v0 }
 0x3c8   : > { %2772 = vmatmul.bf16.gmra.mxu1 %v5842_v25  ;;  %2830 = vmatmul.bf16.gmra.mxu3 %v5842_v25 }
 0x3cf   : > { %v2729_v35 = vpop.f32.mrf.mxu0 }
 0x3d2   : > { %2902 = vmatmul.bf16.vlgmr.msra.gmra.mxu2 %v5801_v56  ;;  %2960 = vmatmul.bf16.vlgmr.msrb.gmra.mxu0 %v5801_v56 }
 0x3d5   : > { %v2642_v10 = vpop.f32.mrf.mxu1  ;;  %v2671_v36 = vpop.f32.mrf.mxu2 }
 0x3d6   : > { %v2643_v60 = vadd.f32 %v2642_v10, %v5886_v20 }
 0x3d7   : > { %v2731_v15 = vpop.f32.mrf.mxu0 }
 0x3d8   : > { %v2672_v22 = vadd.f32 %v2671_v36, %v2643_v60  ;;  %2873 = vmatmul.bf16.vlgmr.msrb.gmra.mxu1 %v5806_v42  ;;  %2931 = vmatmul.bf16.vlgmr.msra.gmra.mxu3 %v5806_v42 }
 0x3da   : > { %v2981_v30 = vsub.f32 0.0, %v2672_v22 }
 0x3db   : > { %v2700_v34 = vpop.f32.mrf.mxu3 }
 0x3dc   : > { %v3029_v48 = vmul.f32 1.442695, %v2981_v30  ;;  %v2701_v56 = vadd.f32 %v2700_v34, %v5892_v39 }
 0x3dd   : > { %v2644_v13 = vpop.f32.mrf.mxu1  ;;  %v2673_v8 = vpop.f32.mrf.mxu2 }
 0x3de   : > { %4761 = vpow2.f32 %v3029_v48  ;;  %v2730_v53 = vadd.f32 %v2729_v35, %v2701_v56  ;;  %v2645_v31 = vadd.f32 %v2644_v13, %v5886_v20 }
 0x3df   : > { %v2734_v16 = vpop.f32.mrf.mxu0 }
 0x3e0   : > { %v2982_v17 = vsub.f32 0.0, %v2730_v53  ;;  %v2674_v33 = vadd.f32 %v2673_v8, %v2645_v31 }
 0x3e2   : > { %v3031_v27 = vmul.f32 1.442695, %v2982_v17  ;;  %v2987_v14 = vsub.f32 0.0, %v2674_v33  ;;  %2907 = vmatmul.bf16.gmra.mxu2 %v5813_v2  ;;  %2965 = vmatmul.bf16.gmra.mxu0 %v5813_v2 }
 0x3e3   : > { %v2702_v42 = vpop.f32.mrf.mxu3 }
 0x3e4   : > { %v4762_v21 = vpop.eup %4761  ;;  %4763 = vpow2.f32 %v3031_v27  ;;  %v3041_v12 = vmul.f32 1.442695, %v2987_v14  ;;  %v2703_v51 = vadd.f32 %v2702_v42, %v5892_v39 }
 0x3e5   : > { %v3125_v43 = vadd.f32 1.0, %v4762_v21  ;;  %v2647_v44 = vpop.f32.mrf.mxu1  ;;  %v2676_v32 = vpop.f32.mrf.mxu2 }
 0x3e6   : > { %4765 = vpow2.f32 %v3041_v12  ;;  %v2732_v46 = vadd.f32 %v2731_v15, %v2703_v51  ;;  %v2648_v55 = vadd.f32 %v2647_v44, %v5886_v20 }
 0x3e7   : > { %4767 = vrcp.f32 %v3125_v43  ;;  %v2736_v49 = vpop.f32.mrf.mxu0 }
 0x3e8   : > { %v2988_v54 = vsub.f32 0.0, %v2732_v46  ;;  %v2677_v29 = vadd.f32 %v2676_v32, %v2648_v55  ;;  %2878 = vmatmul.bf16.gmra.mxu1 %v5818_v11  ;;  %2936 = vmatmul.bf16.gmra.mxu3 %v5818_v11 }
 0x3ea   : > { %v4764_v2 = vpop.eup %4763  ;;  %v3043_v41 = vmul.f32 1.442695, %v2988_v54  ;;  %v2993_v57 = vsub.f32 0.0, %v2677_v29 }
 0x3eb   : > { %v3126_v45 = vadd.f32 1.0, %v4764_v2  ;;  %v2705_v1 = vpop.f32.mrf.mxu3 }
 0x3ec   : > { %v4766_v50 = vpop.eup %4765  ;;  %4769 = vpow2.f32 %v3043_v41  ;;  %v3053_v38 = vmul.f32 1.442695, %v2993_v57  ;;  %v2706_v52 = vadd.f32 %v2705_v1, %v5892_v39 }
 0x3ed   : > { %v4768_v28 = vpop.eup %4767  ;;  %4771 = vrcp.f32 %v3126_v45  ;;  %v3131_v61 = vadd.f32 1.0, %v4766_v50  ;;  %v2649_v26 = vpop.f32.mrf.mxu1 }
 0x3ee   : > { %v2678_v59 = vpop.f32.mrf.mxu2  ;;  %3221 = vst [vmem:[%s5905_s1] sm:$0xff] %v4768_v28  ;;  %4773 = vpow2.f32 %v3053_v38  ;;  %v2735_v11 = vadd.f32 %v2734_v16, %v2706_v52  ;;  %v2650_v62 = vadd.f32 %v2649_v26, %v5886_v20 }
 0x3ef   : > { %4775 = vrcp.f32 %v3131_v61  ;;  %v2739_v24 = vpop.f32.mrf.mxu0 }
 0x3f0   : > { %v2994_v58 = vsub.f32 0.0, %v2735_v11  ;;  %v2679_v5 = vadd.f32 %v2678_v59, %v2650_v62 }
 0x3f2   : > { %v4770_v63 = vpop.eup %4769  ;;  %v3055_v19 = vmul.f32 1.442695, %v2994_v58  ;;  %v2999_v3 = vsub.f32 0.0, %v2679_v5  ;;  %2912 = vmatmul.bf16.gmra.mxu2 %v5825_v47  ;;  %2970 = vmatmul.bf16.gmra.mxu0 %v5825_v47 }
 0x3f3   : > { %v4772_v40 = vpop.eup %4771  ;;  %v3132_v7 = vadd.f32 1.0, %v4770_v63  ;;  %v2707_v4 = vpop.f32.mrf.mxu3 }
 0x3f4   : > { %v4774_v18 = vpop.eup %4773  ;;  %3222 = vst [vmem:[%s5905_s1 + $0x8] sm:$0xff] %v4772_v40  ;;  %4777 = vpow2.f32 %v3055_v19  ;;  %v3065_v37 = vmul.f32 1.442695, %v2999_v3  ;;  %v2708_v23 = vadd.f32 %v2707_v4, %v5892_v39 }
 0x3f5   : > { %v4776_v35 = vpop.eup %4775  ;;  %4779 = vrcp.f32 %v3132_v7  ;;  %v3137_v10 = vadd.f32 1.0, %v4774_v18  ;;  %v2652_v36 = vpop.f32.mrf.mxu1 }
 0x3f6   : > { %v2681_v60 = vpop.f32.mrf.mxu2  ;;  %3227 = vst [vmem:[%s5905_s1 + $0x30] sm:$0xff] %v4776_v35  ;;  %4781 = vpow2.f32 %v3065_v37  ;;  %v2737_v15 = vadd.f32 %v2736_v49, %v2708_v23  ;;  %v2653_v47 = vadd.f32 %v2652_v36, %v5886_v20 }
 0x3f7   : > { %4783 = vrcp.f32 %v3137_v10  ;;  %v2741_v22 = vpop.f32.mrf.mxu0 }
 0x3f8   : > { %v3000_v30 = vsub.f32 0.0, %v2737_v15  ;;  %v2682_v34 = vadd.f32 %v2681_v60, %v2653_v47  ;;  %2883 = vmatmul.bf16.gmra.mxu1 %v5830_v6  ;;  %2941 = vmatmul.bf16.gmra.mxu3 %v5830_v6 }
 0x3fa   : > { %v4778_v48 = vpop.eup %4777  ;;  %v3067_v56 = vmul.f32 1.442695, %v3000_v30  ;;  %v3005_v13 = vsub.f32 0.0, %v2682_v34 }
 0x3fb   : > { %v4780_v8 = vpop.eup %4779  ;;  %v3138_v53 = vadd.f32 1.0, %v4778_v48  ;;  %v2710_v31 = vpop.f32.mrf.mxu3 }
 0x3fc   : > { %v4782_v16 = vpop.eup %4781  ;;  %3228 = vst [vmem:[%s5905_s1 + $0x38] sm:$0xff] %v4780_v8  ;;  %4785 = vpow2.f32 %v3067_v56  ;;  %v3077_v17 = vmul.f32 1.442695, %v3005_v13  ;;  %v2711_v33 = vadd.f32 %v2710_v31, %v5892_v39 }
 0x3fd   : > { %v4784_v27 = vpop.eup %4783  ;;  %4787 = vrcp.f32 %v3138_v53  ;;  %v3143_v14 = vadd.f32 1.0, %v4782_v16  ;;  %v2654_v42 = vpop.f32.mrf.mxu1 }
 0x3fe   : > { %v2683_v21 = vpop.f32.mrf.mxu2  ;;  %3233 = vst [vmem:[%s5905_s1 + $0x60] sm:$0xff] %v4784_v27  ;;  %4789 = vpow2.f32 %v3077_v17  ;;  %v2740_v6 = vadd.f32 %v2739_v24, %v2711_v33  ;;  %v2655_v12 = vadd.f32 %v2654_v42, %v5886_v20  ;;  %v5941_v42 = vperm.slane %v5881_v9, 3 }
 0x3ff   : > { %4791 = vrcp.f32 %v3143_v14  ;;  %v2744_v51 = vpop.f32.mrf.mxu0 }
 0x400   : > { %v3006_v43 = vsub.f32 0.0, %v2740_v6  ;;  %v2684_v44 = vadd.f32 %v2683_v21, %v2655_v12 }
 0x402   : > { %v4786_v32 = vpop.eup %4785  ;;  %v3079_v46 = vmul.f32 1.442695, %v3006_v43  ;;  %v3011_v55 = vsub.f32 0.0, %v2684_v44  ;;  %2917 = vmatmul.bf16.gmra.mxu2 %v5837_v0 }
 0x403   : > { %v4788_v49 = vpop.eup %4787  ;;  %v3144_v54 = vadd.f32 1.0, %v4786_v32  ;;  %v2712_v29 = vpop.f32.mrf.mxu3 }
 0x404   : > { %v4790_v2 = vpop.eup %4789  ;;  %3234 = vst [vmem:[%s5905_s1 + $0x68] sm:$0xff] %v4788_v49  ;;  %4793 = vpow2.f32 %v3079_v46  ;;  %v3089_v41 = vmul.f32 1.442695, %v3011_v55  ;;  %v2713_v57 = vadd.f32 %v2712_v29, %v5892_v39 }
 0x405   : > { %v4792_v45 = vpop.eup %4791  ;;  %4795 = vrcp.f32 %v3144_v54  ;;  %v3149_v1 = vadd.f32 1.0, %v4790_v2  ;;  %v2657_v50 = vpop.f32.mrf.mxu1 }
 0x406   : > { %v2686_v38 = vpop.f32.mrf.mxu2  ;;  %3239 = vst [vmem:[%s5905_s1 + $0x90] sm:$0xff] %v4792_v45  ;;  %4797 = vpow2.f32 %v3089_v41  ;;  %v2742_v52 = vadd.f32 %v2741_v22, %v2713_v57  ;;  %v2658_v28 = vadd.f32 %v2657_v50, %v5886_v20  ;;  %v5934_v22 = vperm.slane %v5881_v9, 2 }
 0x407   : > { %4799 = vrcp.f32 %v3149_v1  ;;  %v2746_v61 = vpop.f32.mrf.mxu0 }
 0x408   : > { %v3012_v26 = vsub.f32 0.0, %v2742_v52  ;;  %v2687_v59 = vadd.f32 %v2686_v38, %v2658_v28  ;;  %2888 = vmatmul.bf16.gmra.mxu1 %v5842_v25  ;;  %2946 = vmatmul.bf16.gmra.mxu3 %v5842_v25 }
 0x40a   : > { %v4794_v11 = vpop.eup %4793  ;;  %v3091_v62 = vmul.f32 1.442695, %v3012_v26  ;;  %v3017_v24 = vsub.f32 0.0, %v2687_v59 }
 0x40b   : > { %v4796_v58 = vpop.eup %4795  ;;  %v3150_v5 = vadd.f32 1.0, %v4794_v11  ;;  %v2715_v63 = vpop.f32.mrf.mxu3 }
 0x40c   : > { %v4798_v19 = vpop.eup %4797  ;;  %3240 = vst [vmem:[%s5905_s1 + $0x98] sm:$0xff] %v4796_v58  ;;  %4801 = vpow2.f32 %v3091_v62  ;;  %v3101_v3 = vmul.f32 1.442695, %v3017_v24  ;;  %v2716_v40 = vadd.f32 %v2715_v63, %v5892_v39 }
 0x40d   : > { %v4800_v7 = vpop.eup %4799  ;;  %4803 = vrcp.f32 %v3150_v5  ;;  %v3155_v4 = vadd.f32 1.0, %v4798_v19  ;;  %v2659_v18 = vpop.f32.mrf.mxu1 }
 0x40e   : > { %v2688_v37 = vpop.f32.mrf.mxu2  ;;  %3245 = vst [vmem:[%s5905_s1 + $0xc0] sm:$0xff] %v4800_v7  ;;  %4805 = vpow2.f32 %v3101_v3  ;;  %v2745_v25 = vadd.f32 %v2744_v51, %v2716_v40  ;;  %v2660_v23 = vadd.f32 %v2659_v18, %v5886_v20 }
 0x40f   : > { %4807 = vrcp.f32 %v3155_v4  ;;  %v2845_v35 = vpop.f32.mrf.mxu0 }
 0x410   : > { %v3018_v10 = vsub.f32 0.0, %v2745_v25  ;;  %v2689_v36 = vadd.f32 %v2688_v37, %v2660_v23 }
 0x412   : > { %v4802_v60 = vpop.eup %4801  ;;  %v3103_v15 = vmul.f32 1.442695, %v3018_v10  ;;  %v3023_v47 = vsub.f32 0.0, %v2689_v36  ;;  %2975 = vmatmul.bf16.vlgmr.msrb.gmra.mxu2 %v5837_v0 }
 0x413   : > { %v4804_v30 = vpop.eup %4803  ;;  %v3156_v34 = vadd.f32 1.0, %v4802_v60  ;;  %v2717_v48 = vpop.f32.mrf.mxu3 }
 0x414   : > { %v4806_v56 = vpop.eup %4805  ;;  %3246 = vst [vmem:[%s5905_s1 + $0xc8] sm:$0xff] %v4804_v30  ;;  %4809 = vpow2.f32 %v3103_v15  ;;  %v3113_v20 = vmul.f32 1.442695, %v3023_v47  ;;  %v2718_v13 = vadd.f32 %v2717_v48, %v5892_v39 }
 0x415   : > { %v4808_v8 = vpop.eup %4807  ;;  %4811 = vrcp.f32 %v3156_v34  ;;  %v3161_v53 = vadd.f32 1.0, %v4806_v56  ;;  %v2758_v31 = vpop.f32.mrf.mxu1 }
 0x416   : > { %v2787_v16 = vpop.f32.mrf.mxu2  ;;  %3251 = vst [vmem:[%s5905_s1 + $0xf0] sm:$0xff] %v4808_v8  ;;  %4813 = vpow2.f32 %v3113_v20  ;;  %v2747_v0 = vadd.f32 %v2746_v61, %v2718_v13  ;;  %v2759_v17 = vadd.f32 %v2758_v31, %v5934_v22 }
 0x417   : > { %4815 = vrcp.f32 %v3161_v53  ;;  %v2847_v33 = vpop.f32.mrf.mxu0 }
 0x418   : > { %v3024_v27 = vsub.f32 0.0, %v2747_v0  ;;  %v2788_v14 = vadd.f32 %v2787_v16, %v2759_v17 }
 0x41a   : > { %v4810_v21 = vpop.eup %4809  ;;  %v3115_v39 = vmul.f32 1.442695, %v3024_v27  ;;  %v2983_v6 = vsub.f32 0.0, %v2788_v14 }
 0x41b   : > { %v4812_v12 = vpop.eup %4811  ;;  %v3162_v51 = vadd.f32 1.0, %v4810_v21  ;;  %v2816_v43 = vpop.f32.mrf.mxu3 }
 0x41c   : > { %v4814_v44 = vpop.eup %4813  ;;  %3252 = vst [vmem:[%s5905_s1 + $0xf8] sm:$0xff] %v4812_v12  ;;  %4817 = vpow2.f32 %v3115_v39  ;;  %v3033_v32 = vmul.f32 1.442695, %v2983_v6  ;;  %v2817_v46 = vadd.f32 %v2816_v43, %v5941_v42 }
 0x41d   : > { %v4816_v55 = vpop.eup %4815  ;;  %4819 = vrcp.f32 %v3162_v51  ;;  %v3167_v49 = vadd.f32 1.0, %v4814_v44  ;;  %v2760_v54 = vpop.f32.mrf.mxu1 }
 0x41e   : > { %v2789_v29 = vpop.f32.mrf.mxu2  ;;  %3257 = vst [vmem:[%s5905_s1 + $0x120] sm:$0xff] %v4816_v55  ;;  %4821 = vpow2.f32 %v3033_v32  ;;  %v2846_v2 = vadd.f32 %v2845_v35, %v2817_v46  ;;  %v2761_v41 = vadd.f32 %v2760_v54, %v5934_v22 }
 0x41f   : > { %4823 = vrcp.f32 %v3167_v49  ;;  %v2850_v57 = vpop.f32.mrf.mxu0 }
 0x420   : > { %v2984_v45 = vsub.f32 0.0, %v2846_v2  ;;  %v2790_v1 = vadd.f32 %v2789_v29, %v2761_v41 }
 0x422   : > { %v4818_v50 = vpop.eup %4817  ;;  %v3035_v38 = vmul.f32 1.442695, %v2984_v45  ;;  %v2989_v52 = vsub.f32 0.0, %v2790_v1 }
 0x423   : > { %v4820_v28 = vpop.eup %4819  ;;  %v3168_v61 = vadd.f32 1.0, %v4818_v50  ;;  %v2818_v26 = vpop.f32.mrf.mxu3 }
 0x424   : > { %v4822_v59 = vpop.eup %4821  ;;  %3258 = vst [vmem:[%s5905_s1 + $0x128] sm:$0xff] %v4820_v28  ;;  %4825 = vpow2.f32 %v3035_v38  ;;  %v3045_v11 = vmul.f32 1.442695, %v2989_v52  ;;  %v2819_v62 = vadd.f32 %v2818_v26, %v5941_v42 }
 0x425   : > { %v4824_v24 = vpop.eup %4823  ;;  %4827 = vrcp.f32 %v3168_v61  ;;  %v3127_v58 = vadd.f32 1.0, %v4822_v59  ;;  %v2763_v5 = vpop.f32.mrf.mxu1 }
 0x426   : > { %v2792_v63 = vpop.f32.mrf.mxu2  ;;  %3263 = vst [vmem:[%s5905_s1 + $0x150] sm:$0xff] %v4824_v24  ;;  %4829 = vpow2.f32 %v3045_v11  ;;  %v2848_v19 = vadd.f32 %v2847_v33, %v2819_v62  ;;  %v2764_v3 = vadd.f32 %v2763_v5, %v5934_v22 }
 0x427   : > { %4831 = vrcp.f32 %v3127_v58  ;;  %v2852_v40 = vpop.f32.mrf.mxu0 }
 0x428   : > { %v2990_v7 = vsub.f32 0.0, %v2848_v19  ;;  %v2793_v4 = vadd.f32 %v2792_v63, %v2764_v3 }
 0x42a   : > { %v4826_v18 = vpop.eup %4825  ;;  %v3047_v37 = vmul.f32 1.442695, %v2990_v7  ;;  %v2995_v25 = vsub.f32 0.0, %v2793_v4 }
 0x42b   : > { %v4828_v23 = vpop.eup %4827  ;;  %v3128_v35 = vadd.f32 1.0, %v4826_v18  ;;  %v2821_v10 = vpop.f32.mrf.mxu3 }
 0x42c   : > { %v4830_v36 = vpop.eup %4829  ;;  %3264 = vst [vmem:[%s5905_s1 + $0x158] sm:$0xff] %v4828_v23  ;;  %4833 = vpow2.f32 %v3047_v37  ;;  %v3057_v60 = vmul.f32 1.442695, %v2995_v25  ;;  %v2822_v15 = vadd.f32 %v2821_v10, %v5941_v42 }
 0x42d   : > { %v4832_v47 = vpop.eup %4831  ;;  %4835 = vrcp.f32 %v3128_v35  ;;  %v3133_v30 = vadd.f32 1.0, %v4830_v36  ;;  %v2765_v34 = vpop.f32.mrf.mxu1 }
 0x42e   : > { %v2794_v48 = vpop.f32.mrf.mxu2  ;;  %3223 = vst [vmem:[%s5905_s1 + $0x10] sm:$0xff] %v4832_v47  ;;  %4837 = vpow2.f32 %v3057_v60  ;;  %v2851_v56 = vadd.f32 %v2850_v57, %v2822_v15  ;;  %v2766_v20 = vadd.f32 %v2765_v34, %v5934_v22 }
 0x42f   : > { %4839 = vrcp.f32 %v3133_v30  ;;  %v2855_v13 = vpop.f32.mrf.mxu0 }
 0x430   : > { %v2996_v8 = vsub.f32 0.0, %v2851_v56  ;;  %v2795_v53 = vadd.f32 %v2794_v48, %v2766_v20 }
 0x432   : > { %v4834_v31 = vpop.eup %4833  ;;  %v3059_v16 = vmul.f32 1.442695, %v2996_v8  ;;  %v3001_v0 = vsub.f32 0.0, %v2795_v53 }
 0x433   : > { %v4836_v17 = vpop.eup %4835  ;;  %v3134_v33 = vadd.f32 1.0, %v4834_v31  ;;  %v2823_v27 = vpop.f32.mrf.mxu3 }
 0x434   : > { %v4838_v14 = vpop.eup %4837  ;;  %3224 = vst [vmem:[%s5905_s1 + $0x18] sm:$0xff] %v4836_v17  ;;  %4841 = vpow2.f32 %v3059_v16  ;;  %v3069_v21 = vmul.f32 1.442695, %v3001_v0  ;;  %v2824_v39 = vadd.f32 %v2823_v27, %v5941_v42 }
 0x435   : > { %v4840_v6 = vpop.eup %4839  ;;  %4843 = vrcp.f32 %v3134_v33  ;;  %v3139_v12 = vadd.f32 1.0, %v4838_v14  ;;  %v2768_v51 = vpop.f32.mrf.mxu1 }
 0x436   : > { %v2797_v43 = vpop.f32.mrf.mxu2  ;;  %3229 = vst [vmem:[%s5905_s1 + $0x40] sm:$0xff] %v4840_v6  ;;  %4845 = vpow2.f32 %v3069_v21  ;;  %v2853_v44 = vadd.f32 %v2852_v40, %v2824_v39  ;;  %v2769_v32 = vadd.f32 %v2768_v51, %v5934_v22 }
 0x437   : > { %4847 = vrcp.f32 %v3139_v12  ;;  %v2857_v46 = vpop.f32.mrf.mxu0 }
 0x438   : > { %v3002_v55 = vsub.f32 0.0, %v2853_v44  ;;  %v2798_v49 = vadd.f32 %v2797_v43, %v2769_v32  ;;  %v5972_v32 = vperm.slane %v5881_v9, 4 }
 0x43a   : > { %v4842_v54 = vpop.eup %4841  ;;  %v3071_v29 = vmul.f32 1.442695, %v3002_v55  ;;  %v3007_v2 = vsub.f32 0.0, %v2798_v49 }
 0x43b   : > { %v4844_v41 = vpop.eup %4843  ;;  %v3140_v57 = vadd.f32 1.0, %v4842_v54  ;;  %v2826_v45 = vpop.f32.mrf.mxu3 }
 0x43c   : > { %v4846_v1 = vpop.eup %4845  ;;  %3230 = vst [vmem:[%s5905_s1 + $0x48] sm:$0xff] %v4844_v41  ;;  %4849 = vpow2.f32 %v3071_v29  ;;  %v3081_v50 = vmul.f32 1.442695, %v3007_v2  ;;  %v2827_v38 = vadd.f32 %v2826_v45, %v5941_v42 }
 0x43d   : > { %v4848_v52 = vpop.eup %4847  ;;  %4851 = vrcp.f32 %v3140_v57  ;;  %v3145_v28 = vadd.f32 1.0, %v4846_v1  ;;  %v2770_v61 = vpop.f32.mrf.mxu1 }
 0x43e   : > { %v2799_v26 = vpop.f32.mrf.mxu2  ;;  %3235 = vst [vmem:[%s5905_s1 + $0x70] sm:$0xff] %v4848_v52  ;;  %4853 = vpow2.f32 %v3081_v50  ;;  %v2856_v59 = vadd.f32 %v2855_v13, %v2827_v38  ;;  %v2771_v11 = vadd.f32 %v2770_v61, %v5934_v22 }
 0x43f   : > { %4855 = vrcp.f32 %v3145_v28  ;;  %v2860_v62 = vpop.f32.mrf.mxu0  ;;  %v5979_v28 = vperm.slane %v5881_v9, 5 }
 0x440   : > { %v3008_v24 = vsub.f32 0.0, %v2856_v59  ;;  %v2800_v58 = vadd.f32 %v2799_v26, %v2771_v11 }
 0x442   : > { %v4850_v5 = vpop.eup %4849  ;;  %v3083_v63 = vmul.f32 1.442695, %v3008_v24  ;;  %v3013_v19 = vsub.f32 0.0, %v2800_v58 }
 0x443   : > { %v4852_v3 = vpop.eup %4851  ;;  %v3146_v40 = vadd.f32 1.0, %v4850_v5  ;;  %v2828_v7 = vpop.f32.mrf.mxu3 }
 0x444   : > { %v4854_v4 = vpop.eup %4853  ;;  %3236 = vst [vmem:[%s5905_s1 + $0x78] sm:$0xff] %v4852_v3  ;;  %4857 = vpow2.f32 %v3083_v63  ;;  %v3093_v18 = vmul.f32 1.442695, %v3013_v19  ;;  %v2829_v37 = vadd.f32 %v2828_v7, %v5941_v42 }
 0x445   : > { %v4856_v25 = vpop.eup %4855  ;;  %4859 = vrcp.f32 %v3146_v40  ;;  %v3151_v23 = vadd.f32 1.0, %v4854_v4  ;;  %v2773_v35 = vpop.f32.mrf.mxu1 }
 0x446   : > { %v2802_v10 = vpop.f32.mrf.mxu2  ;;  %3241 = vst [vmem:[%s5905_s1 + $0xa0] sm:$0xff] %v4856_v25  ;;  %4861 = vpow2.f32 %v3093_v18  ;;  %v2858_v36 = vadd.f32 %v2857_v46, %v2829_v37  ;;  %v2774_v60 = vadd.f32 %v2773_v35, %v5934_v22 }
 0x447   : > { %4863 = vrcp.f32 %v3151_v23  ;;  %v2862_v30 = vpop.f32.mrf.mxu0 }
 0x448   : > { %v3014_v15 = vsub.f32 0.0, %v2858_v36  ;;  %v2803_v47 = vadd.f32 %v2802_v10, %v2774_v60 }
 0x44a   : > { %v4858_v34 = vpop.eup %4857  ;;  %v3095_v48 = vmul.f32 1.442695, %v3014_v15  ;;  %v3019_v56 = vsub.f32 0.0, %v2803_v47 }
 0x44b   : > { %v4860_v20 = vpop.eup %4859  ;;  %v3152_v13 = vadd.f32 1.0, %v4858_v34  ;;  %v2831_v8 = vpop.f32.mrf.mxu3 }
 0x44c   : > { %v4862_v53 = vpop.eup %4861  ;;  %3242 = vst [vmem:[%s5905_s1 + $0xa8] sm:$0xff] %v4860_v20  ;;  %4865 = vpow2.f32 %v3095_v48  ;;  %v3105_v31 = vmul.f32 1.442695, %v3019_v56  ;;  %v2832_v16 = vadd.f32 %v2831_v8, %v5941_v42 }
 0x44d   : > { %v4864_v0 = vpop.eup %4863  ;;  %4867 = vrcp.f32 %v3152_v13  ;;  %v3157_v17 = vadd.f32 1.0, %v4862_v53  ;;  %v2775_v33 = vpop.f32.mrf.mxu1 }
 0x44e   : > { %v2804_v27 = vpop.f32.mrf.mxu2  ;;  %3247 = vst [vmem:[%s5905_s1 + $0xd0] sm:$0xff] %v4864_v0  ;;  %4869 = vpow2.f32 %v3105_v31  ;;  %v2861_v14 = vadd.f32 %v2860_v62, %v2832_v16  ;;  %v2776_v21 = vadd.f32 %v2775_v33, %v5934_v22 }
 0x44f   : > { %4871 = vrcp.f32 %v3157_v17  ;;  %v2961_v44 = vpop.f32.mrf.mxu0 }
 0x450   : > { %v3020_v39 = vsub.f32 0.0, %v2861_v14  ;;  %v2805_v6 = vadd.f32 %v2804_v27, %v2776_v21 }
 0x452   : > { %v4866_v12 = vpop.eup %4865  ;;  %v3107_v51 = vmul.f32 1.442695, %v3020_v39  ;;  %v3025_v43 = vsub.f32 0.0, %v2805_v6 }
 0x453   : > { %v4868_v46 = vpop.eup %4867  ;;  %v3158_v55 = vadd.f32 1.0, %v4866_v12  ;;  %v2833_v49 = vpop.f32.mrf.mxu3 }
 0x454   : > { %v4870_v54 = vpop.eup %4869  ;;  %3248 = vst [vmem:[%s5905_s1 + $0xd8] sm:$0xff] %v4868_v46  ;;  %4873 = vpow2.f32 %v3107_v51  ;;  %v3117_v29 = vmul.f32 1.442695, %v3025_v43  ;;  %v2834_v22 = vadd.f32 %v2833_v49, %v5941_v42 }
 0x455   : > { %v4872_v2 = vpop.eup %4871  ;;  %4875 = vrcp.f32 %v3158_v55  ;;  %v3163_v41 = vadd.f32 1.0, %v4870_v54  ;;  %v2874_v57 = vpop.f32.mrf.mxu1 }
 0x456   : > { %v2903_v45 = vpop.f32.mrf.mxu2  ;;  %3253 = vst [vmem:[%s5905_s1 + $0x100] sm:$0xff] %v4872_v2  ;;  %4877 = vpow2.f32 %v3117_v29  ;;  %v2863_v1 = vadd.f32 %v2862_v30, %v2834_v22  ;;  %v2875_v50 = vadd.f32 %v2874_v57, %v5972_v32 }
 0x457   : > { %4879 = vrcp.f32 %v3163_v41  ;;  %v2963_v5 = vpop.f32.mrf.mxu0 }
 0x458   : > { %v3026_v38 = vsub.f32 0.0, %v2863_v1  ;;  %v2904_v52 = vadd.f32 %v2903_v45, %v2875_v50 }
 0x45a   : > { %v4874_v61 = vpop.eup %4873  ;;  %v3119_v26 = vmul.f32 1.442695, %v3026_v38  ;;  %v2985_v42 = vsub.f32 0.0, %v2904_v52 }
 0x45b   : > { %v4876_v59 = vpop.eup %4875  ;;  %v3164_v11 = vadd.f32 1.0, %v4874_v61  ;;  %v2932_v62 = vpop.f32.mrf.mxu3 }
 0x45c   : > { %v4878_v24 = vpop.eup %4877  ;;  %3254 = vst [vmem:[%s5905_s1 + $0x108] sm:$0xff] %v4876_v59  ;;  %4881 = vpow2.f32 %v3119_v26  ;;  %v3037_v58 = vmul.f32 1.442695, %v2985_v42  ;;  %v2933_v63 = vadd.f32 %v2932_v62, %v5979_v28 }
 0x45d   : > { %v4880_v19 = vpop.eup %4879  ;;  %4883 = vrcp.f32 %v3164_v11  ;;  %v3169_v3 = vadd.f32 1.0, %v4878_v24  ;;  %v2876_v40 = vpop.f32.mrf.mxu1 }
 0x45e   : > { %v2905_v9 = vpop.f32.mrf.mxu2  ;;  %3259 = vst [vmem:[%s5905_s1 + $0x130] sm:$0xff] %v4880_v19  ;;  %4885 = vpow2.f32 %v3037_v58  ;;  %v2962_v7 = vadd.f32 %v2961_v44, %v2933_v63  ;;  %v2877_v4 = vadd.f32 %v2876_v40, %v5972_v32 }
 0x45f   : > { %4887 = vrcp.f32 %v3169_v3  ;;  %v2966_v13 = vpop.f32.mrf.mxu0 }
 0x460   : > { %v2986_v18 = vsub.f32 0.0, %v2962_v7  ;;  %v2906_v37 = vadd.f32 %v2905_v9, %v2877_v4 }
 0x462   : > { %v4882_v25 = vpop.eup %4881  ;;  %v3039_v23 = vmul.f32 1.442695, %v2986_v18  ;;  %v2991_v35 = vsub.f32 0.0, %v2906_v37 }
 0x463   : > { %v4884_v10 = vpop.eup %4883  ;;  %v3170_v36 = vadd.f32 1.0, %v4882_v25  ;;  %v2934_v60 = vpop.f32.mrf.mxu3 }
 0x464   : > { %v4886_v15 = vpop.eup %4885  ;;  %3260 = vst [vmem:[%s5905_s1 + $0x138] sm:$0xff] %v4884_v10  ;;  %4889 = vpow2.f32 %v3039_v23  ;;  %v3049_v47 = vmul.f32 1.442695, %v2991_v35  ;;  %v2935_v30 = vadd.f32 %v2934_v60, %v5979_v28 }
 0x465   : > { %v4888_v34 = vpop.eup %4887  ;;  %4891 = vrcp.f32 %v3170_v36  ;;  %v3129_v48 = vadd.f32 1.0, %v4886_v15  ;;  %v2879_v56 = vpop.f32.mrf.mxu1 }
 0x466   : > { %v2908_v20 = vpop.f32.mrf.mxu2  ;;  %3265 = vst [vmem:[%s5905_s1 + $0x160] sm:$0xff] %v4888_v34  ;;  %4893 = vpow2.f32 %v3049_v47  ;;  %v2964_v8 = vadd.f32 %v2963_v5, %v2935_v30  ;;  %v2880_v53 = vadd.f32 %v2879_v56, %v5972_v32 }
 0x467   : > { %4895 = vrcp.f32 %v3129_v48  ;;  %v2968_v54 = vpop.f32.mrf.mxu0 }
 0x468   : > { %v2992_v31 = vsub.f32 0.0, %v2964_v8  ;;  %v2909_v16 = vadd.f32 %v2908_v20, %v2880_v53 }
 0x46a   : > { %v4890_v0 = vpop.eup %4889  ;;  %v3051_v17 = vmul.f32 1.442695, %v2992_v31  ;;  %v2997_v33 = vsub.f32 0.0, %v2909_v16 }
 0x46b   : > { %v4892_v27 = vpop.eup %4891  ;;  %v3130_v14 = vadd.f32 1.0, %v4890_v0  ;;  %v2937_v21 = vpop.f32.mrf.mxu3 }
 0x46c   : > { %v4894_v39 = vpop.eup %4893  ;;  %3266 = vst [vmem:[%s5905_s1 + $0x168] sm:$0xff] %v4892_v27  ;;  %4897 = vpow2.f32 %v3051_v17  ;;  %v3061_v6 = vmul.f32 1.442695, %v2997_v33  ;;  %v2938_v12 = vadd.f32 %v2937_v21, %v5979_v28 }
 0x46d   : > { %v4896_v51 = vpop.eup %4895  ;;  %4899 = vrcp.f32 %v3130_v14  ;;  %v3135_v43 = vadd.f32 1.0, %v4894_v39  ;;  %v2881_v44 = vpop.f32.mrf.mxu1 }
 0x46e   : > { %v2910_v46 = vpop.f32.mrf.mxu2  ;;  %3225 = vst [vmem:[%s5905_s1 + $0x20] sm:$0xff] %v4896_v51  ;;  %4901 = vpow2.f32 %v3061_v6  ;;  %v2967_v55 = vadd.f32 %v2966_v13, %v2938_v12  ;;  %v2882_v49 = vadd.f32 %v2881_v44, %v5972_v32 }
 0x46f   : > { %4903 = vrcp.f32 %v3135_v43  ;;  %v2971_v19 = vpop.f32.mrf.mxu0 }
 0x470   : > { %v2998_v29 = vsub.f32 0.0, %v2967_v55  ;;  %v2911_v22 = vadd.f32 %v2910_v46, %v2882_v49 }
 0x472   : > { %v4898_v2 = vpop.eup %4897  ;;  %v3063_v41 = vmul.f32 1.442695, %v2998_v29  ;;  %v3003_v57 = vsub.f32 0.0, %v2911_v22 }
 0x473   : > { %v4900_v45 = vpop.eup %4899  ;;  %v3136_v1 = vadd.f32 1.0, %v4898_v2  ;;  %v2939_v50 = vpop.f32.mrf.mxu3 }
 0x474   : > { %v4902_v38 = vpop.eup %4901  ;;  %3226 = vst [vmem:[%s5905_s1 + $0x28] sm:$0xff] %v4900_v45  ;;  %4905 = vpow2.f32 %v3063_v41  ;;  %v3073_v52 = vmul.f32 1.442695, %v3003_v57  ;;  %v2940_v61 = vadd.f32 %v2939_v50, %v5979_v28 }
 0x475   : > { %v4904_v26 = vpop.eup %4903  ;;  %4907 = vrcp.f32 %v3136_v1  ;;  %v3141_v42 = vadd.f32 1.0, %v4902_v38  ;;  %v2884_v59 = vpop.f32.mrf.mxu1 }
 0x476   : > { %v2913_v11 = vpop.f32.mrf.mxu2  ;;  %3231 = vst [vmem:[%s5905_s1 + $0x50] sm:$0xff] %v4904_v26  ;;  %4909 = vpow2.f32 %v3073_v52  ;;  %v2969_v62 = vadd.f32 %v2968_v54, %v2940_v61  ;;  %v2885_v24 = vadd.f32 %v2884_v59, %v5972_v32 }
 0x477   : > { %4911 = vrcp.f32 %v3141_v42  ;;  %v2973_v31 = vpop.f32.mrf.mxu0 }
 0x478   : > { %v3004_v58 = vsub.f32 0.0, %v2969_v62  ;;  %v2914_v5 = vadd.f32 %v2913_v11, %v2885_v24 }
 0x47a   : > { %v4906_v63 = vpop.eup %4905  ;;  %v3075_v3 = vmul.f32 1.442695, %v3004_v58  ;;  %v3009_v40 = vsub.f32 0.0, %v2914_v5 }
 0x47b   : > { %v4908_v9 = vpop.eup %4907  ;;  %v3142_v7 = vadd.f32 1.0, %v4906_v63  ;;  %v2942_v4 = vpop.f32.mrf.mxu3 }
 0x47c   : > { %v4910_v18 = vpop.eup %4909  ;;  %3232 = vst [vmem:[%s5905_s1 + $0x58] sm:$0xff] %v4908_v9  ;;  %4913 = vpow2.f32 %v3075_v3  ;;  %v3085_v37 = vmul.f32 1.442695, %v3009_v40  ;;  %v2943_v25 = vadd.f32 %v2942_v4, %v5979_v28 }
 0x47d   : > { %v4912_v23 = vpop.eup %4911  ;;  %4915 = vrcp.f32 %v3142_v7  ;;  %v3147_v35 = vadd.f32 1.0, %v4910_v18  ;;  %v2886_v10 = vpop.f32.mrf.mxu1 }
 0x47e   : > { %v2915_v36 = vpop.f32.mrf.mxu2  ;;  %3237 = vst [vmem:[%s5905_s1 + $0x80] sm:$0xff] %v4912_v23  ;;  %4917 = vpow2.f32 %v3085_v37  ;;  %v2972_v60 = vadd.f32 %v2971_v19, %v2943_v25  ;;  %v2887_v15 = vadd.f32 %v2886_v10, %v5972_v32 }
 0x47f   : > { %4919 = vrcp.f32 %v3147_v35 }
 0x480   : > { %v3010_v47 = vsub.f32 0.0, %v2972_v60  ;;  %v2916_v30 = vadd.f32 %v2915_v36, %v2887_v15 }
 0x482   : > { %v4914_v34 = vpop.eup %4913  ;;  %v3087_v48 = vmul.f32 1.442695, %v3010_v47  ;;  %v3015_v56 = vsub.f32 0.0, %v2916_v30 }
 0x483   : > { %v4916_v20 = vpop.eup %4915  ;;  %v3148_v13 = vadd.f32 1.0, %v4914_v34  ;;  %v2944_v8 = vpop.f32.mrf.mxu3 }
 0x484   : > { %v4918_v53 = vpop.eup %4917  ;;  %3238 = vst [vmem:[%s5905_s1 + $0x88] sm:$0xff] %v4916_v20  ;;  %4921 = vpow2.f32 %v3087_v48  ;;  %v3097_v16 = vmul.f32 1.442695, %v3015_v56  ;;  %v2945_v0 = vadd.f32 %v2944_v8, %v5979_v28 }
 0x485   : > { %v4920_v17 = vpop.eup %4919  ;;  %4923 = vrcp.f32 %v3148_v13  ;;  %v3153_v33 = vadd.f32 1.0, %v4918_v53  ;;  %v2889_v27 = vpop.f32.mrf.mxu1 }
 0x486   : > { %v2918_v14 = vpop.f32.mrf.mxu2  ;;  %3243 = vst [vmem:[%s5905_s1 + $0xb0] sm:$0xff] %v4920_v17  ;;  %4925 = vpow2.f32 %v3097_v16  ;;  %v2974_v21 = vadd.f32 %v2973_v31, %v2945_v0  ;;  %v2890_v39 = vadd.f32 %v2889_v27, %v5972_v32 }
 0x487   : > { %4927 = vrcp.f32 %v3153_v33 }
 0x488   : > { %v3016_v6 = vsub.f32 0.0, %v2974_v21  ;;  %v2919_v12 = vadd.f32 %v2918_v14, %v2890_v39 }
 0x48a   : > { %v4922_v51 = vpop.eup %4921  ;;  %v3099_v43 = vmul.f32 1.442695, %v3016_v6  ;;  %v3021_v44 = vsub.f32 0.0, %v2919_v12 }
 0x48b   : > { %v4924_v46 = vpop.eup %4923  ;;  %v3154_v55 = vadd.f32 1.0, %v4922_v51  ;;  %v2947_v45 = vpop.f32.mrf.mxu3 }
 0x48c   : > { %v4926_v49 = vpop.eup %4925  ;;  %3244 = vst [vmem:[%s5905_s1 + $0xb8] sm:$0xff] %v4924_v46  ;;  %4929 = vpow2.f32 %v3099_v43  ;;  %v3109_v54 = vmul.f32 1.442695, %v3021_v44  ;;  %v2948_v42 = vadd.f32 %v2947_v45, %v5979_v28 }
 0x48d   : > { %v4928_v29 = vpop.eup %4927  ;;  %4931 = vrcp.f32 %v3154_v55  ;;  %v3159_v22 = vadd.f32 1.0, %v4926_v49  ;;  %v2891_v2 = vpop.f32.mrf.mxu1 }
 0x48e   : > { %v2920_v41 = vpop.f32.mrf.mxu2  ;;  %3249 = vst [vmem:[%s5905_s1 + $0xe0] sm:$0xff] %v4928_v29  ;;  %4933 = vpow2.f32 %v3109_v54  ;;  %v2892_v57 = vadd.f32 %v2891_v2, %v5972_v32 }
 0x48f   : > { %4935 = vrcp.f32 %v3159_v22 }
 0x490   : > { %v2921_v1 = vadd.f32 %v2920_v41, %v2892_v57 }
 0x492   : > { %v4930_v50 = vpop.eup %4929  ;;  %v3027_v38 = vsub.f32 0.0, %v2921_v1 }
 0x493   : > { %v4932_v52 = vpop.eup %4931  ;;  %v3160_v61 = vadd.f32 1.0, %v4930_v50  ;;  %v2949_v5 = vpop.f32.mrf.mxu3 }
 0x494   : > { %v4934_v26 = vpop.eup %4933  ;;  %3250 = vst [vmem:[%s5905_s1 + $0xe8] sm:$0xff] %v4932_v52  ;;  %v3121_v59 = vmul.f32 1.442695, %v3027_v38  ;;  %v2950_v40 = vadd.f32 %v2949_v5, %v5979_v28 }
 0x495   : > { %v4936_v11 = vpop.eup %4935  ;;  %4937 = vrcp.f32 %v3160_v61  ;;  %v3165_v62 = vadd.f32 1.0, %v4934_v26 }
 0x496   : > { %v2976_v24 = vpop.f32.mrf.mxu2  ;;  %3255 = vst [vmem:[%s5905_s1 + $0x110] sm:$0xff] %v4936_v11  ;;  %4939 = vpow2.f32 %v3121_v59 }
 0x497   : > { %v2977_v32 = vadd.f32 %v2976_v24, %v2948_v42  ;;  %4941 = vrcp.f32 %v3165_v62 }
 0x499   : > { %v3022_v58 = vsub.f32 0.0, %v2977_v32 }
 0x49b   : > { %v3111_v63 = vmul.f32 1.442695, %v3022_v58  ;;  %v4938_v19 = vpop.eup %4937 }
 0x49c   : > { %v4940_v3 = vpop.eup %4939  ;;  %3256 = vst [vmem:[%s5905_s1 + $0x118] sm:$0xff] %v4938_v19 }
 0x49d   : > { %4943 = vpow2.f32 %v3111_v63  ;;  %v4942_v9 = vpop.eup %4941  ;;  %v3171_v7 = vadd.f32 1.0, %v4940_v3 }
 0x49e   : > { %v2978_v4 = vpop.f32.mrf.mxu2  ;;  %3261 = vst [vmem:[%s5905_s1 + $0x140] sm:$0xff] %v4942_v9 }
 0x49f   : > { %v2979_v18 = vadd.f32 %v2978_v4, %v2950_v40  ;;  %4945 = vrcp.f32 %v3171_v7 }
 0x4a1   : > { %v3028_v37 = vsub.f32 0.0, %v2979_v18 }
 0x4a3   : > { %v4944_v25 = vpop.eup %4943  ;;  %v3123_v23 = vmul.f32 1.442695, %v3028_v37 }
 0x4a4   : > { %v3166_v35 = vadd.f32 1.0, %v4944_v25 }
 0x4a5   : > { %4947 = vpow2.f32 %v3123_v23  ;;  %v4946_v10 = vpop.eup %4945 }
 0x4a6   : > { %4949 = vrcp.f32 %v3166_v35  ;;  %3267 = vst [vmem:[%s5905_s1 + $0x170] sm:$0xff] %v4946_v10 }
 0x4ab   : > { %v4948_v28 = vpop.eup %4947 }
 0x4ac   : > { %v4950_v36 = vpop.eup %4949  ;;  %v3172_v60 = vadd.f32 1.0, %v4948_v28 }
 0x4ad   : > { %3262 = vst [vmem:[%s5905_s1 + $0x148] sm:$0xff] %v4950_v36 }
 0x4ae   : > { %4951 = vrcp.f32 %v3172_v60 }
 0x4b4   : > { %v4952_v15 = vpop.eup %4951 }
 0x4b5   : > { %3268 = vst [vmem:[%s5905_s1 + $0x178] sm:$0xff] %v4952_v15 }
 0x4b6   : > { %5220 = shalt.err (!%p5217_p8)
}
 0x4b7   : > { %s5292_s5 = smov 768   ;;  %s5293_s30 = smov 48  }
 0x4b8   : > { %4662 = dma.vmem_to_hbm [thread:$0]  (%p5455_p13), %s3284_s10, 6144, %s3286_s6, %s3270_s2, %s5292_s5, %s5292_s5, %s5293_s30  }
 0x4b9 PF: > { %p4709_p9 = scmp.ge.s32.totalorder %s5275_s20, 2  ;;  %s3300_s14 = sand.u32 1, %s5263_s17  }
 0x4ba   : > { %s3301_s1 = scalar_lea.sflag [#allocation4], %s3300_s14 }
 0x4bb   : > { %p4691_p10 = pnand %p4709_p9, %p5461_p4 }
 0x4bd   : > { %p4692_p11 = pneg %p4691_p10 }
 0x4bf   : > { %5258 = dma.done.wait (%p4692_p11), %s3301_s1, 6144  }
 0x4c0   : > { %5260 = vsyncadd (%p4692_p11), %s3301_s1, 4294961152  ;;  %p28_p0 = scmp.ge.s32.totalorder %s5435_s26, 6   ;;  %s6087_s17 = smov %s5267_s18 }
 0x4c1   : > { %s6088_s18 = smov %s5271_s19  ;;  %s6089_s19 = smov %s5447_s16 }
 0x4c2   : > { %s6090_s20 = smov %s5435_s26  ;;  %30 = sbr.rel (!%p28_p0) target bundleno = 18 (0x12), region = 137 }
 0x4c7   :  { %3307 = vsyncpa [#allocation3], 1 }
 0x4c8   :  { %3309 = vsyncpa [#allocation3 + $0x1], 1 }
 0x4c9   :  { %3310 = vsyncpa [#allocation6], 1 }
 0x4ca   :  { %3311 = vsyncpa [#allocation9], 1 }
 0x4cb   :  { %3312 = vsyncpa [#allocation12], 1 }
 0x4cc   :  { %3313 = vsyncpa [#allocation15], 1 }
 0x4cd   :  { %3314 = vsyncpa [#allocation4], 1 }
 0x4ce   :  { %3316 = vsyncpa [#allocation4 + $0x1], 1 }

</bundles_post_ra>
